<compile_context>
chip_gen: v7x
topology: tpu7x:2x2x1
jax: 0.10.0
libtpu: 0.0.40
codegen_flags: <defaults>
</compile_context>

<pallas_src>
import numpy as np
import jax
import jax.numpy as jnp
from jax import lax
from jax.experimental import pallas as pl
from jax.experimental.pallas import tpu as pltpu

LEAKY_SLOPE = 0.2
BN_EPS = 0.8   # nn.BatchNorm2d(out_filters, 0.8): 2nd positional arg is eps


# ---------------------------------------------------------------------------
# Fused Pallas kernel: conv blocks 1-4 + BN + head, all in VMEM
# ---------------------------------------------------------------------------
def _fused_disc_kernel(p1_ref, w1_ref, b1_ref,
                       g2_ref, w2_ref, b2_ref, gm2_ref, bt2_ref,
                       g3_ref, w3_ref, b3_ref, gm3_ref, bt3_ref,
                       g4_ref, w4_ref, b4_ref, gm4_ref, bt4_ref,
                       hw_ref, hb_ref, out_ref):
    f32 = jnp.float32

    def leaky(y):
        return jnp.where(y > 0, y, LEAKY_SLOPE * y)

    def conv_bn_block(a, g_ref, w_ref, b_ref, gm_ref, bt_ref):
        m_out = g_ref.shape[1]
        c_out = w_ref.shape[2]
        # Conv2d(3x3, stride 2, pad 1) as 9 gather+matmul taps, accumulated
        # in f32.  NOTE: operands kept f32 (MXU idle at these shapes); cast
        # to bf16 here when scaling batch/resolution on v6e/v7x.
        y = jnp.zeros((m_out, c_out), f32)
        for k in range(9):                               # static 3x3 unroll
            gathered = jnp.dot(g_ref[k], a, preferred_element_type=f32)
            y = y + jnp.dot(gathered, w_ref[k], preferred_element_type=f32)
        y = leaky(y + b_ref[...])
        # TODO(synk): Dropout2d(0.25) uses torch RNG in train mode; identity here.
        # Training-mode BatchNorm2d: batch stats over all rows (= (n, h, w)),
        # biased variance, eps = 0.8.  rsqrt uses the (otherwise idle) EUP slot.
        mean = jnp.mean(y, axis=0, keepdims=True)
        var = jnp.mean((y - mean) ** 2, axis=0, keepdims=True)
        y = (y - mean) * lax.rsqrt(var + BN_EPS)
        return y * gm_ref[...] + bt_ref[...]

    # -- block1: conv-as-matmul on pre-built image patches (+bias, LeakyReLU) --
    a = jnp.dot(p1_ref[...], w1_ref[...], preferred_element_type=f32)
    a = leaky(a + b1_ref[...])

    a = conv_bn_block(a, g2_ref, w2_ref, b2_ref, gm2_ref, bt2_ref)   # 16 -> 32
    a = conv_bn_block(a, g3_ref, w3_ref, b3_ref, gm3_ref, bt3_ref)   # 32 -> 64
    a = conv_bn_block(a, g4_ref, w4_ref, b4_ref, gm4_ref, bt4_ref)   # 64 -> 128

    # -- head: Linear(128, 1) + Sigmoid.  Final spatial is 1x1, so the
    #    channel-last (N, 128) activation is already PyTorch's out.view(N, -1).
    z = jnp.dot(a, hw_ref[...], preferred_element_type=f32) + hb_ref[...]
    out_ref[...] = 1.0 / (1.0 + jnp.exp(-z))


# ---------------------------------------------------------------------------
# One-time operand packing (constants; hoisted out of the forward path)
# ---------------------------------------------------------------------------
def _gather_mats(n, h_in, w_in):
    """One-hot selection matrices implementing im2col for a 3x3/stride-2/pad-1
    conv on a channel-last activation flattened to (n*h_in*w_in, C), row order
    (n, h, w).  g[k] @ act yields rows x_pad[n, 2ho+kh-1, 2wo+kw-1, :] for tap
    k = kh*3 + kw (zero rows where the tap hits the padding)."""
    assert h_in % 2 == 0 and w_in % 2 == 0
    ho, wo = h_in // 2, w_in // 2
    m_out, m_in = n * ho * wo, n * h_in * w_in
    g = np.zeros((9, m_out, m_in), np.float32)
    for kh in range(3):
        for kw in range(3):
            k = kh * 3 + kw
            for b in range(n):
                for oh in range(ho):
                    ih = 2 * oh + kh - 1
                    if not 0 <= ih < h_in:
                        continue
                    for ow in range(wo):
                        iw = 2 * ow + kw - 1
                        if not 0 <= iw < w_in:
                            continue
                        g[k, (b * ho + oh) * wo + ow,
                             (b * h_in + ih) * w_in + iw] = 1.0
    return jnp.asarray(g)


def pack_operands(params, n, h, w):
    """Pack conv weights / BN params / gather matrices once (pure layout
    plumbing; no per-forward repacking)."""
    ops = []
    w1, b1, _, _ = params["block1"]
    c1 = w1.shape[0]
    ops += [jnp.transpose(w1.reshape(c1, 9)),        # (9, 16): row k = (kh,kw)
            b1.reshape(1, c1)]
    hh, ww = h // 2, w // 2                          # block1 output spatial
    for name in ("block2", "block3", "block4"):
        wl, bl, gl, tl = params[name]
        cout, cin = wl.shape[0], wl.shape[1]
        ops += [_gather_mats(n, hh, ww),                              # (9, Mo, Mi)
                jnp.transpose(wl, (2, 3, 1, 0)).reshape(9, cin, cout),  # per-tap W
                bl.reshape(1, cout), gl.reshape(1, cout), tl.reshape(1, cout)]
        hh, ww = hh // 2, ww // 2
    ops += [params["head_w"], params["head_b"]]
    return tuple(ops)


def _im2col_c1(img_nchw):
    """im2col for block1 only (single input channel), done on the raw image.
    Rows ordered (n, ho, wo); columns ordered k = kh*3 + kw."""
    n, _, h, w = img_nchw.shape
    ho, wo = h // 2, w // 2
    xp = jnp.pad(img_nchw[:, 0], ((0, 0), (1, 1), (1, 1)))
    cols = [xp[:, kh:kh + 2 * ho:2, kw:kw + 2 * wo:2]
            for kh in range(3) for kw in range(3)]
    return jnp.stack(cols, axis=-1).reshape(n * ho * wo, 9)


# ---------------------------------------------------------------------------
# Forward pass: ONE pallas_call, everything in VMEM
# ---------------------------------------------------------------------------
def discriminator_forward(operands, img):
    n = img.shape[0]
    patches1 = _im2col_c1(img.astype(jnp.float32))
    n_in = 1 + len(operands)
    # At these shapes the whole problem fits in VMEM -> no grid.  Scaling the
    # batch/resolution up would add a grid over the M = N*Ho*Wo axis with
    # dimension_semantics=("parallel",) (2 TCs on v7x) and a two-pass BN.
    return pl.pallas_call(
        _fused_disc_kernel,
        out_shape=jax.ShapeDtypeStruct((n, 1), jnp.float32),
        in_specs=[pl.BlockSpec(memory_space=pltpu.MemorySpace.VMEM)] * n_in,
        out_specs=pl.BlockSpec(memory_space=pltpu.MemorySpace.VMEM),
    )(patches1, *operands)


# ---------------------------------------------------------------------------
# Deterministic parameter init (synthetic; PyTorch shapes)
# ---------------------------------------------------------------------------
def init_params(key, feat_dim):
    ks = jax.random.split(key, 10)

    def conv(kw, kb, cin, cout):
        w = jax.random.normal(kw, (cout, cin, 3, 3), jnp.float32) * 0.1
        b = jax.random.normal(kb, (cout,), jnp.float32) * 0.05
        gamma = jnp.ones((cout,), jnp.float32)   # PyTorch BatchNorm defaults
        beta = jnp.zeros((cout,), jnp.float32)
        return (w, b, gamma, beta)

    return {
        "block1": conv(ks[0], ks[1], 1, 16),
        "block2": conv(ks[2], ks[3], 16, 32),
        "block3": conv(ks[4], ks[5], 32, 64),
        "block4": conv(ks[6], ks[7], 64, 128),
        # adv_layer Linear(feat_dim, 1) is created fresh in forward(); we use
        # deterministic synthetic weights instead.
        "head_w": jax.random.normal(ks[8], (feat_dim, 1), jnp.float32) * 0.1,
        "head_b": jax.random.normal(ks[9], (1, 1), jnp.float32) * 0.05,
    }


# ---------------------------------------------------------------------------
# Pure-JAX reference (lax.conv) for correctness checking
# ---------------------------------------------------------------------------
def _ref_forward(params, img):
    def block(x, w, b, gamma, beta, use_bn):
        y = lax.conv_general_dilated(
            x, w, (2, 2), ((1, 1), (1, 1)),
            dimension_numbers=("NCHW", "OIHW", "NCHW"))
        y = y + b[None, :, None, None]
        y = jnp.where(y > 0, y, LEAKY_SLOPE * y)
        if use_bn:
            mean = jnp.mean(y, axis=(0, 2, 3), keepdims=True)
            var = jnp.mean((y - mean) ** 2, axis=(0, 2, 3), keepdims=True)
            y = (y - mean) / jnp.sqrt(var + BN_EPS)
            y = y * gamma[None, :, None, None] + beta[None, :, None, None]
        return y

    x = img
    x = block(x, *params["block1"], False)
    x = block(x, *params["block2"], True)
    x = block(x, *params["block3"], True)
    x = block(x, *params["block4"], True)
    flat = x.reshape(x.shape[0], -1)
    return jax.nn.sigmoid(flat @ params["head_w"] + params["head_b"])


if __name__ == "__main__":
    key = jax.random.PRNGKey(0)
    pkey, xkey = jax.random.split(key)

    # output_channel = 1 -> input is (N, 1, H, W); H=W=16 -> 8 -> 4 -> 2 -> 1.
    # (fused flatten+head assumes the final spatial size is 1x1)
    N, H, W = 2, 16, 16
    assert H == 16 and W == 16
    feat_dim = 128 * (H // 16) * (W // 16)        # 128 * 1 * 1
    params = init_params(pkey, feat_dim)
    img = jax.random.normal(xkey, (N, 1, H, W), jnp.float32)

    operands = pack_operands(params, N, H, W)     # packed once, outside forward
    fwd = jax.jit(discriminator_forward)
    out = jax.block_until_ready(fwd(operands, img))
    assert out.shape == (N, 1)

    ref = _ref_forward(params, img)
    np.testing.assert_allclose(np.asarray(out), np.asarray(ref),
                               rtol=5e-4, atol=5e-4)
    print("KERNEL_OK")
</pallas_src>

<mosaic_0001>
module attributes {stable_mosaic.version = 11 : i64} {
  func.func @_fused_disc_kernel(%arg0: memref<128x9xf32, #tpu.memory_space<vmem>>, %arg1: memref<9x16xf32, #tpu.memory_space<vmem>>, %arg2: memref<1x16xf32, #tpu.memory_space<vmem>>, %arg3: memref<9x32x128xf32, #tpu.memory_space<vmem>>, %arg4: memref<9x16x32xf32, #tpu.memory_space<vmem>>, %arg5: memref<1x32xf32, #tpu.memory_space<vmem>>, %arg6: memref<1x32xf32, #tpu.memory_space<vmem>>, %arg7: memref<1x32xf32, #tpu.memory_space<vmem>>, %arg8: memref<9x8x32xf32, #tpu.memory_space<vmem>>, %arg9: memref<9x32x64xf32, #tpu.memory_space<vmem>>, %arg10: memref<1x64xf32, #tpu.memory_space<vmem>>, %arg11: memref<1x64xf32, #tpu.memory_space<vmem>>, %arg12: memref<1x64xf32, #tpu.memory_space<vmem>>, %arg13: memref<9x2x8xf32, #tpu.memory_space<vmem>>, %arg14: memref<9x64x128xf32, #tpu.memory_space<vmem>>, %arg15: memref<1x128xf32, #tpu.memory_space<vmem>>, %arg16: memref<1x128xf32, #tpu.memory_space<vmem>>, %arg17: memref<1x128xf32, #tpu.memory_space<vmem>>, %arg18: memref<128x1xf32, #tpu.memory_space<vmem>>, %arg19: memref<1x1xf32, #tpu.memory_space<vmem>>, %arg20: memref<2x1xf32, #tpu.memory_space<vmem>>) attributes {dimension_semantics = [], scalar_prefetch = 0 : i64, scratch_operands = 0 : i64, tpu.core_type = #tpu.core_type<tc>} {
    %c0 = arith.constant 0 : index
    %c0_0 = arith.constant 0 : index
    %0 = vector.load %arg0[%c0, %c0_0] : memref<128x9xf32, #tpu.memory_space<vmem>>, vector<128x9xf32>
    %c0_1 = arith.constant 0 : index
    %c0_2 = arith.constant 0 : index
    %1 = vector.load %arg1[%c0_1, %c0_2] : memref<9x16xf32, #tpu.memory_space<vmem>>, vector<9x16xf32>
    %cst = arith.constant dense<0.000000e+00> : vector<128x16xf32>
    %2 = tpu.matmul %0, %1, %cst {dimension_numbers = #tpu.dot_dimension_numbers<[1], [0], [0], [1], [0, 0, 1, 1], [], []>} : vector<128x9xf32>, vector<9x16xf32>, vector<128x16xf32> -> vector<128x16xf32>
    %c0_3 = arith.constant 0 : index
    %c0_4 = arith.constant 0 : index
    %3 = vector.load %arg2[%c0_3, %c0_4] : memref<1x16xf32, #tpu.memory_space<vmem>>, vector<1x16xf32>
    %4 = vector.broadcast %3 : vector<1x16xf32> to vector<128x16xf32>
    %5 = arith.addf %2, %4 : vector<128x16xf32>
    %cst_5 = arith.constant 0.000000e+00 : f32
    %6 = vector.broadcast %cst_5 : f32 to vector<128x16xf32>
    %7 = arith.cmpf ogt, %5, %6 : vector<128x16xf32>
    %cst_6 = arith.constant 2.000000e-01 : f32
    %8 = vector.broadcast %cst_6 : f32 to vector<128x16xf32>
    %9 = arith.mulf %8, %5 : vector<128x16xf32>
    %10 = arith.select %7, %5, %9 : vector<128x16xi1>, vector<128x16xf32>
    %cst_7 = arith.constant 0.000000e+00 : f32
    %11 = vector.broadcast %cst_7 : f32 to vector<32x32xf32>
    %c0_8 = arith.constant 0 : index
    %c0_9 = arith.constant 0 : index
    %c0_10 = arith.constant 0 : index
    %12 = vector.load %arg3[%c0_8, %c0_9, %c0_10] : memref<9x32x128xf32, #tpu.memory_space<vmem>>, vector<1x32x128xf32>
    %13 = vector.shape_cast %12 : vector<1x32x128xf32> to vector<32x128xf32>
    %cst_11 = arith.constant dense<0.000000e+00> : vector<32x16xf32>
    %14 = tpu.matmul %13, %10, %cst_11 {dimension_numbers = #tpu.dot_dimension_numbers<[1], [0], [0], [1], [0, 0, 1, 1], [], []>} : vector<32x128xf32>, vector<128x16xf32>, vector<32x16xf32> -> vector<32x16xf32>
    %c0_12 = arith.constant 0 : index
    %c0_13 = arith.constant 0 : index
    %c0_14 = arith.constant 0 : index
    %15 = vector.load %arg4[%c0_12, %c0_13, %c0_14] : memref<9x16x32xf32, #tpu.memory_space<vmem>>, vector<1x16x32xf32>
    %16 = vector.shape_cast %15 : vector<1x16x32xf32> to vector<16x32xf32>
    %cst_15 = arith.constant dense<0.000000e+00> : vector<32x32xf32>
    %17 = tpu.matmul %14, %16, %cst_15 {dimension_numbers = #tpu.dot_dimension_numbers<[1], [0], [0], [1], [0, 0, 1, 1], [], []>} : vector<32x16xf32>, vector<16x32xf32>, vector<32x32xf32> -> vector<32x32xf32>
    %18 = arith.addf %11, %17 : vector<32x32xf32>
    %c1 = arith.constant 1 : index
    %c0_16 = arith.constant 0 : index
    %c0_17 = arith.constant 0 : index
    %19 = vector.load %arg3[%c1, %c0_16, %c0_17] : memref<9x32x128xf32, #tpu.memory_space<vmem>>, vector<1x32x128xf32>
    %20 = vector.shape_cast %19 : vector<1x32x128xf32> to vector<32x128xf32>
    %cst_18 = arith.constant dense<0.000000e+00> : vector<32x16xf32>
    %21 = tpu.matmul %20, %10, %cst_18 {dimension_numbers = #tpu.dot_dimension_numbers<[1], [0], [0], [1], [0, 0, 1, 1], [], []>} : vector<32x128xf32>, vector<128x16xf32>, vector<32x16xf32> -> vector<32x16xf32>
    %c1_19 = arith.constant 1 : index
    %c0_20 = arith.constant 0 : index
    %c0_21 = arith.constant 0 : index
    %22 = vector.load %arg4[%c1_19, %c0_20, %c0_21] : memref<9x16x32xf32, #tpu.memory_space<vmem>>, vector<1x16x32xf32>
    %23 = vector.shape_cast %22 : vector<1x16x32xf32> to vector<16x32xf32>
    %cst_22 = arith.constant dense<0.000000e+00> : vector<32x32xf32>
    %24 = tpu.matmul %21, %23, %cst_22 {dimension_numbers = #tpu.dot_dimension_numbers<[1], [0], [0], [1], [0, 0, 1, 1], [], []>} : vector<32x16xf32>, vector<16x32xf32>, vector<32x32xf32> -> vector<32x32xf32>
    %25 = arith.addf %18, %24 : vector<32x32xf32>
    %c2 = arith.constant 2 : index
    %c0_23 = arith.constant 0 : index
    %c0_24 = arith.constant 0 : index
    %26 = vector.load %arg3[%c2, %c0_23, %c0_24] : memref<9x32x128xf32, #tpu.memory_space<vmem>>, vector<1x32x128xf32>
    %27 = vector.shape_cast %26 : vector<1x32x128xf32> to vector<32x128xf32>
    %cst_25 = arith.constant dense<0.000000e+00> : vector<32x16xf32>
    %28 = tpu.matmul %27, %10, %cst_25 {dimension_numbers = #tpu.dot_dimension_numbers<[1], [0], [0], [1], [0, 0, 1, 1], [], []>} : vector<32x128xf32>, vector<128x16xf32>, vector<32x16xf32> -> vector<32x16xf32>
    %c2_26 = arith.constant 2 : index
    %c0_27 = arith.constant 0 : index
    %c0_28 = arith.constant 0 : index
    %29 = vector.load %arg4[%c2_26, %c0_27, %c0_28] : memref<9x16x32xf32, #tpu.memory_space<vmem>>, vector<1x16x32xf32>
    %30 = vector.shape_cast %29 : vector<1x16x32xf32> to vector<16x32xf32>
    %cst_29 = arith.constant dense<0.000000e+00> : vector<32x32xf32>
    %31 = tpu.matmul %28, %30, %cst_29 {dimension_numbers = #tpu.dot_dimension_numbers<[1], [0], [0], [1], [0, 0, 1, 1], [], []>} : vector<32x16xf32>, vector<16x32xf32>, vector<32x32xf32> -> vector<32x32xf32>
    %32 = arith.addf %25, %31 : vector<32x32xf32>
    %c3 = arith.constant 3 : index
    %c0_30 = arith.constant 0 : index
    %c0_31 = arith.constant 0 : index
    %33 = vector.load %arg3[%c3, %c0_30, %c0_31] : memref<9x32x128xf32, #tpu.memory_space<vmem>>, vector<1x32x128xf32>
    %34 = vector.shape_cast %33 : vector<1x32x128xf32> to vector<32x128xf32>
    %cst_32 = arith.constant dense<0.000000e+00> : vector<32x16xf32>
    %35 = tpu.matmul %34, %10, %cst_32 {dimension_numbers = #tpu.dot_dimension_numbers<[1], [0], [0], [1], [0, 0, 1, 1], [], []>} : vector<32x128xf32>, vector<128x16xf32>, vector<32x16xf32> -> vector<32x16xf32>
    %c3_33 = arith.constant 3 : index
    %c0_34 = arith.constant 0 : index
    %c0_35 = arith.constant 0 : index
    %36 = vector.load %arg4[%c3_33, %c0_34, %c0_35] : memref<9x16x32xf32, #tpu.memory_space<vmem>>, vector<1x16x32xf32>
    %37 = vector.shape_cast %36 : vector<1x16x32xf32> to vector<16x32xf32>
    %cst_36 = arith.constant dense<0.000000e+00> : vector<32x32xf32>
    %38 = tpu.matmul %35, %37, %cst_36 {dimension_numbers = #tpu.dot_dimension_numbers<[1], [0], [0], [1], [0, 0, 1, 1], [], []>} : vector<32x16xf32>, vector<16x32xf32>, vector<32x32xf32> -> vector<32x32xf32>
    %39 = arith.addf %32, %38 : vector<32x32xf32>
    %c4 = arith.constant 4 : index
    %c0_37 = arith.constant 0 : index
    %c0_38 = arith.constant 0 : index
    %40 = vector.load %arg3[%c4, %c0_37, %c0_38] : memref<9x32x128xf32, #tpu.memory_space<vmem>>, vector<1x32x128xf32>
    %41 = vector.shape_cast %40 : vector<1x32x128xf32> to vector<32x128xf32>
    %cst_39 = arith.constant dense<0.000000e+00> : vector<32x16xf32>
    %42 = tpu.matmul %41, %10, %cst_39 {dimension_numbers = #tpu.dot_dimension_numbers<[1], [0], [0], [1], [0, 0, 1, 1], [], []>} : vector<32x128xf32>, vector<128x16xf32>, vector<32x16xf32> -> vector<32x16xf32>
    %c4_40 = arith.constant 4 : index
    %c0_41 = arith.constant 0 : index
    %c0_42 = arith.constant 0 : index
    %43 = vector.load %arg4[%c4_40, %c0_41, %c0_42] : memref<9x16x32xf32, #tpu.memory_space<vmem>>, vector<1x16x32xf32>
    %44 = vector.shape_cast %43 : vector<1x16x32xf32> to vector<16x32xf32>
    %cst_43 = arith.constant dense<0.000000e+00> : vector<32x32xf32>
    %45 = tpu.matmul %42, %44, %cst_43 {dimension_numbers = #tpu.dot_dimension_numbers<[1], [0], [0], [1], [0, 0, 1, 1], [], []>} : vector<32x16xf32>, vector<16x32xf32>, vector<32x32xf32> -> vector<32x32xf32>
    %46 = arith.addf %39, %45 : vector<32x32xf32>
    %c5 = arith.constant 5 : index
    %c0_44 = arith.constant 0 : index
    %c0_45 = arith.constant 0 : index
    %47 = vector.load %arg3[%c5, %c0_44, %c0_45] : memref<9x32x128xf32, #tpu.memory_space<vmem>>, vector<1x32x128xf32>
    %48 = vector.shape_cast %47 : vector<1x32x128xf32> to vector<32x128xf32>
    %cst_46 = arith.constant dense<0.000000e+00> : vector<32x16xf32>
    %49 = tpu.matmul %48, %10, %cst_46 {dimension_numbers = #tpu.dot_dimension_numbers<[1], [0], [0], [1], [0, 0, 1, 1], [], []>} : vector<32x128xf32>, vector<128x16xf32>, vector<32x16xf32> -> vector<32x16xf32>
    %c5_47 = arith.constant 5 : index
    %c0_48 = arith.constant 0 : index
    %c0_49 = arith.constant 0 : index
    %50 = vector.load %arg4[%c5_47, %c0_48, %c0_49] : memref<9x16x32xf32, #tpu.memory_space<vmem>>, vector<1x16x32xf32>
    %51 = vector.shape_cast %50 : vector<1x16x32xf32> to vector<16x32xf32>
    %cst_50 = arith.constant dense<0.000000e+00> : vector<32x32xf32>
    %52 = tpu.matmul %49, %51, %cst_50 {dimension_numbers = #tpu.dot_dimension_numbers<[1], [0], [0], [1], [0, 0, 1, 1], [], []>} : vector<32x16xf32>, vector<16x32xf32>, vector<32x32xf32> -> vector<32x32xf32>
    %53 = arith.addf %46, %52 : vector<32x32xf32>
    %c6 = arith.constant 6 : index
    %c0_51 = arith.constant 0 : index
    %c0_52 = arith.constant 0 : index
    %54 = vector.load %arg3[%c6, %c0_51, %c0_52] : memref<9x32x128xf32, #tpu.memory_space<vmem>>, vector<1x32x128xf32>
    %55 = vector.shape_cast %54 : vector<1x32x128xf32> to vector<32x128xf32>
    %cst_53 = arith.constant dense<0.000000e+00> : vector<32x16xf32>
    %56 = tpu.matmul %55, %10, %cst_53 {dimension_numbers = #tpu.dot_dimension_numbers<[1], [0], [0], [1], [0, 0, 1, 1], [], []>} : vector<32x128xf32>, vector<128x16xf32>, vector<32x16xf32> -> vector<32x16xf32>
    %c6_54 = arith.constant 6 : index
    %c0_55 = arith.constant 0 : index
    %c0_56 = arith.constant 0 : index
    %57 = vector.load %arg4[%c6_54, %c0_55, %c0_56] : memref<9x16x32xf32, #tpu.memory_space<vmem>>, vector<1x16x32xf32>
    %58 = vector.shape_cast %57 : vector<1x16x32xf32> to vector<16x32xf32>
    %cst_57 = arith.constant dense<0.000000e+00> : vector<32x32xf32>
    %59 = tpu.matmul %56, %58, %cst_57 {dimension_numbers = #tpu.dot_dimension_numbers<[1], [0], [0], [1], [0, 0, 1, 1], [], []>} : vector<32x16xf32>, vector<16x32xf32>, vector<32x32xf32> -> vector<32x32xf32>
    %60 = arith.addf %53, %59 : vector<32x32xf32>
    %c7 = arith.constant 7 : index
    %c0_58 = arith.constant 0 : index
    %c0_59 = arith.constant 0 : index
    %61 = vector.load %arg3[%c7, %c0_58, %c0_59] : memref<9x32x128xf32, #tpu.memory_space<vmem>>, vector<1x32x128xf32>
    %62 = vector.shape_cast %61 : vector<1x32x128xf32> to vector<32x128xf32>
    %cst_60 = arith.constant dense<0.000000e+00> : vector<32x16xf32>
    %63 = tpu.matmul %62, %10, %cst_60 {dimension_numbers = #tpu.dot_dimension_numbers<[1], [0], [0], [1], [0, 0, 1, 1], [], []>} : vector<32x128xf32>, vector<128x16xf32>, vector<32x16xf32> -> vector<32x16xf32>
    %c7_61 = arith.constant 7 : index
    %c0_62 = arith.constant 0 : index
    %c0_63 = arith.constant 0 : index
    %64 = vector.load %arg4[%c7_61, %c0_62, %c0_63] : memref<9x16x32xf32, #tpu.memory_space<vmem>>, vector<1x16x32xf32>
    %65 = vector.shape_cast %64 : vector<1x16x32xf32> to vector<16x32xf32>
    %cst_64 = arith.constant dense<0.000000e+00> : vector<32x32xf32>
    %66 = tpu.matmul %63, %65, %cst_64 {dimension_numbers = #tpu.dot_dimension_numbers<[1], [0], [0], [1], [0, 0, 1, 1], [], []>} : vector<32x16xf32>, vector<16x32xf32>, vector<32x32xf32> -> vector<32x32xf32>
    %67 = arith.addf %60, %66 : vector<32x32xf32>
    %c8 = arith.constant 8 : index
    %c0_65 = arith.constant 0 : index
    %c0_66 = arith.constant 0 : index
    %68 = vector.load %arg3[%c8, %c0_65, %c0_66] : memref<9x32x128xf32, #tpu.memory_space<vmem>>, vector<1x32x128xf32>
    %69 = vector.shape_cast %68 : vector<1x32x128xf32> to vector<32x128xf32>
    %cst_67 = arith.constant dense<0.000000e+00> : vector<32x16xf32>
    %70 = tpu.matmul %69, %10, %cst_67 {dimension_numbers = #tpu.dot_dimension_numbers<[1], [0], [0], [1], [0, 0, 1, 1], [], []>} : vector<32x128xf32>, vector<128x16xf32>, vector<32x16xf32> -> vector<32x16xf32>
    %c8_68 = arith.constant 8 : index
    %c0_69 = arith.constant 0 : index
    %c0_70 = arith.constant 0 : index
    %71 = vector.load %arg4[%c8_68, %c0_69, %c0_70] : memref<9x16x32xf32, #tpu.memory_space<vmem>>, vector<1x16x32xf32>
    %72 = vector.shape_cast %71 : vector<1x16x32xf32> to vector<16x32xf32>
    %cst_71 = arith.constant dense<0.000000e+00> : vector<32x32xf32>
    %73 = tpu.matmul %70, %72, %cst_71 {dimension_numbers = #tpu.dot_dimension_numbers<[1], [0], [0], [1], [0, 0, 1, 1], [], []>} : vector<32x16xf32>, vector<16x32xf32>, vector<32x32xf32> -> vector<32x32xf32>
    %74 = arith.addf %67, %73 : vector<32x32xf32>
    %c0_72 = arith.constant 0 : index
    %c0_73 = arith.constant 0 : index
    %75 = vector.load %arg5[%c0_72, %c0_73] : memref<1x32xf32, #tpu.memory_space<vmem>>, vector<1x32xf32>
    %76 = vector.broadcast %75 : vector<1x32xf32> to vector<32x32xf32>
    %77 = arith.addf %74, %76 : vector<32x32xf32>
    %cst_74 = arith.constant 0.000000e+00 : f32
    %78 = vector.broadcast %cst_74 : f32 to vector<32x32xf32>
    %79 = arith.cmpf ogt, %77, %78 : vector<32x32xf32>
    %cst_75 = arith.constant 2.000000e-01 : f32
    %80 = vector.broadcast %cst_75 : f32 to vector<32x32xf32>
    %81 = arith.mulf %80, %77 : vector<32x32xf32>
    %82 = arith.select %79, %77, %81 : vector<32x32xi1>, vector<32x32xf32>
    %cst_76 = arith.constant dense<0.000000e+00> : vector<32xf32>
    %83 = vector.multi_reduction <add>, %82, %cst_76 [0] : vector<32x32xf32> to vector<32xf32>
    %84 = vector.shape_cast %83 : vector<32xf32> to vector<1x32xf32>
    %cst_77 = arith.constant 3.200000e+01 : f32
    %85 = vector.broadcast %cst_77 : f32 to vector<1x32xf32>
    %86 = arith.divf %84, %85 : vector<1x32xf32>
    %87 = vector.broadcast %86 : vector<1x32xf32> to vector<32x32xf32>
    %88 = arith.subf %82, %87 : vector<32x32xf32>
    %89 = arith.mulf %88, %88 : vector<32x32xf32>
    %cst_78 = arith.constant dense<0.000000e+00> : vector<32xf32>
    %90 = vector.multi_reduction <add>, %89, %cst_78 [0] : vector<32x32xf32> to vector<32xf32>
    %91 = vector.shape_cast %90 : vector<32xf32> to vector<1x32xf32>
    %cst_79 = arith.constant 3.200000e+01 : f32
    %92 = vector.broadcast %cst_79 : f32 to vector<1x32xf32>
    %93 = arith.divf %91, %92 : vector<1x32xf32>
    %94 = vector.broadcast %86 : vector<1x32xf32> to vector<32x32xf32>
    %95 = arith.subf %82, %94 : vector<32x32xf32>
    %cst_80 = arith.constant 8.000000e-01 : f32
    %96 = vector.broadcast %cst_80 : f32 to vector<1x32xf32>
    %97 = arith.addf %93, %96 : vector<1x32xf32>
    %98 = math.rsqrt %97 : vector<1x32xf32>
    %99 = vector.broadcast %98 : vector<1x32xf32> to vector<32x32xf32>
    %100 = arith.mulf %95, %99 : vector<32x32xf32>
    %c0_81 = arith.constant 0 : index
    %c0_82 = arith.constant 0 : index
    %101 = vector.load %arg6[%c0_81, %c0_82] : memref<1x32xf32, #tpu.memory_space<vmem>>, vector<1x32xf32>
    %102 = vector.broadcast %101 : vector<1x32xf32> to vector<32x32xf32>
    %103 = arith.mulf %100, %102 : vector<32x32xf32>
    %c0_83 = arith.constant 0 : index
    %c0_84 = arith.constant 0 : index
    %104 = vector.load %arg7[%c0_83, %c0_84] : memref<1x32xf32, #tpu.memory_space<vmem>>, vector<1x32xf32>
    %105 = vector.broadcast %104 : vector<1x32xf32> to vector<32x32xf32>
    %106 = arith.addf %103, %105 : vector<32x32xf32>
    %cst_85 = arith.constant 0.000000e+00 : f32
    %107 = vector.broadcast %cst_85 : f32 to vector<8x64xf32>
    %c0_86 = arith.constant 0 : index
    %c0_87 = arith.constant 0 : index
    %c0_88 = arith.constant 0 : index
    %108 = vector.load %arg8[%c0_86, %c0_87, %c0_88] : memref<9x8x32xf32, #tpu.memory_space<vmem>>, vector<1x8x32xf32>
    %109 = vector.shape_cast %108 : vector<1x8x32xf32> to vector<8x32xf32>
    %cst_89 = arith.constant dense<0.000000e+00> : vector<8x32xf32>
    %110 = tpu.matmul %109, %106, %cst_89 {dimension_numbers = #tpu.dot_dimension_numbers<[1], [0], [0], [1], [0, 0, 1, 1], [], []>} : vector<8x32xf32>, vector<32x32xf32>, vector<8x32xf32> -> vector<8x32xf32>
    %c0_90 = arith.constant 0 : index
    %c0_91 = arith.constant 0 : index
    %c0_92 = arith.constant 0 : index
    %111 = vector.load %arg9[%c0_90, %c0_91, %c0_92] : memref<9x32x64xf32, #tpu.memory_space<vmem>>, vector<1x32x64xf32>
    %112 = vector.shape_cast %111 : vector<1x32x64xf32> to vector<32x64xf32>
    %cst_93 = arith.constant dense<0.000000e+00> : vector<8x64xf32>
    %113 = tpu.matmul %110, %112, %cst_93 {dimension_numbers = #tpu.dot_dimension_numbers<[1], [0], [0], [1], [0, 0, 1, 1], [], []>} : vector<8x32xf32>, vector<32x64xf32>, vector<8x64xf32> -> vector<8x64xf32>
    %114 = arith.addf %107, %113 : vector<8x64xf32>
    %c1_94 = arith.constant 1 : index
    %c0_95 = arith.constant 0 : index
    %c0_96 = arith.constant 0 : index
    %115 = vector.load %arg8[%c1_94, %c0_95, %c0_96] : memref<9x8x32xf32, #tpu.memory_space<vmem>>, vector<1x8x32xf32>
    %116 = vector.shape_cast %115 : vector<1x8x32xf32> to vector<8x32xf32>
    %cst_97 = arith.constant dense<0.000000e+00> : vector<8x32xf32>
    %117 = tpu.matmul %116, %106, %cst_97 {dimension_numbers = #tpu.dot_dimension_numbers<[1], [0], [0], [1], [0, 0, 1, 1], [], []>} : vector<8x32xf32>, vector<32x32xf32>, vector<8x32xf32> -> vector<8x32xf32>
    %c1_98 = arith.constant 1 : index
    %c0_99 = arith.constant 0 : index
    %c0_100 = arith.constant 0 : index
    %118 = vector.load %arg9[%c1_98, %c0_99, %c0_100] : memref<9x32x64xf32, #tpu.memory_space<vmem>>, vector<1x32x64xf32>
    %119 = vector.shape_cast %118 : vector<1x32x64xf32> to vector<32x64xf32>
    %cst_101 = arith.constant dense<0.000000e+00> : vector<8x64xf32>
    %120 = tpu.matmul %117, %119, %cst_101 {dimension_numbers = #tpu.dot_dimension_numbers<[1], [0], [0], [1], [0, 0, 1, 1], [], []>} : vector<8x32xf32>, vector<32x64xf32>, vector<8x64xf32> -> vector<8x64xf32>
    %121 = arith.addf %114, %120 : vector<8x64xf32>
    %c2_102 = arith.constant 2 : index
    %c0_103 = arith.constant 0 : index
    %c0_104 = arith.constant 0 : index
    %122 = vector.load %arg8[%c2_102, %c0_103, %c0_104] : memref<9x8x32xf32, #tpu.memory_space<vmem>>, vector<1x8x32xf32>
    %123 = vector.shape_cast %122 : vector<1x8x32xf32> to vector<8x32xf32>
    %cst_105 = arith.constant dense<0.000000e+00> : vector<8x32xf32>
    %124 = tpu.matmul %123, %106, %cst_105 {dimension_numbers = #tpu.dot_dimension_numbers<[1], [0], [0], [1], [0, 0, 1, 1], [], []>} : vector<8x32xf32>, vector<32x32xf32>, vector<8x32xf32> -> vector<8x32xf32>
    %c2_106 = arith.constant 2 : index
    %c0_107 = arith.constant 0 : index
    %c0_108 = arith.constant 0 : index
    %125 = vector.load %arg9[%c2_106, %c0_107, %c0_108] : memref<9x32x64xf32, #tpu.memory_space<vmem>>, vector<1x32x64xf32>
    %126 = vector.shape_cast %125 : vector<1x32x64xf32> to vector<32x64xf32>
    %cst_109 = arith.constant dense<0.000000e+00> : vector<8x64xf32>
    %127 = tpu.matmul %124, %126, %cst_109 {dimension_numbers = #tpu.dot_dimension_numbers<[1], [0], [0], [1], [0, 0, 1, 1], [], []>} : vector<8x32xf32>, vector<32x64xf32>, vector<8x64xf32> -> vector<8x64xf32>
    %128 = arith.addf %121, %127 : vector<8x64xf32>
    %c3_110 = arith.constant 3 : index
    %c0_111 = arith.constant 0 : index
    %c0_112 = arith.constant 0 : index
    %129 = vector.load %arg8[%c3_110, %c0_111, %c0_112] : memref<9x8x32xf32, #tpu.memory_space<vmem>>, vector<1x8x32xf32>
    %130 = vector.shape_cast %129 : vector<1x8x32xf32> to vector<8x32xf32>
    %cst_113 = arith.constant dense<0.000000e+00> : vector<8x32xf32>
    %131 = tpu.matmul %130, %106, %cst_113 {dimension_numbers = #tpu.dot_dimension_numbers<[1], [0], [0], [1], [0, 0, 1, 1], [], []>} : vector<8x32xf32>, vector<32x32xf32>, vector<8x32xf32> -> vector<8x32xf32>
    %c3_114 = arith.constant 3 : index
    %c0_115 = arith.constant 0 : index
    %c0_116 = arith.constant 0 : index
    %132 = vector.load %arg9[%c3_114, %c0_115, %c0_116] : memref<9x32x64xf32, #tpu.memory_space<vmem>>, vector<1x32x64xf32>
    %133 = vector.shape_cast %132 : vector<1x32x64xf32> to vector<32x64xf32>
    %cst_117 = arith.constant dense<0.000000e+00> : vector<8x64xf32>
    %134 = tpu.matmul %131, %133, %cst_117 {dimension_numbers = #tpu.dot_dimension_numbers<[1], [0], [0], [1], [0, 0, 1, 1], [], []>} : vector<8x32xf32>, vector<32x64xf32>, vector<8x64xf32> -> vector<8x64xf32>
    %135 = arith.addf %128, %134 : vector<8x64xf32>
    %c4_118 = arith.constant 4 : index
    %c0_119 = arith.constant 0 : index
    %c0_120 = arith.constant 0 : index
    %136 = vector.load %arg8[%c4_118, %c0_119, %c0_120] : memref<9x8x32xf32, #tpu.memory_space<vmem>>, vector<1x8x32xf32>
    %137 = vector.shape_cast %136 : vector<1x8x32xf32> to vector<8x32xf32>
    %cst_121 = arith.constant dense<0.000000e+00> : vector<8x32xf32>
    %138 = tpu.matmul %137, %106, %cst_121 {dimension_numbers = #tpu.dot_dimension_numbers<[1], [0], [0], [1], [0, 0, 1, 1], [], []>} : vector<8x32xf32>, vector<32x32xf32>, vector<8x32xf32> -> vector<8x32xf32>
    %c4_122 = arith.constant 4 : index
    %c0_123 = arith.constant 0 : index
    %c0_124 = arith.constant 0 : index
    %139 = vector.load %arg9[%c4_122, %c0_123, %c0_124] : memref<9x32x64xf32, #tpu.memory_space<vmem>>, vector<1x32x64xf32>
    %140 = vector.shape_cast %139 : vector<1x32x64xf32> to vector<32x64xf32>
    %cst_125 = arith.constant dense<0.000000e+00> : vector<8x64xf32>
    %141 = tpu.matmul %138, %140, %cst_125 {dimension_numbers = #tpu.dot_dimension_numbers<[1], [0], [0], [1], [0, 0, 1, 1], [], []>} : vector<8x32xf32>, vector<32x64xf32>, vector<8x64xf32> -> vector<8x64xf32>
    %142 = arith.addf %135, %141 : vector<8x64xf32>
    %c5_126 = arith.constant 5 : index
    %c0_127 = arith.constant 0 : index
    %c0_128 = arith.constant 0 : index
    %143 = vector.load %arg8[%c5_126, %c0_127, %c0_128] : memref<9x8x32xf32, #tpu.memory_space<vmem>>, vector<1x8x32xf32>
    %144 = vector.shape_cast %143 : vector<1x8x32xf32> to vector<8x32xf32>
    %cst_129 = arith.constant dense<0.000000e+00> : vector<8x32xf32>
    %145 = tpu.matmul %144, %106, %cst_129 {dimension_numbers = #tpu.dot_dimension_numbers<[1], [0], [0], [1], [0, 0, 1, 1], [], []>} : vector<8x32xf32>, vector<32x32xf32>, vector<8x32xf32> -> vector<8x32xf32>
    %c5_130 = arith.constant 5 : index
    %c0_131 = arith.constant 0 : index
    %c0_132 = arith.constant 0 : index
    %146 = vector.load %arg9[%c5_130, %c0_131, %c0_132] : memref<9x32x64xf32, #tpu.memory_space<vmem>>, vector<1x32x64xf32>
    %147 = vector.shape_cast %146 : vector<1x32x64xf32> to vector<32x64xf32>
    %cst_133 = arith.constant dense<0.000000e+00> : vector<8x64xf32>
    %148 = tpu.matmul %145, %147, %cst_133 {dimension_numbers = #tpu.dot_dimension_numbers<[1], [0], [0], [1], [0, 0, 1, 1], [], []>} : vector<8x32xf32>, vector<32x64xf32>, vector<8x64xf32> -> vector<8x64xf32>
    %149 = arith.addf %142, %148 : vector<8x64xf32>
    %c6_134 = arith.constant 6 : index
    %c0_135 = arith.constant 0 : index
    %c0_136 = arith.constant 0 : index
    %150 = vector.load %arg8[%c6_134, %c0_135, %c0_136] : memref<9x8x32xf32, #tpu.memory_space<vmem>>, vector<1x8x32xf32>
    %151 = vector.shape_cast %150 : vector<1x8x32xf32> to vector<8x32xf32>
    %cst_137 = arith.constant dense<0.000000e+00> : vector<8x32xf32>
    %152 = tpu.matmul %151, %106, %cst_137 {dimension_numbers = #tpu.dot_dimension_numbers<[1], [0], [0], [1], [0, 0, 1, 1], [], []>} : vector<8x32xf32>, vector<32x32xf32>, vector<8x32xf32> -> vector<8x32xf32>
    %c6_138 = arith.constant 6 : index
    %c0_139 = arith.constant 0 : index
    %c0_140 = arith.constant 0 : index
    %153 = vector.load %arg9[%c6_138, %c0_139, %c0_140] : memref<9x32x64xf32, #tpu.memory_space<vmem>>, vector<1x32x64xf32>
    %154 = vector.shape_cast %153 : vector<1x32x64xf32> to vector<32x64xf32>
    %cst_141 = arith.constant dense<0.000000e+00> : vector<8x64xf32>
    %155 = tpu.matmul %152, %154, %cst_141 {dimension_numbers = #tpu.dot_dimension_numbers<[1], [0], [0], [1], [0, 0, 1, 1], [], []>} : vector<8x32xf32>, vector<32x64xf32>, vector<8x64xf32> -> vector<8x64xf32>
    %156 = arith.addf %149, %155 : vector<8x64xf32>
    %c7_142 = arith.constant 7 : index
    %c0_143 = arith.constant 0 : index
    %c0_144 = arith.constant 0 : index
    %157 = vector.load %arg8[%c7_142, %c0_143, %c0_144] : memref<9x8x32xf32, #tpu.memory_space<vmem>>, vector<1x8x32xf32>
    %158 = vector.shape_cast %157 : vector<1x8x32xf32> to vector<8x32xf32>
    %cst_145 = arith.constant dense<0.000000e+00> : vector<8x32xf32>
    %159 = tpu.matmul %158, %106, %cst_145 {dimension_numbers = #tpu.dot_dimension_numbers<[1], [0], [0], [1], [0, 0, 1, 1], [], []>} : vector<8x32xf32>, vector<32x32xf32>, vector<8x32xf32> -> vector<8x32xf32>
    %c7_146 = arith.constant 7 : index
    %c0_147 = arith.constant 0 : index
    %c0_148 = arith.constant 0 : index
    %160 = vector.load %arg9[%c7_146, %c0_147, %c0_148] : memref<9x32x64xf32, #tpu.memory_space<vmem>>, vector<1x32x64xf32>
    %161 = vector.shape_cast %160 : vector<1x32x64xf32> to vector<32x64xf32>
    %cst_149 = arith.constant dense<0.000000e+00> : vector<8x64xf32>
    %162 = tpu.matmul %159, %161, %cst_149 {dimension_numbers = #tpu.dot_dimension_numbers<[1], [0], [0], [1], [0, 0, 1, 1], [], []>} : vector<8x32xf32>, vector<32x64xf32>, vector<8x64xf32> -> vector<8x64xf32>
    %163 = arith.addf %156, %162 : vector<8x64xf32>
    %c8_150 = arith.constant 8 : index
    %c0_151 = arith.constant 0 : index
    %c0_152 = arith.constant 0 : index
    %164 = vector.load %arg8[%c8_150, %c0_151, %c0_152] : memref<9x8x32xf32, #tpu.memory_space<vmem>>, vector<1x8x32xf32>
    %165 = vector.shape_cast %164 : vector<1x8x32xf32> to vector<8x32xf32>
    %cst_153 = arith.constant dense<0.000000e+00> : vector<8x32xf32>
    %166 = tpu.matmul %165, %106, %cst_153 {dimension_numbers = #tpu.dot_dimension_numbers<[1], [0], [0], [1], [0, 0, 1, 1], [], []>} : vector<8x32xf32>, vector<32x32xf32>, vector<8x32xf32> -> vector<8x32xf32>
    %c8_154 = arith.constant 8 : index
    %c0_155 = arith.constant 0 : index
    %c0_156 = arith.constant 0 : index
    %167 = vector.load %arg9[%c8_154, %c0_155, %c0_156] : memref<9x32x64xf32, #tpu.memory_space<vmem>>, vector<1x32x64xf32>
    %168 = vector.shape_cast %167 : vector<1x32x64xf32> to vector<32x64xf32>
    %cst_157 = arith.constant dense<0.000000e+00> : vector<8x64xf32>
    %169 = tpu.matmul %166, %168, %cst_157 {dimension_numbers = #tpu.dot_dimension_numbers<[1], [0], [0], [1], [0, 0, 1, 1], [], []>} : vector<8x32xf32>, vector<32x64xf32>, vector<8x64xf32> -> vector<8x64xf32>
    %170 = arith.addf %163, %169 : vector<8x64xf32>
    %c0_158 = arith.constant 0 : index
    %c0_159 = arith.constant 0 : index
    %171 = vector.load %arg10[%c0_158, %c0_159] : memref<1x64xf32, #tpu.memory_space<vmem>>, vector<1x64xf32>
    %172 = vector.broadcast %171 : vector<1x64xf32> to vector<8x64xf32>
    %173 = arith.addf %170, %172 : vector<8x64xf32>
    %cst_160 = arith.constant 0.000000e+00 : f32
    %174 = vector.broadcast %cst_160 : f32 to vector<8x64xf32>
    %175 = arith.cmpf ogt, %173, %174 : vector<8x64xf32>
    %cst_161 = arith.constant 2.000000e-01 : f32
    %176 = vector.broadcast %cst_161 : f32 to vector<8x64xf32>
    %177 = arith.mulf %176, %173 : vector<8x64xf32>
    %178 = arith.select %175, %173, %177 : vector<8x64xi1>, vector<8x64xf32>
    %cst_162 = arith.constant dense<0.000000e+00> : vector<64xf32>
    %179 = vector.multi_reduction <add>, %178, %cst_162 [0] : vector<8x64xf32> to vector<64xf32>
    %180 = vector.shape_cast %179 : vector<64xf32> to vector<1x64xf32>
    %cst_163 = arith.constant 8.000000e+00 : f32
    %181 = vector.broadcast %cst_163 : f32 to vector<1x64xf32>
    %182 = arith.divf %180, %181 : vector<1x64xf32>
    %183 = vector.broadcast %182 : vector<1x64xf32> to vector<8x64xf32>
    %184 = arith.subf %178, %183 : vector<8x64xf32>
    %185 = arith.mulf %184, %184 : vector<8x64xf32>
    %cst_164 = arith.constant dense<0.000000e+00> : vector<64xf32>
    %186 = vector.multi_reduction <add>, %185, %cst_164 [0] : vector<8x64xf32> to vector<64xf32>
    %187 = vector.shape_cast %186 : vector<64xf32> to vector<1x64xf32>
    %cst_165 = arith.constant 8.000000e+00 : f32
    %188 = vector.broadcast %cst_165 : f32 to vector<1x64xf32>
    %189 = arith.divf %187, %188 : vector<1x64xf32>
    %190 = vector.broadcast %182 : vector<1x64xf32> to vector<8x64xf32>
    %191 = arith.subf %178, %190 : vector<8x64xf32>
    %cst_166 = arith.constant 8.000000e-01 : f32
    %192 = vector.broadcast %cst_166 : f32 to vector<1x64xf32>
    %193 = arith.addf %189, %192 : vector<1x64xf32>
    %194 = math.rsqrt %193 : vector<1x64xf32>
    %195 = vector.broadcast %194 : vector<1x64xf32> to vector<8x64xf32>
    %196 = arith.mulf %191, %195 : vector<8x64xf32>
    %c0_167 = arith.constant 0 : index
    %c0_168 = arith.constant 0 : index
    %197 = vector.load %arg11[%c0_167, %c0_168] : memref<1x64xf32, #tpu.memory_space<vmem>>, vector<1x64xf32>
    %198 = vector.broadcast %197 : vector<1x64xf32> to vector<8x64xf32>
    %199 = arith.mulf %196, %198 : vector<8x64xf32>
    %c0_169 = arith.constant 0 : index
    %c0_170 = arith.constant 0 : index
    %200 = vector.load %arg12[%c0_169, %c0_170] : memref<1x64xf32, #tpu.memory_space<vmem>>, vector<1x64xf32>
    %201 = vector.broadcast %200 : vector<1x64xf32> to vector<8x64xf32>
    %202 = arith.addf %199, %201 : vector<8x64xf32>
    %cst_171 = arith.constant 0.000000e+00 : f32
    %203 = vector.broadcast %cst_171 : f32 to vector<2x128xf32>
    %c0_172 = arith.constant 0 : index
    %c0_173 = arith.constant 0 : index
    %c0_174 = arith.constant 0 : index
    %204 = vector.load %arg13[%c0_172, %c0_173, %c0_174] : memref<9x2x8xf32, #tpu.memory_space<vmem>>, vector<1x2x8xf32>
    %205 = vector.shape_cast %204 : vector<1x2x8xf32> to vector<2x8xf32>
    %cst_175 = arith.constant dense<0.000000e+00> : vector<2x64xf32>
    %206 = tpu.matmul %205, %202, %cst_175 {dimension_numbers = #tpu.dot_dimension_numbers<[1], [0], [0], [1], [0, 0, 1, 1], [], []>} : vector<2x8xf32>, vector<8x64xf32>, vector<2x64xf32> -> vector<2x64xf32>
    %c0_176 = arith.constant 0 : index
    %c0_177 = arith.constant 0 : index
    %c0_178 = arith.constant 0 : index
    %207 = vector.load %arg14[%c0_176, %c0_177, %c0_178] : memref<9x64x128xf32, #tpu.memory_space<vmem>>, vector<1x64x128xf32>
    %208 = vector.shape_cast %207 : vector<1x64x128xf32> to vector<64x128xf32>
    %cst_179 = arith.constant dense<0.000000e+00> : vector<2x128xf32>
    %209 = tpu.matmul %206, %208, %cst_179 {dimension_numbers = #tpu.dot_dimension_numbers<[1], [0], [0], [1], [0, 0, 1, 1], [], []>} : vector<2x64xf32>, vector<64x128xf32>, vector<2x128xf32> -> vector<2x128xf32>
    %210 = arith.addf %203, %209 : vector<2x128xf32>
    %c1_180 = arith.constant 1 : index
    %c0_181 = arith.constant 0 : index
    %c0_182 = arith.constant 0 : index
    %211 = vector.load %arg13[%c1_180, %c0_181, %c0_182] : memref<9x2x8xf32, #tpu.memory_space<vmem>>, vector<1x2x8xf32>
    %212 = vector.shape_cast %211 : vector<1x2x8xf32> to vector<2x8xf32>
    %cst_183 = arith.constant dense<0.000000e+00> : vector<2x64xf32>
    %213 = tpu.matmul %212, %202, %cst_183 {dimension_numbers = #tpu.dot_dimension_numbers<[1], [0], [0], [1], [0, 0, 1, 1], [], []>} : vector<2x8xf32>, vector<8x64xf32>, vector<2x64xf32> -> vector<2x64xf32>
    %c1_184 = arith.constant 1 : index
    %c0_185 = arith.constant 0 : index
    %c0_186 = arith.constant 0 : index
    %214 = vector.load %arg14[%c1_184, %c0_185, %c0_186] : memref<9x64x128xf32, #tpu.memory_space<vmem>>, vector<1x64x128xf32>
    %215 = vector.shape_cast %214 : vector<1x64x128xf32> to vector<64x128xf32>
    %cst_187 = arith.constant dense<0.000000e+00> : vector<2x128xf32>
    %216 = tpu.matmul %213, %215, %cst_187 {dimension_numbers = #tpu.dot_dimension_numbers<[1], [0], [0], [1], [0, 0, 1, 1], [], []>} : vector<2x64xf32>, vector<64x128xf32>, vector<2x128xf32> -> vector<2x128xf32>
    %217 = arith.addf %210, %216 : vector<2x128xf32>
    %c2_188 = arith.constant 2 : index
    %c0_189 = arith.constant 0 : index
    %c0_190 = arith.constant 0 : index
    %218 = vector.load %arg13[%c2_188, %c0_189, %c0_190] : memref<9x2x8xf32, #tpu.memory_space<vmem>>, vector<1x2x8xf32>
    %219 = vector.shape_cast %218 : vector<1x2x8xf32> to vector<2x8xf32>
    %cst_191 = arith.constant dense<0.000000e+00> : vector<2x64xf32>
    %220 = tpu.matmul %219, %202, %cst_191 {dimension_numbers = #tpu.dot_dimension_numbers<[1], [0], [0], [1], [0, 0, 1, 1], [], []>} : vector<2x8xf32>, vector<8x64xf32>, vector<2x64xf32> -> vector<2x64xf32>
    %c2_192 = arith.constant 2 : index
    %c0_193 = arith.constant 0 : index
    %c0_194 = arith.constant 0 : index
    %221 = vector.load %arg14[%c2_192, %c0_193, %c0_194] : memref<9x64x128xf32, #tpu.memory_space<vmem>>, vector<1x64x128xf32>
    %222 = vector.shape_cast %221 : vector<1x64x128xf32> to vector<64x128xf32>
    %cst_195 = arith.constant dense<0.000000e+00> : vector<2x128xf32>
    %223 = tpu.matmul %220, %222, %cst_195 {dimension_numbers = #tpu.dot_dimension_numbers<[1], [0], [0], [1], [0, 0, 1, 1], [], []>} : vector<2x64xf32>, vector<64x128xf32>, vector<2x128xf32> -> vector<2x128xf32>
    %224 = arith.addf %217, %223 : vector<2x128xf32>
    %c3_196 = arith.constant 3 : index
    %c0_197 = arith.constant 0 : index
    %c0_198 = arith.constant 0 : index
    %225 = vector.load %arg13[%c3_196, %c0_197, %c0_198] : memref<9x2x8xf32, #tpu.memory_space<vmem>>, vector<1x2x8xf32>
    %226 = vector.shape_cast %225 : vector<1x2x8xf32> to vector<2x8xf32>
    %cst_199 = arith.constant dense<0.000000e+00> : vector<2x64xf32>
    %227 = tpu.matmul %226, %202, %cst_199 {dimension_numbers = #tpu.dot_dimension_numbers<[1], [0], [0], [1], [0, 0, 1, 1], [], []>} : vector<2x8xf32>, vector<8x64xf32>, vector<2x64xf32> -> vector<2x64xf32>
    %c3_200 = arith.constant 3 : index
    %c0_201 = arith.constant 0 : index
    %c0_202 = arith.constant 0 : index
    %228 = vector.load %arg14[%c3_200, %c0_201, %c0_202] : memref<9x64x128xf32, #tpu.memory_space<vmem>>, vector<1x64x128xf32>
    %229 = vector.shape_cast %228 : vector<1x64x128xf32> to vector<64x128xf32>
    %cst_203 = arith.constant dense<0.000000e+00> : vector<2x128xf32>
    %230 = tpu.matmul %227, %229, %cst_203 {dimension_numbers = #tpu.dot_dimension_numbers<[1], [0], [0], [1], [0, 0, 1, 1], [], []>} : vector<2x64xf32>, vector<64x128xf32>, vector<2x128xf32> -> vector<2x128xf32>
    %231 = arith.addf %224, %230 : vector<2x128xf32>
    %c4_204 = arith.constant 4 : index
    %c0_205 = arith.constant 0 : index
    %c0_206 = arith.constant 0 : index
    %232 = vector.load %arg13[%c4_204, %c0_205, %c0_206] : memref<9x2x8xf32, #tpu.memory_space<vmem>>, vector<1x2x8xf32>
    %233 = vector.shape_cast %232 : vector<1x2x8xf32> to vector<2x8xf32>
    %cst_207 = arith.constant dense<0.000000e+00> : vector<2x64xf32>
    %234 = tpu.matmul %233, %202, %cst_207 {dimension_numbers = #tpu.dot_dimension_numbers<[1], [0], [0], [1], [0, 0, 1, 1], [], []>} : vector<2x8xf32>, vector<8x64xf32>, vector<2x64xf32> -> vector<2x64xf32>
    %c4_208 = arith.constant 4 : index
    %c0_209 = arith.constant 0 : index
    %c0_210 = arith.constant 0 : index
    %235 = vector.load %arg14[%c4_208, %c0_209, %c0_210] : memref<9x64x128xf32, #tpu.memory_space<vmem>>, vector<1x64x128xf32>
    %236 = vector.shape_cast %235 : vector<1x64x128xf32> to vector<64x128xf32>
    %cst_211 = arith.constant dense<0.000000e+00> : vector<2x128xf32>
    %237 = tpu.matmul %234, %236, %cst_211 {dimension_numbers = #tpu.dot_dimension_numbers<[1], [0], [0], [1], [0, 0, 1, 1], [], []>} : vector<2x64xf32>, vector<64x128xf32>, vector<2x128xf32> -> vector<2x128xf32>
    %238 = arith.addf %231, %237 : vector<2x128xf32>
    %c5_212 = arith.constant 5 : index
    %c0_213 = arith.constant 0 : index
    %c0_214 = arith.constant 0 : index
    %239 = vector.load %arg13[%c5_212, %c0_213, %c0_214] : memref<9x2x8xf32, #tpu.memory_space<vmem>>, vector<1x2x8xf32>
    %240 = vector.shape_cast %239 : vector<1x2x8xf32> to vector<2x8xf32>
    %cst_215 = arith.constant dense<0.000000e+00> : vector<2x64xf32>
    %241 = tpu.matmul %240, %202, %cst_215 {dimension_numbers = #tpu.dot_dimension_numbers<[1], [0], [0], [1], [0, 0, 1, 1], [], []>} : vector<2x8xf32>, vector<8x64xf32>, vector<2x64xf32> -> vector<2x64xf32>
    %c5_216 = arith.constant 5 : index
    %c0_217 = arith.constant 0 : index
    %c0_218 = arith.constant 0 : index
    %242 = vector.load %arg14[%c5_216, %c0_217, %c0_218] : memref<9x64x128xf32, #tpu.memory_space<vmem>>, vector<1x64x128xf32>
    %243 = vector.shape_cast %242 : vector<1x64x128xf32> to vector<64x128xf32>
    %cst_219 = arith.constant dense<0.000000e+00> : vector<2x128xf32>
    %244 = tpu.matmul %241, %243, %cst_219 {dimension_numbers = #tpu.dot_dimension_numbers<[1], [0], [0], [1], [0, 0, 1, 1], [], []>} : vector<2x64xf32>, vector<64x128xf32>, vector<2x128xf32> -> vector<2x128xf32>
    %245 = arith.addf %238, %244 : vector<2x128xf32>
    %c6_220 = arith.constant 6 : index
    %c0_221 = arith.constant 0 : index
    %c0_222 = arith.constant 0 : index
    %246 = vector.load %arg13[%c6_220, %c0_221, %c0_222] : memref<9x2x8xf32, #tpu.memory_space<vmem>>, vector<1x2x8xf32>
    %247 = vector.shape_cast %246 : vector<1x2x8xf32> to vector<2x8xf32>
    %cst_223 = arith.constant dense<0.000000e+00> : vector<2x64xf32>
    %248 = tpu.matmul %247, %202, %cst_223 {dimension_numbers = #tpu.dot_dimension_numbers<[1], [0], [0], [1], [0, 0, 1, 1], [], []>} : vector<2x8xf32>, vector<8x64xf32>, vector<2x64xf32> -> vector<2x64xf32>
    %c6_224 = arith.constant 6 : index
    %c0_225 = arith.constant 0 : index
    %c0_226 = arith.constant 0 : index
    %249 = vector.load %arg14[%c6_224, %c0_225, %c0_226] : memref<9x64x128xf32, #tpu.memory_space<vmem>>, vector<1x64x128xf32>
    %250 = vector.shape_cast %249 : vector<1x64x128xf32> to vector<64x128xf32>
    %cst_227 = arith.constant dense<0.000000e+00> : vector<2x128xf32>
    %251 = tpu.matmul %248, %250, %cst_227 {dimension_numbers = #tpu.dot_dimension_numbers<[1], [0], [0], [1], [0, 0, 1, 1], [], []>} : vector<2x64xf32>, vector<64x128xf32>, vector<2x128xf32> -> vector<2x128xf32>
    %252 = arith.addf %245, %251 : vector<2x128xf32>
    %c7_228 = arith.constant 7 : index
    %c0_229 = arith.constant 0 : index
    %c0_230 = arith.constant 0 : index
    %253 = vector.load %arg13[%c7_228, %c0_229, %c0_230] : memref<9x2x8xf32, #tpu.memory_space<vmem>>, vector<1x2x8xf32>
    %254 = vector.shape_cast %253 : vector<1x2x8xf32> to vector<2x8xf32>
    %cst_231 = arith.constant dense<0.000000e+00> : vector<2x64xf32>
    %255 = tpu.matmul %254, %202, %cst_231 {dimension_numbers = #tpu.dot_dimension_numbers<[1], [0], [0], [1], [0, 0, 1, 1], [], []>} : vector<2x8xf32>, vector<8x64xf32>, vector<2x64xf32> -> vector<2x64xf32>
    %c7_232 = arith.constant 7 : index
    %c0_233 = arith.constant 0 : index
    %c0_234 = arith.constant 0 : index
    %256 = vector.load %arg14[%c7_232, %c0_233, %c0_234] : memref<9x64x128xf32, #tpu.memory_space<vmem>>, vector<1x64x128xf32>
    %257 = vector.shape_cast %256 : vector<1x64x128xf32> to vector<64x128xf32>
    %cst_235 = arith.constant dense<0.000000e+00> : vector<2x128xf32>
    %258 = tpu.matmul %255, %257, %cst_235 {dimension_numbers = #tpu.dot_dimension_numbers<[1], [0], [0], [1], [0, 0, 1, 1], [], []>} : vector<2x64xf32>, vector<64x128xf32>, vector<2x128xf32> -> vector<2x128xf32>
    %259 = arith.addf %252, %258 : vector<2x128xf32>
    %c8_236 = arith.constant 8 : index
    %c0_237 = arith.constant 0 : index
    %c0_238 = arith.constant 0 : index
    %260 = vector.load %arg13[%c8_236, %c0_237, %c0_238] : memref<9x2x8xf32, #tpu.memory_space<vmem>>, vector<1x2x8xf32>
    %261 = vector.shape_cast %260 : vector<1x2x8xf32> to vector<2x8xf32>
    %cst_239 = arith.constant dense<0.000000e+00> : vector<2x64xf32>
    %262 = tpu.matmul %261, %202, %cst_239 {dimension_numbers = #tpu.dot_dimension_numbers<[1], [0], [0], [1], [0, 0, 1, 1], [], []>} : vector<2x8xf32>, vector<8x64xf32>, vector<2x64xf32> -> vector<2x64xf32>
    %c8_240 = arith.constant 8 : index
    %c0_241 = arith.constant 0 : index
    %c0_242 = arith.constant 0 : index
    %263 = vector.load %arg14[%c8_240, %c0_241, %c0_242] : memref<9x64x128xf32, #tpu.memory_space<vmem>>, vector<1x64x128xf32>
    %264 = vector.shape_cast %263 : vector<1x64x128xf32> to vector<64x128xf32>
    %cst_243 = arith.constant dense<0.000000e+00> : vector<2x128xf32>
    %265 = tpu.matmul %262, %264, %cst_243 {dimension_numbers = #tpu.dot_dimension_numbers<[1], [0], [0], [1], [0, 0, 1, 1], [], []>} : vector<2x64xf32>, vector<64x128xf32>, vector<2x128xf32> -> vector<2x128xf32>
    %266 = arith.addf %259, %265 : vector<2x128xf32>
    %c0_244 = arith.constant 0 : index
    %c0_245 = arith.constant 0 : index
    %267 = vector.load %arg15[%c0_244, %c0_245] : memref<1x128xf32, #tpu.memory_space<vmem>>, vector<1x128xf32>
    %268 = vector.broadcast %267 : vector<1x128xf32> to vector<2x128xf32>
    %269 = arith.addf %266, %268 : vector<2x128xf32>
    %cst_246 = arith.constant 0.000000e+00 : f32
    %270 = vector.broadcast %cst_246 : f32 to vector<2x128xf32>
    %271 = arith.cmpf ogt, %269, %270 : vector<2x128xf32>
    %cst_247 = arith.constant 2.000000e-01 : f32
    %272 = vector.broadcast %cst_247 : f32 to vector<2x128xf32>
    %273 = arith.mulf %272, %269 : vector<2x128xf32>
    %274 = arith.select %271, %269, %273 : vector<2x128xi1>, vector<2x128xf32>
    %cst_248 = arith.constant dense<0.000000e+00> : vector<128xf32>
    %275 = vector.multi_reduction <add>, %274, %cst_248 [0] : vector<2x128xf32> to vector<128xf32>
    %276 = vector.shape_cast %275 : vector<128xf32> to vector<1x128xf32>
    %cst_249 = arith.constant 2.000000e+00 : f32
    %277 = vector.broadcast %cst_249 : f32 to vector<1x128xf32>
    %278 = arith.divf %276, %277 : vector<1x128xf32>
    %279 = vector.broadcast %278 : vector<1x128xf32> to vector<2x128xf32>
    %280 = arith.subf %274, %279 : vector<2x128xf32>
    %281 = arith.mulf %280, %280 : vector<2x128xf32>
    %cst_250 = arith.constant dense<0.000000e+00> : vector<128xf32>
    %282 = vector.multi_reduction <add>, %281, %cst_250 [0] : vector<2x128xf32> to vector<128xf32>
    %283 = vector.shape_cast %282 : vector<128xf32> to vector<1x128xf32>
    %cst_251 = arith.constant 2.000000e+00 : f32
    %284 = vector.broadcast %cst_251 : f32 to vector<1x128xf32>
    %285 = arith.divf %283, %284 : vector<1x128xf32>
    %286 = vector.broadcast %278 : vector<1x128xf32> to vector<2x128xf32>
    %287 = arith.subf %274, %286 : vector<2x128xf32>
    %cst_252 = arith.constant 8.000000e-01 : f32
    %288 = vector.broadcast %cst_252 : f32 to vector<1x128xf32>
    %289 = arith.addf %285, %288 : vector<1x128xf32>
    %290 = math.rsqrt %289 : vector<1x128xf32>
    %291 = vector.broadcast %290 : vector<1x128xf32> to vector<2x128xf32>
    %292 = arith.mulf %287, %291 : vector<2x128xf32>
    %c0_253 = arith.constant 0 : index
    %c0_254 = arith.constant 0 : index
    %293 = vector.load %arg16[%c0_253, %c0_254] : memref<1x128xf32, #tpu.memory_space<vmem>>, vector<1x128xf32>
    %294 = vector.broadcast %293 : vector<1x128xf32> to vector<2x128xf32>
    %295 = arith.mulf %292, %294 : vector<2x128xf32>
    %c0_255 = arith.constant 0 : index
    %c0_256 = arith.constant 0 : index
    %296 = vector.load %arg17[%c0_255, %c0_256] : memref<1x128xf32, #tpu.memory_space<vmem>>, vector<1x128xf32>
    %297 = vector.broadcast %296 : vector<1x128xf32> to vector<2x128xf32>
    %298 = arith.addf %295, %297 : vector<2x128xf32>
    %c0_257 = arith.constant 0 : index
    %c0_258 = arith.constant 0 : index
    %299 = vector.load %arg18[%c0_257, %c0_258] : memref<128x1xf32, #tpu.memory_space<vmem>>, vector<128x1xf32>
    %cst_259 = arith.constant dense<0.000000e+00> : vector<2x1xf32>
    %300 = tpu.matmul %298, %299, %cst_259 {dimension_numbers = #tpu.dot_dimension_numbers<[1], [0], [0], [1], [0, 0, 1, 1], [], []>} : vector<2x128xf32>, vector<128x1xf32>, vector<2x1xf32> -> vector<2x1xf32>
    %c0_260 = arith.constant 0 : index
    %c0_261 = arith.constant 0 : index
    %301 = vector.load %arg19[%c0_260, %c0_261] : memref<1x1xf32, #tpu.memory_space<vmem>>, vector<1x1xf32>
    %302 = vector.broadcast %301 : vector<1x1xf32> to vector<2x1xf32>
    %303 = arith.addf %300, %302 : vector<2x1xf32>
    %cst_262 = arith.constant 0.000000e+00 : f32
    %304 = vector.broadcast %cst_262 : f32 to vector<2x1xf32>
    %305 = arith.subf %304, %303 : vector<2x1xf32>
    %306 = math.exp %305 : vector<2x1xf32>
    %cst_263 = arith.constant 1.000000e+00 : f32
    %307 = vector.broadcast %cst_263 : f32 to vector<2x1xf32>
    %308 = arith.addf %307, %306 : vector<2x1xf32>
    %cst_264 = arith.constant 1.000000e+00 : f32
    %309 = vector.broadcast %cst_264 : f32 to vector<2x1xf32>
    %310 = arith.divf %309, %308 : vector<2x1xf32>
    %c0_265 = arith.constant 0 : index
    %c0_266 = arith.constant 0 : index
    %311 = vector.load %arg20[%c0_265, %c0_266] : memref<2x1xf32, #tpu.memory_space<vmem>>, vector<2x1xf32>
    tpu.vector_store %arg20[%c0_265, %c0_266], %310 {strides = array<i32>} : memref<2x1xf32, #tpu.memory_space<vmem>>, vector<2x1xf32>,
    return
  }
}

</mosaic_0001>

<bundles_post_ra>
// kernel: discriminator_forward.1
= control target key start
LH: loop header
LB: loop body
LE: loop exit
PB: predicated region body
PF: predicated region fallthrough
CT: control target
= control target key end

     0   :  { %s9000_s0 = inlined_call_operand.vmem [shape: f32[128,9], index: 0, kind: input, shape index: {}]   ;;  %s9001_s1 = inlined_call_operand.vmem [shape: f32[9,16], index: 1, kind: input, shape index: {}]   ;;  %s9002_s2 = inlined_call_operand.vmem [shape: f32[1,16], index: 2, kind: input, shape index: {}]   ;;  %s9003_s3 = inlined_call_operand.vmem [shape: f32[9,32,128], index: 3, kind: input, shape index: {}]   ;;  %s9004_s4 = inlined_call_operand.hbm [shape: f32[9,16,32], index: 4, kind: input, shape index: {}]   ;;  %s9005_s5 = inlined_call_operand.hbm [shape: f32[1,32], index: 5, kind: input, shape index: {}]   ;;  %s9006_s6 = inlined_call_operand.hbm [shape: f32[1,32], index: 6, kind: input, shape index: {}]   ;;  %s9007_s7 = inlined_call_operand.hbm [shape: f32[1,32], index: 7, kind: input, shape index: {}]   ;;  %s9008_s8 = inlined_call_operand.hbm [shape: f32[9,8,32], index: 8, kind: input, shape index: {}]   ;;  %s9009_s9 = inlined_call_operand.hbm [shape: f32[9,32,64], index: 9, kind: input, shape index: {}]   ;;  %s9010_s10 = inlined_call_operand.hbm [shape: f32[1,64], index: 10, kind: input, shape index: {}]   ;;  %s9011_s11 = inlined_call_operand.hbm [shape: f32[1,64], index: 11, kind: input, shape index: {}]   ;;  %s9012_s12 = inlined_call_operand.hbm [shape: f32[1,64], index: 12, kind: input, shape index: {}]   ;;  %s9013_s13 = inlined_call_operand.vmem [shape: f32[9,2,8], index: 13, kind: input, shape index: {}]   ;;  %s9014_s14 = inlined_call_operand.vmem [shape: f32[9,64,128], index: 14, kind: input, shape index: {}]   ;;  %s9015_s15 = inlined_call_operand.hbm [shape: f32[1,128], index: 15, kind: input, shape index: {}]   ;;  %s9016_s16 = inlined_call_operand.hbm [shape: f32[1,128], index: 16, kind: input, shape index: {}]   ;;  %s9017_s17 = inlined_call_operand.vmem [shape: f32[1,128], index: 17, kind: input, shape index: {}]   ;;  %s9018_s18 = inlined_call_operand.vmem [shape: f32[128,1], index: 18, kind: input, shape index: {}]   ;;  %s9019_s19 = inlined_call_operand.<no memory space> [shape: f32[1,1], index: 19, kind: input, shape index: {}]   ;;  %s9020_s20 = inlined_call_operand.vmem [shape: f32[2,1], index: 20, kind: output, shape index: {}]  }
   0x1   :  { %9025 = sst [smem:[#allocation26_spill]] %s9000_s0  ;;  %v25_v0 = vstv %s9019_s19 }
   0x2   :  { %9026 = sst [smem:[#allocation27_spill]] %s9001_s1  ;;  %26 = vst [vmem:[#allocation2] sm:$0x1] %v25_v0 }
   0x3   :  { %9027 = sst [smem:[#allocation28_spill]] %s9002_s2 }
   0x4   :  { %9028 = sst [smem:[#allocation29_spill]] %s9003_s3 }
   0x5   :  { %9029 = sst [smem:[#allocation30_spill]] %s9004_s4 }
   0x6   :  { %27 = vsyncpa [#allocation4], 0 }
   0x7   :  { %28 = vsyncpa [#allocation6], 0 }
   0x8   :  { %29 = vsyncpa [#allocation9], 0 }
   0x9   :  { %30 = vsyncpa [#allocation12], 0 }
   0xa   :  { %31 = vsyncpa [#allocation15], 0 }
   0xb   :  { %32 = vsyncpa [#allocation18], 0  ;;  %s7763_s23 = smov [#allocation5]   ;;  %s7764_s2 = smov [#allocation8]  }
   0xc   :  { %s59_s24 = sshll.u32 %s7763_s23, 4  ;;  %s79_s25 = sshll.u32 %s7764_s2, 4  ;;  %s60_s24 = int_to_ptr.vmem [resolvable:$true] %s59_s24  ;;  %s80_s25 = int_to_ptr.vmem [resolvable:$true] %s79_s25 }
   0xd   :  { %s7509_s27 = scalar_lea.hbm %s9005_s5, 16 }
   0xe   :  { %p7510_p0 = scmp.ne.s32.totalorder %s9005_s5, %s7509_s27  ;;  %p7513_p1 = scmp.lt.u32.totalorder %s7509_s27, %s9005_s5 }
  0x10   :  { %p7515_p2 = pnand %p7513_p1, %p7510_p0 }
  0x12   :  { %7518 = shalt.err (!%p7515_p2)
}
  0x13   :  { %s7519_s30 = scalar_lea.vmem %s60_s24, 16  ;;  %s7523_s0 = scalar_lea.vmem %s60_s24, 32 }
  0x14   :  { %p7520_p3 = scmp.ne.s32.totalorder %s60_s24, %s7519_s30  ;;  %p7524_p4 = scmp.lt.s32.totalorder %s60_s24, %s60_s24 }
  0x15   :  { %p7525_p5 = scmp.lt.s32.totalorder %s7523_s0, %s7519_s30 }
  0x17   :  { %p7526_p6 = por %p7525_p5, %p7524_p4 }
  0x19   :  { %p7527_p7 = pnand %p7526_p6, %p7520_p3 }
  0x1b   :  { %7530 = shalt.err (!%p7527_p7)
}
  0x1c   :  { %62 = dma.hbm_to_vmem [thread:$0]  %s9005_s5, 16, %s60_s24, [#allocation6]  }
  0x1d   :  { %s7531_s2 = scalar_lea.hbm %s9007_s7, 16 }
  0x1e   :  { %p7532_p8 = scmp.ne.s32.totalorder %s9007_s7, %s7531_s2  ;;  %p7535_p9 = scmp.lt.u32.totalorder %s7531_s2, %s9007_s7 }
  0x20   :  { %p7537_p10 = pnand %p7535_p9, %p7532_p8 }
  0x22   :  { %7540 = shalt.err (!%p7537_p10)
}
  0x23   :  { %s7541_s4 = scalar_lea.vmem %s80_s25, 16  ;;  %s7545_s19 = scalar_lea.vmem %s80_s25, 32 }
  0x24   :  { %p7542_p11 = scmp.ne.s32.totalorder %s80_s25, %s7541_s4  ;;  %p7546_p12 = scmp.lt.s32.totalorder %s80_s25, %s80_s25 }
  0x25   :  { %p7547_p13 = scmp.lt.s32.totalorder %s7545_s19, %s7541_s4 }
  0x27   :  { %p7548_p0 = por %p7547_p13, %p7546_p12 }
  0x29   :  { %p7549_p1 = pnand %p7548_p0, %p7542_p11 }
  0x2b   :  { %7552 = shalt.err (!%p7549_p1)
}
  0x2c   :  { %82 = dma.hbm_to_vmem [thread:$0]  %s9007_s7, 16, %s80_s25, [#allocation9]  }
  0x2d   :  { %s7765_s29 = smov [#allocation11]   ;;  %s7766_s0 = smov [#allocation14]  }
  0x2e   :  { %s100_s30 = sshll.u32 %s7765_s29, 4  ;;  %s123_s21 = sshll.u32 %s7766_s0, 4  ;;  %s101_s30 = int_to_ptr.vmem [resolvable:$true] %s100_s30  ;;  %s7912_s21 = int_to_ptr.vmem [resolvable:$true] %s123_s21 }
  0x2f   :  { %s7553_s23 = scalar_lea.hbm %s9009_s9, 4608 }
  0x30   :  { %p7554_p2 = scmp.ne.s32.totalorder %s9009_s9, %s7553_s23  ;;  %p7557_p3 = scmp.lt.u32.totalorder %s7553_s23, %s9009_s9 }
  0x32   :  { %p7559_p4 = pnand %p7557_p3, %p7554_p2 }
  0x34   :  { %7562 = shalt.err (!%p7559_p4)
}
  0x35   :  { %s7563_s7 = scalar_lea.vmem %s101_s30, 4608  ;;  %p7568_p6 = scmp.lt.s32.totalorder %s101_s30, %s101_s30 }
  0x36   :  { %p7564_p5 = scmp.ne.s32.totalorder %s101_s30, %s7563_s7  ;;  %p7569_p7 = scmp.lt.s32.totalorder %s7563_s7, %s7563_s7 }
  0x38   :  { %p7570_p8 = por %p7569_p7, %p7568_p6 }
  0x3a   :  { %p7571_p9 = pnand %p7570_p8, %p7564_p5 }
  0x3c   :  { %7574 = shalt.err (!%p7571_p9)
}
  0x3d   :  { %s7767_s25 = smov 128   ;;  %s7768_s28 = smov 8  }
  0x3e   :  { %106 = dma.hbm_to_vmem [thread:$0]  %s9009_s9, 4608, %s101_s30, [#allocation12], %s7767_s25, %s7767_s25, %s7768_s28  }
  0x3f   :  { %s7575_s29 = scalar_lea.hbm %s9011_s11, 16 }
  0x40   :  { %p7576_p10 = scmp.ne.s32.totalorder %s9011_s11, %s7575_s29  ;;  %p7579_p11 = scmp.lt.u32.totalorder %s7575_s29, %s9011_s11 }
  0x42   :  { %p7581_p12 = pnand %p7579_p11, %p7576_p10 }
  0x44   :  { %7584 = shalt.err (!%p7581_p12)
}
  0x45   :  { %s7585_s2 = scalar_lea.vmem %s7912_s21, 16  ;;  %s7589_s9 = scalar_lea.vmem %s7912_s21, 32 }
  0x46   :  { %p7586_p13 = scmp.ne.s32.totalorder %s7912_s21, %s7585_s2  ;;  %p7590_p0 = scmp.lt.s32.totalorder %s7912_s21, %s7912_s21 }
  0x47   :  { %p7591_p1 = scmp.lt.s32.totalorder %s7589_s9, %s7585_s2 }
  0x49   :  { %p7592_p2 = por %p7591_p1, %p7590_p0 }
  0x4b   :  { %p7593_p3 = pnand %p7592_p2, %p7586_p13 }
  0x4d   :  { %7596 = shalt.err (!%p7593_p3)
}
  0x4e   :  { %126 = dma.hbm_to_vmem [thread:$0]  %s9011_s11, 16, %s7912_s21, [#allocation15]  }
  0x4f   :  { %s7769_s26 = smov [#allocation17]   ;;  %s7770_s7 = smov [#allocation3]  }
  0x50   :  { %s147_s27 = sshll.u32 %s7769_s26, 4  ;;  %s46_s4 = sshll.u32 %s7770_s7, 4  ;;  %s148_s27 = int_to_ptr.vmem [resolvable:$true] %s147_s27  ;;  %s7947_s4 = int_to_ptr.vmem [resolvable:$true] %s46_s4 }
  0x51   :  { %s7597_s24 = scalar_lea.hbm %s9015_s15, 16 }
  0x52   :  { %p7598_p4 = scmp.ne.s32.totalorder %s9015_s15, %s7597_s24  ;;  %p7601_p5 = scmp.lt.u32.totalorder %s7597_s24, %s9015_s15 }
  0x54   :  { %p7603_p6 = pnand %p7601_p5, %p7598_p4 }
  0x56   :  { %7606 = shalt.err (!%p7603_p6)
}
  0x57   :  { %s7607_s11 = scalar_lea.vmem %s148_s27, 16  ;;  %s7611_s21 = scalar_lea.vmem %s148_s27, 32 }
  0x58   :  { %p7608_p7 = scmp.ne.s32.totalorder %s148_s27, %s7607_s11  ;;  %p7612_p8 = scmp.lt.s32.totalorder %s148_s27, %s148_s27 }
  0x59   :  { %p7613_p9 = scmp.lt.s32.totalorder %s7611_s21, %s7607_s11 }
  0x5b   :  { %p7614_p10 = por %p7613_p9, %p7612_p8 }
  0x5d   :  { %p7615_p11 = pnand %p7614_p10, %p7608_p7 }
  0x5f   :  { %7618 = shalt.err (!%p7615_p11)
}
  0x60   :  { %150 = dma.hbm_to_vmem [thread:$0]  %s9015_s15, 16, %s148_s27, [#allocation18]  }
  0x61   :  { %s9030_s3 = sld [smem:[#allocation30_spill]] }
  0x67   :  { %s7619_s26 = scalar_lea.hbm %s9030_s3, 2304 }
  0x68   :  { %p7620_p12 = scmp.ne.s32.totalorder %s9030_s3, %s7619_s26  ;;  %p7623_p13 = scmp.lt.u32.totalorder %s7619_s26, %s9030_s3 }
  0x6a   :  { %p7625_p0 = pnand %p7623_p13, %p7620_p12 }
  0x6c   :  { %7628 = shalt.err (!%p7625_p0)
}
  0x6d   :  { %s7629_s29 = scalar_lea.vmem %s7947_s4, 2304  ;;  %p7634_p2 = scmp.lt.s32.totalorder %s7947_s4, %s7947_s4 }
  0x6e   :  { %p7630_p1 = scmp.ne.s32.totalorder %s7947_s4, %s7629_s29  ;;  %p7635_p3 = scmp.lt.s32.totalorder %s7629_s29, %s7629_s29 }
  0x70   :  { %p7636_p4 = por %p7635_p3, %p7634_p2 }
  0x72   :  { %p7637_p5 = pnand %p7636_p4, %p7630_p1 }
  0x74   :  { %7640 = shalt.err (!%p7637_p5)
}
  0x75   :  { %52 = dma.hbm_to_vmem [thread:$0]  %s9030_s3, 2304, %s7947_s4, [#allocation4], %s7767_s25, %s7767_s25, %s7768_s28  }
  0x76   :  { %s7771_s0 = smov [#allocation7]   ;;  %s7772_s22 = smov [#allocation10]  }
  0x77   :  { %s69_s1 = sshll.u32 %s7771_s0, 4  ;;  %s88_s11 = sshll.u32 %s7772_s22, 4  ;;  %s70_s1 = int_to_ptr.vmem [resolvable:$true] %s69_s1  ;;  %s7981_s11 = int_to_ptr.vmem [resolvable:$true] %s88_s11 }
  0x78   :  { %s7641_s2 = scalar_lea.hbm %s9006_s6, 16 }
  0x79   :  { %p7642_p6 = scmp.ne.s32.totalorder %s9006_s6, %s7641_s2  ;;  %p7645_p7 = scmp.lt.u32.totalorder %s7641_s2, %s9006_s6 }
  0x7b   :  { %p7647_p8 = pnand %p7645_p7, %p7642_p6 }
  0x7d   :  { %7650 = shalt.err (!%p7647_p8)
}
  0x7e   :  { %s7651_s4 = scalar_lea.vmem %s70_s1, 16  ;;  %s7655_s3 = scalar_lea.vmem %s70_s1, 32 }
  0x7f   :  { %p7652_p9 = scmp.ne.s32.totalorder %s70_s1, %s7651_s4  ;;  %p7656_p10 = scmp.lt.s32.totalorder %s70_s1, %s70_s1 }
  0x80   :  { %p7657_p11 = scmp.lt.s32.totalorder %s7655_s3, %s7651_s4 }
  0x82   :  { %p7658_p12 = por %p7657_p11, %p7656_p10 }
  0x84   :  { %p7659_p13 = pnand %p7658_p12, %p7652_p9 }
  0x86   :  { %7662 = shalt.err (!%p7659_p13)
}
  0x87   :  { %72 = dma.hbm_to_vmem [thread:$0]  %s9006_s6, 16, %s70_s1, [#allocation6]  }
  0x88   :  { %s7663_s15 = scalar_lea.hbm %s9008_s8, 1152 }
  0x89   :  { %p7664_p0 = scmp.ne.s32.totalorder %s9008_s8, %s7663_s15  ;;  %p7667_p1 = scmp.lt.u32.totalorder %s7663_s15, %s9008_s8 }
  0x8b   :  { %p7669_p2 = pnand %p7667_p1, %p7664_p0 }
  0x8d   :  { %7672 = shalt.err (!%p7669_p2)
}
  0x8e   :  { %s7673_s23 = scalar_lea.vmem %s7981_s11, 1152  ;;  %p7678_p4 = scmp.lt.s32.totalorder %s7981_s11, %s7981_s11 }
  0x8f   :  { %p7674_p3 = scmp.ne.s32.totalorder %s7981_s11, %s7673_s23  ;;  %p7679_p5 = scmp.lt.s32.totalorder %s7673_s23, %s7673_s23 }
  0x91   :  { %p7680_p6 = por %p7679_p5, %p7678_p4 }
  0x93   :  { %p7681_p7 = pnand %p7680_p6, %p7674_p3 }
  0x95   :  { %7684 = shalt.err (!%p7681_p7)
}
  0x96   :  { %94 = dma.hbm_to_vmem [thread:$0]  %s9008_s8, 1152, %s7981_s11, [#allocation9], %s7767_s25, %s7767_s25, %s7768_s28  }
  0x97   :  { %s7773_s2 = smov [#allocation13]   ;;  %s7774_s30 = smov [#allocation16]  }
  0x98   :  { %s113_s9 = sshll.u32 %s7773_s2, 4  ;;  %s133_s26 = sshll.u32 %s7774_s30, 4  ;;  %s114_s9 = int_to_ptr.vmem [resolvable:$true] %s113_s9  ;;  %s134_s26 = int_to_ptr.vmem [resolvable:$true] %s133_s26 }
  0x99   :  { %s7685_s3 = scalar_lea.hbm %s9010_s10, 16 }
  0x9a   :  { %p7686_p8 = scmp.ne.s32.totalorder %s9010_s10, %s7685_s3  ;;  %p7689_p9 = scmp.lt.u32.totalorder %s7685_s3, %s9010_s10 }
  0x9c   :  { %p7691_p10 = pnand %p7689_p9, %p7686_p8 }
  0x9e   :  { %7694 = shalt.err (!%p7691_p10)
}
  0x9f   :  { %s7695_s8 = scalar_lea.vmem %s114_s9, 16  ;;  %s7699_s25 = scalar_lea.vmem %s114_s9, 32 }
  0xa0   :  { %p7696_p11 = scmp.ne.s32.totalorder %s114_s9, %s7695_s8  ;;  %p7700_p12 = scmp.lt.s32.totalorder %s114_s9, %s114_s9 }
  0xa1   :  { %p7701_p13 = scmp.lt.s32.totalorder %s7699_s25, %s7695_s8 }
  0xa3   :  { %p7702_p0 = por %p7701_p13, %p7700_p12 }
  0xa5   :  { %p7703_p1 = pnand %p7702_p0, %p7696_p11 }
  0xa7   :  { %7706 = shalt.err (!%p7703_p1)
}
  0xa8   :  { %116 = dma.hbm_to_vmem [thread:$0]  %s9010_s10, 16, %s114_s9, [#allocation12]  }
  0xa9   :  { %s7707_s0 = scalar_lea.hbm %s9012_s12, 16 }
  0xaa   :  { %p7708_p2 = scmp.ne.s32.totalorder %s9012_s12, %s7707_s0  ;;  %p7711_p3 = scmp.lt.u32.totalorder %s7707_s0, %s9012_s12 }
  0xac   :  { %p7713_p4 = pnand %p7711_p3, %p7708_p2 }
  0xae   :  { %7716 = shalt.err (!%p7713_p4)
}
  0xaf   :  { %s7717_s1 = scalar_lea.vmem %s134_s26, 16  ;;  %s7721_s2 = scalar_lea.vmem %s134_s26, 32 }
  0xb0   :  { %p7718_p5 = scmp.ne.s32.totalorder %s134_s26, %s7717_s1  ;;  %p7722_p6 = scmp.lt.s32.totalorder %s134_s26, %s134_s26 }
  0xb1   :  { %p7723_p7 = scmp.lt.s32.totalorder %s7721_s2, %s7717_s1 }
  0xb3   :  { %p7724_p8 = por %p7723_p7, %p7722_p6 }
  0xb5   :  { %p7725_p9 = pnand %p7724_p8, %p7718_p5 }
  0xb7   :  { %7728 = shalt.err (!%p7725_p9)
}
  0xb8   :  { %136 = dma.hbm_to_vmem [thread:$0]  %s9012_s12, 16, %s134_s26, [#allocation15]  }
  0xb9   :  { %s7775_s30 = smov [#allocation19]   ;;  %s7729_s19 = scalar_lea.hbm %s9016_s16, 16 }
  0xba   :  { %s157_s7 = sshll.u32 %s7775_s30, 4  ;;  %p7730_p10 = scmp.ne.s32.totalorder %s9016_s16, %s7729_s19  ;;  %s158_s7 = int_to_ptr.vmem [resolvable:$true] %s157_s7 }
  0xbb   :  { %p7733_p11 = scmp.lt.u32.totalorder %s7729_s19, %s9016_s16 }
  0xbd   :  { %p7735_p12 = pnand %p7733_p11, %p7730_p10 }
  0xbf   :  { %7738 = shalt.err (!%p7735_p12)
}
  0xc0   :  { %s7739_s25 = scalar_lea.vmem %s158_s7, 16  ;;  %s7743_s12 = scalar_lea.vmem %s158_s7, 32 }
  0xc1   :  { %p7740_p13 = scmp.ne.s32.totalorder %s158_s7, %s7739_s25  ;;  %p7744_p0 = scmp.lt.s32.totalorder %s158_s7, %s158_s7 }
  0xc2   :  { %p7745_p1 = scmp.lt.s32.totalorder %s7743_s12, %s7739_s25 }
  0xc4   :  { %p7746_p2 = por %p7745_p1, %p7744_p0 }
  0xc6   :  { %p7747_p3 = pnand %p7746_p2, %p7740_p13 }
  0xc8   :  { %7750 = shalt.err (!%p7747_p3)
}
  0xc9   :  { %160 = dma.hbm_to_vmem [thread:$0]  %s9016_s16, 16, %s158_s7, [#allocation18]  }
  0xca   :  { %7751 = dma.done.wait [#allocation4], 2304  }
  0xcb   :  { %7752 = vsyncadd [#allocation4], 4294964992 }
  0xcc   :  { %7753 = dma.done.wait [#allocation6], 32  }
  0xcd   :  { %7754 = vsyncadd [#allocation6], 4294967264 }
  0xce   :  { %7755 = dma.done.wait [#allocation9], 1168  }
  0xcf   :  { %7756 = vsyncadd [#allocation9], 4294966128 }
  0xd0   :  { %7757 = dma.done.wait [#allocation12], 4624  }
  0xd1   :  { %7758 = vsyncadd [#allocation12], 4294962672 }
  0xd2   :  { %7759 = dma.done.wait [#allocation15], 32  }
  0xd3   :  { %7760 = vsyncadd [#allocation15], 4294967264 }
  0xd4   :  { %7761 = dma.done.wait [#allocation18], 32  }
  0xd5   :  { %7762 = vsyncadd [#allocation18], 4294967264  ;;  %vm274_vm0 = vcmask 1040384   ;;  %vm225_vm1 = vcmask 72704   ;;  %vm7776_vm2 = vmmov 1   ;;  %s9031_s27 = sld [smem:[#allocation27_spill]] }
  0xd6   :  { %vm6881_vm3 = vmpackc.low %vm274_vm0, %vm7776_vm2  ;;  %s9032_s23 = sld [smem:[#allocation26_spill]]  ;;  %s9033_s4 = sld [smem:[#allocation29_spill]] }
  0xd7   :  { %s9034_s29 = sld [smem:[#allocation28_spill]] }
  0xdb   :  { %v216_v1 = vld [vmem:[%s9031_s27] sm:$0xff]  ;;  %v217_v2 = vld [vmem:[%s9031_s27 + $0x8] sm:$0x1] }
  0xdc   :  { %v200_v3 = vld [vmem:[%s9032_s23] sm:$0xff]  ;;  %v6880_v4 = vpack.c.bf16 %v217_v2, %v216_v1  ;;  %v201_v5 = vld [vmem:[%s9032_s23 + $0x8] sm:$0xff]  ;;  %v202_v6 = vld [vmem:[%s9032_s23 + $0x10] sm:$0xff] }
  0xdd   :  { %5975 = vmatprep.mubr.msk.f32.mxu0 %vm225_vm1, %v200_v3  ;;  %v203_v7 = vld [vmem:[%s9032_s23 + $0x18] sm:$0xff]  ;;  %v204_v8 = vld [vmem:[%s9032_s23 + $0x20] sm:$0xff]  ;;  %v205_v9 = vld [vmem:[%s9032_s23 + $0x28] sm:$0xff] }
  0xde   :  { %6882 = vmatprep.subr.msk.bf16.mxu0 %vm6881_vm3, %v6880_v4  ;;  %v206_v10 = vld [vmem:[%s9032_s23 + $0x30] sm:$0xff]  ;;  %v207_v11 = vld [vmem:[%s9032_s23 + $0x38] sm:$0xff]  ;;  %v208_v12 = vld [vmem:[%s9032_s23 + $0x40] sm:$0xff] }
  0xdf   :  { %6885 = vmatpush3.bf16.msk.msra.mxu0 %vm6881_vm3, %v6880_v4  ;;  %v209_v13 = vld [vmem:[%s9032_s23 + $0x48] sm:$0xff]  ;;  %v210_v14 = vld [vmem:[%s9032_s23 + $0x50] sm:$0xff]  ;;  %v211_v15 = vld [vmem:[%s9032_s23 + $0x58] sm:$0xff] }
  0xe0   :  { %v212_v16 = vld [vmem:[%s9032_s23 + $0x60] sm:$0xff]  ;;  %v213_v17 = vld [vmem:[%s9032_s23 + $0x68] sm:$0xff]  ;;  %v214_v18 = vld [vmem:[%s9032_s23 + $0x70] sm:$0xff] }
  0xe1   :  { %v215_v19 = vld [vmem:[%s9032_s23 + $0x78] sm:$0xff]  ;;  %v471_v20 = vld [vmem:[%s9033_s4] sm:$0xff] }
  0xe2   :  { %5976 = vmatmul.mubr.msk.f32.vlgmr.msra.gmra.mrb[0].mxu0 %vm225_vm1, %v201_v5  ;;  %v5327_v21 = vld [vmem:[%s9033_s4 + $0x20] sm:$0xff]  ;;  %6031 = vmatprep.mubr.f32.mxu1 %v471_v20 }
  0xe3   :  { %5978 = vmatprep.mubr.msk.f32.mxu0 %vm225_vm1, %v202_v6  ;;  %v8130_v22 = vld [vmem:[%s9034_s29] ss:$0 sm:$0xff] }
  0xe6   :  { %5979 = vmatmul.mubr.msk.f32.gmra.mrb[2].mxu0 %vm225_vm1, %v203_v7 }
  0xe7   :  { %5981 = vmatprep.mubr.msk.f32.mxu0 %vm225_vm1, %v204_v8 }
  0xea   :  { %5982 = vmatmul.mubr.msk.f32.gmra.mrb[4].mxu0 %vm225_vm1, %v205_v9 }
  0xeb   :  { %5984 = vmatprep.mubr.msk.f32.mxu0 %vm225_vm1, %v206_v10 }
  0xee   :  { %5985 = vmatmul.mubr.msk.f32.gmra.mrb[6].mxu0 %vm225_vm1, %v207_v11 }
  0xef   :  { %5987 = vmatprep.mubr.msk.f32.mxu0 %vm225_vm1, %v208_v12 }
  0xf2   :  { %5988 = vmatmul.mubr.msk.f32.gmra.mrb[8].mxu0 %vm225_vm1, %v209_v13 }
  0xf3   :  { %5990 = vmatprep.mubr.msk.f32.mxu0 %vm225_vm1, %v210_v14 }
  0xf6   :  { %5991 = vmatmul.mubr.msk.f32.gmra.mrb[10].mxu0 %vm225_vm1, %v211_v15 }
  0xf7   :  { %5993 = vmatprep.mubr.msk.f32.mxu0 %vm225_vm1, %v212_v16 }
  0xfa   :  { %5994 = vmatmul.mubr.msk.f32.gmra.mrb[12].mxu0 %vm225_vm1, %v213_v17 }
  0xfb   :  { %5996 = vmatprep.mubr.msk.f32.mxu0 %vm225_vm1, %v214_v18 }
  0xfe   :  { %5997 = vmatmul.mubr.msk.f32.gmra.mrb[14].mxu0 %vm225_vm1, %v215_v19 }
  0xff   :  { %6069 = vmatprep.mubr.f32.mxu0 %v5327_v21 }
 0x1b5   :  { %v5977_v23 = vpop.f32.mrb[0].mxu0 }
 0x1b6   :  { %v350_v24 = vadd.f32 %v5977_v23, %v8130_v22  ;;  %v344_v25 = vpop.f32.mrb[1].mxu0 }
 0x1b7   :  { %v345_v26 = vadd.f32 %v8130_v22, %v344_v25 }
 0x1b8   :  { %vm424_vm4 = vcmp.gt.f32.partialorder %v350_v24, 0.0  ;;  %v440_v27 = vmul.f32 0.2, %v350_v24 }
 0x1b9   :  { %vm423_vm5 = vcmp.gt.f32.partialorder %v345_v26, 0.0  ;;  %v439_v28 = vmul.f32 0.2, %v345_v26  ;;  %v5980_v29 = vpop.f32.mrb[2].mxu0 }
 0x1ba   :  { %v456_v30 = vsel %vm424_vm4, %v350_v24, %v440_v27  ;;  %v360_v31 = vadd.f32 %v5980_v29, %v8130_v22  ;;  %v354_v32 = vpop.f32.mrb[3].mxu0  ;;  %vm655_vm4 = vcmask 130048  }
 0x1bb   :  { %v455_v33 = vsel %vm423_vm5, %v345_v26, %v439_v28  ;;  %v355_v34 = vadd.f32 %v8130_v22, %v354_v32  ;;  %v653_v28 = vld [vmem:[#allocation3 + $0x10] sm:$0xff]  ;;  %v561_v32 = vld [vmem:[#allocation3 + $0x8] sm:$0xff]  ;;  %vm7778_vm5 = vmmov 0  }
 0x1bc   :  { %v8136_v35 = vpack.c.bf16 %v456_v30, %v455_v33  ;;  %vm426_vm6 = vcmp.gt.f32.partialorder %v360_v31, 0.0  ;;  %v442_v36 = vmul.f32 0.2, %v360_v31  ;;  %v654_v30 = vld [vmem:[#allocation3 + $0x18] sm:$0xff] }
 0x1bd   :  { %vm425_vm7 = vcmp.gt.f32.partialorder %v355_v34, 0.0  ;;  %v441_v37 = vmul.f32 0.2, %v355_v34  ;;  %v5983_v38 = vpop.f32.mrb[4].mxu0 }
 0x1be   :  { %v458_v39 = vsel %vm426_vm6, %v360_v31, %v442_v36  ;;  %v370_v40 = vadd.f32 %v5983_v38, %v8130_v22  ;;  %v364_v41 = vpop.f32.mrb[5].mxu0  ;;  %6887 = vmatprep.subr.bf16.mxu1 %v8136_v35  ;;  %6919 = vmatprep.subr.bf16.mxu0 %v8136_v35  ;;  %v560_v31 = vld [vmem:[#allocation3] sm:$0xff]  ;;  %v6950_v36 = vpack.c.bf16 %v654_v30, %v653_v28  ;;  %v1330_v28 = vld [vmem:[#allocation3 + $0x48] sm:$0xff] }
 0x1bf   :  { %v457_v42 = vsel %vm425_vm7, %v355_v34, %v441_v37  ;;  %v365_v43 = vadd.f32 %v8130_v22, %v364_v41  ;;  %6889 = vmatpush3.bf16.msra.mxu1 %v8136_v35  ;;  %6921 = vmatpush3.bf16.msra.mxu0 %v8136_v35  ;;  %v6954_v37 = vpack.c.bf16 %v561_v32, %v560_v31  ;;  %v472_v38 = vld [vmem:[%s9033_s4 + $0x8] sm:$0xff]  ;;  %v473_v41 = vld [vmem:[%s9033_s4 + $0x10] sm:$0xff]  ;;  %vm2231_vm7 = vcmask 261120  }
 0x1c0   :  { %v8144_v44 = vpack.c.bf16 %v458_v39, %v457_v42  ;;  %vm428_vm8 = vcmp.gt.f32.partialorder %v370_v40, 0.0  ;;  %v444_v45 = vmul.f32 0.2, %v370_v40  ;;  %v5328_v39 = vld [vmem:[%s9033_s4 + $0x28] sm:$0xff]  ;;  %v5330_v42 = vld [vmem:[%s9033_s4 + $0x38] sm:$0xff] }
 0x1c1   :  { %vm427_vm9 = vcmp.gt.f32.partialorder %v365_v43, 0.0  ;;  %v443_v46 = vmul.f32 0.2, %v365_v43  ;;  %v5986_v47 = vpop.f32.mrb[6].mxu0 }
 0x1c2   :  { %v460_v48 = vsel %vm428_vm8, %v370_v40, %v444_v45  ;;  %v380_v49 = vadd.f32 %v5986_v47, %v8130_v22  ;;  %v374_v50 = vpop.f32.mrb[7].mxu0  ;;  %6891 = vmatprep.subr.bf16.mxu1 %v8144_v44  ;;  %6923 = vmatprep.subr.bf16.mxu0 %v8144_v44  ;;  %v5329_v40 = vld [vmem:[%s9033_s4 + $0x30] sm:$0xff]  ;;  %v941_v45 = vld [vmem:[#allocation3 + $0x20] sm:$0xff] }
 0x1c3   :  { %v459_v51 = vsel %vm427_vm9, %v365_v43, %v443_v46  ;;  %v375_v52 = vadd.f32 %v8130_v22, %v374_v50  ;;  %6893 = vmatpush3.bf16.msra.mxu1 %v8144_v44  ;;  %6925 = vmatpush3.bf16.msra.mxu0 %v8144_v44  ;;  %v474_v43 = vld [vmem:[%s9033_s4 + $0x18] sm:$0xff]  ;;  %v942_v46 = vld [vmem:[#allocation3 + $0x28] sm:$0xff] }
 0x1c4   :  { %v8152_v53 = vpack.c.bf16 %v460_v48, %v459_v51  ;;  %vm430_vm10 = vcmp.gt.f32.partialorder %v380_v49, 0.0  ;;  %v446_v54 = vmul.f32 0.2, %v380_v49  ;;  %v6990_v47 = vpack.c.bf16 %v942_v46, %v941_v45 }
 0x1c5   :  { %vm429_vm11 = vcmp.gt.f32.partialorder %v375_v52, 0.0  ;;  %v445_v55 = vmul.f32 0.2, %v375_v52  ;;  %v5989_v56 = vpop.f32.mrb[8].mxu0 }
 0x1c6   :  { %v462_v57 = vsel %vm430_vm10, %v380_v49, %v446_v54  ;;  %v390_v58 = vadd.f32 %v5989_v56, %v8130_v22  ;;  %v384_v59 = vpop.f32.mrb[9].mxu0  ;;  %6895 = vmatprep.subr.bf16.mxu1 %v8152_v53  ;;  %6927 = vmatprep.subr.bf16.mxu0 %v8152_v53  ;;  %v5340_v56 = vld [vmem:[%s9033_s4 + $0x48] sm:$0xff] }
 0x1c7   :  { %v461_v60 = vsel %vm429_vm11, %v375_v52, %v445_v55  ;;  %v385_v61 = vadd.f32 %v8130_v22, %v384_v59  ;;  %6897 = vmatpush3.bf16.msra.mxu1 %v8152_v53  ;;  %6929 = vmatpush3.bf16.msra.mxu0 %v8152_v53  ;;  %v5339_v55 = vld [vmem:[%s9033_s4 + $0x40] sm:$0xff] }
 0x1c8   :  { %v8160_v62 = vpack.c.bf16 %v462_v57, %v461_v60  ;;  %vm432_vm12 = vcmp.gt.f32.partialorder %v390_v58, 0.0  ;;  %v448_v63 = vmul.f32 0.2, %v390_v58  ;;  %v5341_v57 = vld [vmem:[%s9033_s4 + $0x50] sm:$0xff]  ;;  %v5355_v59 = vld [vmem:[%s9033_s4 + $0x80] sm:$0xff]  ;;  %v5356_v60 = vld [vmem:[%s9033_s4 + $0x88] sm:$0xff] }
 0x1c9   :  { %vm431_vm13 = vcmp.gt.f32.partialorder %v385_v61, 0.0  ;;  %v447_v0 = vmul.f32 0.2, %v385_v61  ;;  %v5992_v1 = vpop.f32.mrb[10].mxu0 }
 0x1ca   :  { %v464_v2 = vsel %vm432_vm12, %v390_v58, %v448_v63  ;;  %v400_v3 = vadd.f32 %v5992_v1, %v8130_v22  ;;  %v394_v4 = vpop.f32.mrb[11].mxu0  ;;  %6899 = vmatprep.subr.bf16.mxu1 %v8160_v62  ;;  %6931 = vmatprep.subr.bf16.mxu0 %v8160_v62  ;;  %v5342_v58 = vld [vmem:[%s9033_s4 + $0x58] sm:$0xff]  ;;  %vm3690_vm12 = vcmask 523264  }
 0x1cb   :  { %v463_v5 = vsel %vm431_vm13, %v385_v61, %v447_v0  ;;  %v395_v6 = vadd.f32 %v8130_v22, %v394_v4  ;;  %6901 = vmatpush3.bf16.msra.mxu1 %v8160_v62  ;;  %6933 = vmatpush3.bf16.msra.mxu0 %v8160_v62  ;;  %v5357_v61 = vld [vmem:[%s9033_s4 + $0x90] sm:$0xff]  ;;  %v5358_v63 = vld [vmem:[%s9033_s4 + $0x98] sm:$0xff]  ;;  %v5363_v0 = vld [vmem:[%s9033_s4 + $0xa0] sm:$0xff]  ;;  %vm3730_vm13 = vcmask 64512  }
 0x1cc   :  { %v8168_v7 = vpack.c.bf16 %v464_v2, %v463_v5  ;;  %vm434_vm14 = vcmp.gt.f32.partialorder %v400_v3, 0.0  ;;  %v450_v8 = vmul.f32 0.2, %v400_v3  ;;  %v5365_v4 = vld [vmem:[%s9033_s4 + $0xb0] sm:$0xff]  ;;  %v5366_v5 = vld [vmem:[%s9033_s4 + $0xb8] sm:$0xff] }
 0x1cd   :  { %vm433_vm15 = vcmp.gt.f32.partialorder %v395_v6, 0.0  ;;  %v449_v9 = vmul.f32 0.2, %v395_v6  ;;  %v5995_v10 = vpop.f32.mrb[12].mxu0 }
 0x1ce   :  { %v466_v11 = vsel %vm434_vm14, %v400_v3, %v450_v8  ;;  %v410_v12 = vadd.f32 %v5995_v10, %v8130_v22  ;;  %v404_v13 = vpop.f32.mrb[13].mxu0  ;;  %6903 = vmatprep.subr.bf16.mxu1 %v8168_v7  ;;  %6935 = vmatprep.subr.bf16.mxu0 %v8168_v7  ;;  %v5364_v3 = vld [vmem:[%s9033_s4 + $0xa8] sm:$0xff] }
 0x1cf   :  { %v465_v14 = vsel %vm433_vm15, %v395_v6, %v449_v9  ;;  %v405_v15 = vadd.f32 %v8130_v22, %v404_v13  ;;  %6905 = vmatpush3.bf16.msra.mxu1 %v8168_v7  ;;  %6937 = vmatpush3.bf16.msra.mxu0 %v8168_v7  ;;  %vm5159_vm15 = vcmask 1041408  }
 0x1d0   :  { %v8176_v16 = vpack.c.bf16 %v466_v11, %v465_v14  ;;  %vm436_vm0 = vcmp.gt.f32.partialorder %v410_v12, 0.0  ;;  %v452_v17 = vmul.f32 0.2, %v410_v12 }
 0x1d1   :  { %vm435_vm1 = vcmp.gt.f32.partialorder %v405_v15, 0.0  ;;  %v451_v18 = vmul.f32 0.2, %v405_v15  ;;  %v5998_v19 = vpop.f32.mrb[14].mxu0 }
 0x1d2   :  { %v468_v20 = vsel %vm436_vm0, %v410_v12, %v452_v17  ;;  %v420_v21 = vadd.f32 %v5998_v19, %v8130_v22  ;;  %v414_v23 = vpop.f32.mrb[15].mxu0  ;;  %6907 = vmatprep.subr.bf16.mxu1 %v8176_v16  ;;  %6939 = vmatprep.subr.bf16.mxu0 %v8176_v16  ;;  %v1135_v17 = vld [vmem:[#allocation3 + $0x30] sm:$0xff]  ;;  %vm5297_vm0 = vcmask 1024  }
 0x1d3   :  { %v467_v24 = vsel %vm435_vm1, %v405_v15, %v451_v18  ;;  %v415_v25 = vadd.f32 %v8130_v22, %v414_v23  ;;  %6909 = vmatpush3.bf16.msra.mxu1 %v8176_v16  ;;  %6941 = vmatpush3.bf16.msra.mxu0 %v8176_v16  ;;  %v5347_v15 = vld [vmem:[%s9033_s4 + $0x60] sm:$0xff]  ;;  %v5349_v23 = vld [vmem:[%s9033_s4 + $0x70] sm:$0xff] }
 0x1d4   :  { %v8184_v26 = vpack.c.bf16 %v468_v20, %v467_v24  ;;  %vm438_vm2 = vcmp.gt.f32.partialorder %v420_v21, 0.0  ;;  %v454_v27 = vmul.f32 0.2, %v420_v21  ;;  %v1136_v18 = vld [vmem:[#allocation3 + $0x38] sm:$0xff]  ;;  %v5348_v20 = vld [vmem:[%s9033_s4 + $0x68] sm:$0xff] }
 0x1d5   :  { %vm437_vm3 = vcmp.gt.f32.partialorder %v415_v25, 0.0  ;;  %v453_v29 = vmul.f32 0.2, %v415_v25  ;;  %v7026_v19 = vpack.c.bf16 %v1136_v18, %v1135_v17  ;;  %v5395_v17 = vld [vmem:[#allocation5] ss:$0 sm:$0xff] }
 0x1d6   :  { %v470_v33 = vsel %vm438_vm2, %v420_v21, %v454_v27  ;;  %6911 = vmatprep.subr.bf16.mxu1 %v8184_v26  ;;  %6943 = vmatprep.subr.bf16.mxu0 %v8184_v26  ;;  %v1329_v27 = vld [vmem:[#allocation3 + $0x40] sm:$0xff] }
 0x1d7   :  { %v469_v22 = vsel %vm437_vm3, %v415_v25, %v453_v29  ;;  %6913 = vmatpush3.bf16.msra.mxu1 %v8184_v26  ;;  %6945 = vmatpush3.bf16.msra.mxu0 %v8184_v26  ;;  %v5350_v25 = vld [vmem:[%s9033_s4 + $0x78] sm:$0xff]  ;;  %v7062_v29 = vpack.c.bf16 %v1330_v28, %v1329_v27 }
 0x1d8   :  { %v8190_v34 = vpack.c.bf16 %v470_v33, %v469_v22 }
 0x1da   :  { %6915 = vmatprep.subr.bf16.mxu1 %v8190_v34  ;;  %6947 = vmatprep.subr.bf16.mxu0 %v8190_v34 }
 0x1db   :  { %6917 = vmatpush3.bf16.msra.mxu1 %v8190_v34  ;;  %6949 = vmatpush3.bf16.msra.mxu0 %v8190_v34 }
 0x1dc   :  { %6951 = vmatprep.subr.bf16.mxu0 %v6950_v36  ;;  %6955 = vmatprep.subr.bf16.mxu1 %v6954_v37 }
 0x1de   :  { %6032 = vmatmul.mubr.f32.vlgmr.msra.gmra.mrb[0].mxu1 %v472_v38  ;;  %6070 = vmatmul.mubr.f32.vlgmr.msra.gmra.mrb[16].mxu0 %v5328_v39  ;;  %v5380_v38 = vld [vmem:[%s9033_s4 + $0xe8] sm:$0xff]  ;;  %v5381_v39 = vld [vmem:[%s9033_s4 + $0xf0] sm:$0xff] }
 0x1df   :  { %6953 = vmatpush3.bf16.msra.mxu0 %v6950_v36  ;;  %6072 = vmatprep.mubr.f32.mxu0 %v5329_v40  ;;  %v5382_v40 = vld [vmem:[%s9033_s4 + $0xf8] sm:$0xff] }
 0x1e0   :  { %6959 = vmatprep.subr.bf16.mxu0 %v8136_v35  ;;  %6034 = vmatprep.mubr.f32.mxu1 %v473_v41  ;;  %v1523_v41 = vld [vmem:[#allocation3 + $0x50] sm:$0xff] }
 0x1e1   :  { %6957 = vmatpush3.bf16.msra.mxu1 %v6954_v37  ;;  %v5379_v37 = vld [vmem:[%s9033_s4 + $0xe0] sm:$0xff] }
 0x1e2   :  { %6073 = vmatmul.mubr.f32.gmra.mrb[18].mxu0 %v5330_v42  ;;  %6035 = vmatmul.mubr.f32.gmra.mrb[2].mxu1 %v474_v43  ;;  %v1524_v42 = vld [vmem:[#allocation3 + $0x58] sm:$0xff] }
 0x1e3   :  { %6991 = vmatprep.subr.bf16.mxu1 %v6990_v47  ;;  %v7098_v46 = vpack.c.bf16 %v1524_v42, %v1523_v41 }
 0x2b1   :  { %v6033_v48 = vpop.f32.mrb[0].mxu1  ;;  %v6071_v49 = vpop.f32.mrb[16].mxu0 }
 0x2b2   :  { %v541_v50 = vpop.f32.mrb[1].mxu1  ;;  %v633_v51 = vpop.f32.mrb[17].mxu0 }
 0x2b3   :  { %6079 = vmatprep.mubr.msk.f32.mxu0 %vm655_vm4, %v633_v51  ;;  %6089 = vmatprep.mubr.msk.f32.mxu1 %vm655_vm4, %v541_v50  ;;  %v1717_v50 = vld [vmem:[#allocation3 + $0x60] sm:$0xff]  ;;  %v1718_v51 = vld [vmem:[#allocation3 + $0x68] sm:$0xff] }
 0x2b4   :  { %6080 = vmatmul.mubr.msk.f32.vlgmr.msra.gmra.mrb[20].mxu0 %vm655_vm4, %v6071_v49  ;;  %6090 = vmatmul.mubr.msk.f32.vlgmr.msra.gmra.mrb[4].mxu1 %vm655_vm4, %v6033_v48  ;;  %v5371_v49 = vld [vmem:[%s9033_s4 + $0xc0] sm:$0xff] }
 0x2b5   :  { %6961 = vmatpush3.bf16.msra.mxu0 %v8136_v35  ;;  %6993 = vmatpush3.bf16.msra.mxu1 %v6990_v47  ;;  %v6074_v52 = vpop.f32.mrb[18].mxu0  ;;  %v6036_v1 = vpop.f32.mrb[2].mxu1 }
 0x2b6   :  { %6963 = vmatprep.subr.bf16.mxu0 %v8144_v44  ;;  %6995 = vmatprep.subr.bf16.mxu1 %v8136_v35  ;;  %v643_v54 = vpop.f32.mrb[19].mxu0  ;;  %v551_v2 = vpop.f32.mrb[3].mxu1 }
 0x2b7   :  { %6082 = vmatprep.mubr.msk.f32.mxu0 %vm655_vm4, %v643_v54  ;;  %6092 = vmatprep.mubr.msk.f32.mxu1 %vm655_vm4, %v551_v2  ;;  %v5372_v54 = vld [vmem:[%s9033_s4 + $0xc8] sm:$0xff] }
 0x2b8   :  { %6083 = vmatmul.mubr.msk.f32.gmra.mrb[22].mxu0 %vm655_vm4, %v6074_v52  ;;  %6093 = vmatmul.mubr.msk.f32.gmra.mrb[6].mxu1 %vm655_vm4, %v6036_v1  ;;  %v7134_v52 = vpack.c.bf16 %v1718_v51, %v1717_v50 }
 0x2b9   :  { %6965 = vmatpush3.bf16.msra.mxu0 %v8144_v44  ;;  %6127 = vmatprep.mubr.f32.mxu0 %v5339_v55  ;;  %v5373_v55 = vld [vmem:[%s9033_s4 + $0xd0] sm:$0xff] }
 0x2ba   :  { %6967 = vmatprep.subr.bf16.mxu0 %v8152_v53 }
 0x2bd   :  { %6969 = vmatpush3.bf16.msra.mxu0 %v8152_v53 }
 0x2be   :  { %6971 = vmatprep.subr.bf16.mxu0 %v8160_v62 }
 0x2c1   :  { %6973 = vmatpush3.bf16.msra.mxu0 %v8160_v62 }
 0x2c2   :  { %6975 = vmatprep.subr.bf16.mxu0 %v8168_v7 }
 0x2c5   :  { %6977 = vmatpush3.bf16.msra.mxu0 %v8168_v7 }
 0x2c6   :  { %6979 = vmatprep.subr.bf16.mxu0 %v8176_v16 }
 0x2c9   :  { %6981 = vmatpush3.bf16.msra.mxu0 %v8176_v16 }
 0x2ca   :  { %6983 = vmatprep.subr.bf16.mxu0 %v8184_v26 }
 0x2cd   :  { %6985 = vmatpush3.bf16.msra.mxu0 %v8184_v26 }
 0x2ce   :  { %6987 = vmatprep.subr.bf16.mxu0 %v8190_v34 }
 0x2d1   :  { %6989 = vmatpush3.bf16.msra.mxu0 %v8190_v34 }
 0x2d2   :  { %7031 = vmatprep.subr.bf16.mxu0 %v8136_v35 }
 0x2d4   :  { %6128 = vmatmul.mubr.f32.vlgmr.msra.gmra.mrb[24].mxu0 %v5340_v56  ;;  %v5374_v56 = vld [vmem:[%s9033_s4 + $0xd8] sm:$0xff] }
 0x2d5   :  { %7033 = vmatpush3.bf16.msra.mxu0 %v8136_v35  ;;  %6130 = vmatprep.mubr.f32.mxu0 %v5341_v57  ;;  %v1911_v57 = vld [vmem:[#allocation3 + $0x70] sm:$0xff] }
 0x2d6   :  { %7035 = vmatprep.subr.bf16.mxu0 %v8144_v44 }
 0x2d8   :  { %6131 = vmatmul.mubr.f32.gmra.mrb[26].mxu0 %v5342_v58  ;;  %v1912_v58 = vld [vmem:[#allocation3 + $0x78] sm:$0xff] }
 0x2d9   :  { %7037 = vmatpush3.bf16.msra.mxu0 %v8144_v44  ;;  %6223 = vmatprep.mubr.f32.mxu0 %v5355_v59  ;;  %v7170_v59 = vpack.c.bf16 %v1912_v58, %v1911_v57 }
 0x2da   :  { %7039 = vmatprep.subr.bf16.mxu0 %v8152_v53 }
 0x2dd   :  { %7041 = vmatpush3.bf16.msra.mxu0 %v8152_v53 }
 0x2de   :  { %7043 = vmatprep.subr.bf16.mxu0 %v8160_v62 }
 0x2e1   :  { %7045 = vmatpush3.bf16.msra.mxu0 %v8160_v62 }
 0x2e2   :  { %7047 = vmatprep.subr.bf16.mxu0 %v8168_v7 }
 0x2e5   :  { %7049 = vmatpush3.bf16.msra.mxu0 %v8168_v7 }
 0x2e6   :  { %7051 = vmatprep.subr.bf16.mxu0 %v8176_v16 }
 0x2e9   :  { %7053 = vmatpush3.bf16.msra.mxu0 %v8176_v16 }
 0x2ea   :  { %7055 = vmatprep.subr.bf16.mxu0 %v8184_v26 }
 0x2ed   :  { %7057 = vmatpush3.bf16.msra.mxu0 %v8184_v26 }
 0x2ee   :  { %7059 = vmatprep.subr.bf16.mxu0 %v8190_v34 }
 0x2f1   :  { %7061 = vmatpush3.bf16.msra.mxu0 %v8190_v34 }
 0x2f2   :  { %7067 = vmatprep.subr.bf16.mxu0 %v8136_v35 }
 0x2f4   :  { %6224 = vmatmul.mubr.f32.vlgmr.msra.gmra.mrb[28].mxu0 %v5356_v60 }
 0x2f5   :  { %7069 = vmatpush3.bf16.msra.mxu0 %v8136_v35  ;;  %6226 = vmatprep.mubr.f32.mxu0 %v5357_v61 }
 0x2f6   :  { %7071 = vmatprep.subr.bf16.mxu0 %v8144_v44 }
 0x2f8   :  { %6227 = vmatmul.mubr.f32.gmra.mrb[30].mxu0 %v5358_v63 }
 0x2f9   :  { %7073 = vmatpush3.bf16.msra.mxu0 %v8144_v44  ;;  %6271 = vmatprep.mubr.f32.mxu0 %v5363_v0 }
 0x2fa   :  { %7075 = vmatprep.subr.bf16.mxu0 %v8152_v53 }
 0x2fd   :  { %7077 = vmatpush3.bf16.msra.mxu0 %v8152_v53 }
 0x2fe   :  { %7079 = vmatprep.subr.bf16.mxu0 %v8160_v62 }
 0x301   :  { %7081 = vmatpush3.bf16.msra.mxu0 %v8160_v62 }
 0x302   :  { %7083 = vmatprep.subr.bf16.mxu0 %v8168_v7 }
 0x305   :  { %7085 = vmatpush3.bf16.msra.mxu0 %v8168_v7 }
 0x306   :  { %7087 = vmatprep.subr.bf16.mxu0 %v8176_v16 }
 0x309   :  { %7089 = vmatpush3.bf16.msra.mxu0 %v8176_v16 }
 0x30a   :  { %7091 = vmatprep.subr.bf16.mxu0 %v8184_v26 }
 0x30d   :  { %7093 = vmatpush3.bf16.msra.mxu0 %v8184_v26 }
 0x30e   :  { %7095 = vmatprep.subr.bf16.mxu0 %v8190_v34 }
 0x311   :  { %7097 = vmatpush3.bf16.msra.mxu0 %v8190_v34 }
 0x312   :  { %7139 = vmatprep.subr.bf16.mxu0 %v8136_v35 }
 0x314   :  { %6272 = vmatmul.mubr.f32.vlgmr.msra.gmra.mrb[32].mxu0 %v5364_v3 }
 0x315   :  { %7141 = vmatpush3.bf16.msra.mxu0 %v8136_v35  ;;  %6274 = vmatprep.mubr.f32.mxu0 %v5365_v4 }
 0x316   :  { %7143 = vmatprep.subr.bf16.mxu0 %v8144_v44 }
 0x318   :  { %6275 = vmatmul.mubr.f32.gmra.mrb[34].mxu0 %v5366_v5  ;;  %v5387_v5 = vld [vmem:[%s9033_s4 + $0x100] sm:$0xff] }
 0x319   :  { %7145 = vmatpush3.bf16.msra.mxu0 %v8144_v44  ;;  %6367 = vmatprep.mubr.f32.mxu0 %v5379_v37 }
 0x31a   :  { %7147 = vmatprep.subr.bf16.mxu0 %v8152_v53 }
 0x31d   :  { %7149 = vmatpush3.bf16.msra.mxu0 %v8152_v53 }
 0x31e   :  { %7151 = vmatprep.subr.bf16.mxu0 %v8160_v62 }
 0x321   :  { %7153 = vmatpush3.bf16.msra.mxu0 %v8160_v62 }
 0x322   :  { %7155 = vmatprep.subr.bf16.mxu0 %v8168_v7 }
 0x325   :  { %7157 = vmatpush3.bf16.msra.mxu0 %v8168_v7 }
 0x326   :  { %7159 = vmatprep.subr.bf16.mxu0 %v8176_v16 }
 0x329   :  { %7161 = vmatpush3.bf16.msra.mxu0 %v8176_v16 }
 0x32a   :  { %7163 = vmatprep.subr.bf16.mxu0 %v8184_v26 }
 0x32d   :  { %7165 = vmatpush3.bf16.msra.mxu0 %v8184_v26 }
 0x32e   :  { %7167 = vmatprep.subr.bf16.mxu0 %v8190_v34 }
 0x331   :  { %7169 = vmatpush3.bf16.msra.mxu0 %v8190_v34 }
 0x334   :  { %6368 = vmatmul.mubr.f32.vlgmr.msra.gmra.mrb[36].mxu0 %v5380_v38 }
 0x335   :  { %6370 = vmatprep.mubr.f32.mxu0 %v5381_v39 }
 0x338   :  { %6371 = vmatmul.mubr.f32.gmra.mrb[38].mxu0 %v5382_v40 }
 0x387   :  { %v8323_v6 = vpop.f32.mrb[20].mxu0 }
 0x388   :  { %v8325_v8 = vpop.f32.mrb[21].mxu0 }
 0x38b   :  { %v8327_v9 = vpop.f32.mrb[22].mxu0 }
 0x38c   :  { %v8329_v10 = vpop.f32.mrb[23].mxu0 }
 0x3a7   :  { %v6129_v11 = vpop.f32.mrb[24].mxu0 }
 0x3a8   :  { %v921_v12 = vpop.f32.mrb[25].mxu0 }
 0x3a9   :  { %6137 = vmatprep.mubr.msk.f32.mxu1 %vm655_vm4, %v921_v12 }
 0x3aa   :  { %6138 = vmatmul.mubr.msk.f32.vlgmr.msra.gmra.mrb[4].mxu1 %vm655_vm4, %v6129_v11 }
 0x3ab   :  { %6997 = vmatpush3.bf16.msra.mxu1 %v8136_v35  ;;  %v6132_v13 = vpop.f32.mrb[26].mxu0 }
 0x3ac   :  { %6999 = vmatprep.subr.bf16.mxu1 %v8144_v44  ;;  %v931_v14 = vpop.f32.mrb[27].mxu0 }
 0x3ad   :  { %6140 = vmatprep.mubr.msk.f32.mxu1 %vm655_vm4, %v931_v14  ;;  %v7779_v14 = vmov 0.0  }
 0x3ae   :  { %6141 = vmatmul.mubr.msk.f32.gmra.mrb[6].mxu1 %vm655_vm4, %v6132_v13  ;;  %v7777_v13 = vmov 0.0|0.0   ;;  %6439 = vmatprep.mubr.msk.f32.mxu0 %vm7778_vm5, %v7779_v14 }
 0x3af   :  { %7001 = vmatpush3.bf16.msra.mxu1 %v8144_v44  ;;  %6175 = vmatprep.mubr.f32.mxu1 %v5347_v15 }
 0x3b0   :  { %7003 = vmatprep.subr.bf16.mxu1 %v8152_v53  ;;  %7210 = vmatprep.subr.bf16.mxu0 %v7777_v13 }
 0x3b3   :  { %7005 = vmatpush3.bf16.msra.mxu1 %v8152_v53 }
 0x3b4   :  { %7007 = vmatprep.subr.bf16.mxu1 %v8160_v62 }
 0x3b7   :  { %7009 = vmatpush3.bf16.msra.mxu1 %v8160_v62 }
 0x3b8   :  { %7011 = vmatprep.subr.bf16.mxu1 %v8168_v7 }
 0x3bb   :  { %7013 = vmatpush3.bf16.msra.mxu1 %v8168_v7 }
 0x3bc   :  { %7015 = vmatprep.subr.bf16.mxu1 %v8176_v16 }
 0x3bf   :  { %7017 = vmatpush3.bf16.msra.mxu1 %v8176_v16 }
 0x3c0   :  { %7019 = vmatprep.subr.bf16.mxu1 %v8184_v26 }
 0x3c3   :  { %7021 = vmatpush3.bf16.msra.mxu1 %v8184_v26 }
 0x3c4   :  { %7023 = vmatprep.subr.bf16.mxu1 %v8190_v34 }
 0x3c7   :  { %7025 = vmatpush3.bf16.msra.mxu1 %v8190_v34  ;;  %v6225_v21 = vpop.f32.mrb[28].mxu0 }
 0x3c8   :  { %v1309_v24 = vpop.f32.mrb[29].mxu0  ;;  %7027 = vmatprep.subr.bf16.mxu1 %v7026_v19 }
 0x3ca   :  { %6176 = vmatmul.mubr.f32.vlgmr.msra.gmra.mrb[8].mxu1 %v5348_v20 }
 0x3cb   :  { %6178 = vmatprep.mubr.f32.mxu1 %v5349_v23  ;;  %7029 = vmatpush3.bf16.msra.mxu1 %v7026_v19  ;;  %v6228_v30 = vpop.f32.mrb[30].mxu0 }
 0x3cc   :  { %7063 = vmatprep.subr.bf16.mxu1 %v7062_v29  ;;  %v1319_v31 = vpop.f32.mrb[31].mxu0 }
 0x3ce   :  { %6179 = vmatmul.mubr.f32.gmra.mrb[10].mxu1 %v5350_v25 }
 0x3e7   :  { %v6273_v32 = vpop.f32.mrb[32].mxu0 }
 0x3e8   :  { %v1503_v33 = vpop.f32.mrb[33].mxu0 }
 0x3eb   :  { %v6276_v22 = vpop.f32.mrb[34].mxu0 }
 0x3ec   :  { %v1513_v36 = vpop.f32.mrb[35].mxu0 }
 0x407   :  { %v6369_v60 = vpop.f32.mrb[36].mxu0 }
 0x408   :  { %v1891_v61 = vpop.f32.mrb[37].mxu0 }
 0x40b   :  { %v6372_v63 = vpop.f32.mrb[38].mxu0 }
 0x40c   :  { %v1901_v0 = vpop.f32.mrb[39].mxu0 }
 0x49d   :  { %v6177_v43 = vpop.f32.mrb[8].mxu1 }
 0x49e   :  { %v1115_v45 = vpop.f32.mrb[9].mxu1 }
 0x49f   :  { %6185 = vmatprep.mubr.msk.f32.mxu1 %vm655_vm4, %v1115_v45 }
 0x4a0   :  { %6186 = vmatmul.mubr.msk.f32.vlgmr.msra.gmra.mrb[4].mxu1 %vm655_vm4, %v6177_v43 }
 0x4a1   :  { %v6180_v47 = vpop.f32.mrb[10].mxu1  ;;  %7065 = vmatpush3.bf16.msra.mxu1 %v7062_v29 }
 0x4a2   :  { %v1125_v48 = vpop.f32.mrb[11].mxu1  ;;  %7099 = vmatprep.subr.bf16.mxu1 %v7098_v46 }
 0x4a3   :  { %6188 = vmatprep.mubr.msk.f32.mxu1 %vm655_vm4, %v1125_v48 }
 0x4a4   :  { %6189 = vmatmul.mubr.msk.f32.gmra.mrb[6].mxu1 %vm655_vm4, %v6180_v47 }
 0x4a5   :  { %6233 = vmatprep.mubr.msk.f32.mxu1 %vm655_vm4, %v1309_v24 }
 0x4a8   :  { %6234 = vmatmul.mubr.msk.f32.vlgmr.msra.gmra.mrb[4].mxu1 %vm655_vm4, %v6225_v21 }
 0x4a9   :  { %7101 = vmatpush3.bf16.msra.mxu1 %v7098_v46  ;;  %6236 = vmatprep.mubr.msk.f32.mxu1 %vm655_vm4, %v1319_v31 }
 0x4aa   :  { %7103 = vmatprep.subr.bf16.mxu1 %v8136_v35 }
 0x4ac   :  { %6237 = vmatmul.mubr.msk.f32.gmra.mrb[6].mxu1 %vm655_vm4, %v6228_v30 }
 0x4ad   :  { %6281 = vmatprep.mubr.msk.f32.mxu1 %vm655_vm4, %v1503_v33 }
 0x4b0   :  { %6282 = vmatmul.mubr.msk.f32.vlgmr.msra.gmra.mrb[4].mxu1 %vm655_vm4, %v6273_v32 }
 0x4b1   :  { %7105 = vmatpush3.bf16.msra.mxu1 %v8136_v35  ;;  %6284 = vmatprep.mubr.msk.f32.mxu1 %vm655_vm4, %v1513_v36 }
 0x4b2   :  { %7107 = vmatprep.subr.bf16.mxu1 %v8144_v44 }
 0x4b4   :  { %6285 = vmatmul.mubr.msk.f32.gmra.mrb[6].mxu1 %vm655_vm4, %v6276_v22 }
 0x4b5   :  { %7109 = vmatpush3.bf16.msra.mxu1 %v8144_v44  ;;  %6319 = vmatprep.mubr.f32.mxu1 %v5371_v49 }
 0x4b6   :  { %7111 = vmatprep.subr.bf16.mxu1 %v8152_v53 }
 0x4b9   :  { %7113 = vmatpush3.bf16.msra.mxu1 %v8152_v53 }
 0x4ba   :  { %7115 = vmatprep.subr.bf16.mxu1 %v8160_v62 }
 0x4bd   :  { %7117 = vmatpush3.bf16.msra.mxu1 %v8160_v62 }
 0x4be   :  { %7119 = vmatprep.subr.bf16.mxu1 %v8168_v7 }
 0x4c1   :  { %7121 = vmatpush3.bf16.msra.mxu1 %v8168_v7 }
 0x4c2   :  { %7123 = vmatprep.subr.bf16.mxu1 %v8176_v16 }
 0x4c5   :  { %7125 = vmatpush3.bf16.msra.mxu1 %v8176_v16 }
 0x4c6   :  { %7127 = vmatprep.subr.bf16.mxu1 %v8184_v26 }
 0x4c9   :  { %7129 = vmatpush3.bf16.msra.mxu1 %v8184_v26 }
 0x4ca   :  { %7131 = vmatprep.subr.bf16.mxu1 %v8190_v34 }
 0x4cd   :  { %7133 = vmatpush3.bf16.msra.mxu1 %v8190_v34 }
 0x4ce   :  { %7135 = vmatprep.subr.bf16.mxu1 %v7134_v52 }
 0x4d0   :  { %6320 = vmatmul.mubr.f32.vlgmr.msra.gmra.mrb[12].mxu1 %v5372_v54 }
 0x4d1   :  { %6322 = vmatprep.mubr.f32.mxu1 %v5373_v55  ;;  %7137 = vmatpush3.bf16.msra.mxu1 %v7134_v52 }
 0x4d2   :  { %7171 = vmatprep.subr.bf16.mxu1 %v7170_v59 }
 0x4d4   :  { %6323 = vmatmul.mubr.f32.gmra.mrb[14].mxu1 %v5374_v56 }
 0x5a3   :  { %v6321_v1 = vpop.f32.mrb[12].mxu1 }
 0x5a4   :  { %v1697_v2 = vpop.f32.mrb[13].mxu1 }
 0x5a5   :  { %6329 = vmatprep.mubr.msk.f32.mxu1 %vm655_vm4, %v1697_v2 }
 0x5a6   :  { %6330 = vmatmul.mubr.msk.f32.vlgmr.msra.gmra.mrb[4].mxu1 %vm655_vm4, %v6321_v1 }
 0x5a7   :  { %7173 = vmatpush3.bf16.msra.mxu1 %v7170_v59  ;;  %v6324_v3 = vpop.f32.mrb[14].mxu1 }
 0x5a8   :  { %7175 = vmatprep.subr.bf16.mxu1 %v8136_v35  ;;  %v1707_v4 = vpop.f32.mrb[15].mxu1 }
 0x5a9   :  { %6332 = vmatprep.mubr.msk.f32.mxu1 %vm655_vm4, %v1707_v4 }
 0x5aa   :  { %6333 = vmatmul.mubr.msk.f32.gmra.mrb[6].mxu1 %vm655_vm4, %v6324_v3 }
 0x5ab   :  { %6377 = vmatprep.mubr.msk.f32.mxu1 %vm655_vm4, %v1891_v61 }
 0x5ae   :  { %6378 = vmatmul.mubr.msk.f32.vlgmr.msra.gmra.mrb[4].mxu1 %vm655_vm4, %v6369_v60 }
 0x5af   :  { %7177 = vmatpush3.bf16.msra.mxu1 %v8136_v35  ;;  %6380 = vmatprep.mubr.msk.f32.mxu1 %vm655_vm4, %v1901_v0  ;;  %v2105_v35 = vld [vmem:[#allocation3 + $0x80] sm:$0xff] }
 0x5b0   :  { %7179 = vmatprep.subr.bf16.mxu1 %v8144_v44 }
 0x5b2   :  { %6381 = vmatmul.mubr.msk.f32.gmra.mrb[6].mxu1 %vm655_vm4, %v6372_v63 }
 0x5b3   :  { %7181 = vmatpush3.bf16.msra.mxu1 %v8144_v44  ;;  %6415 = vmatprep.mubr.f32.mxu1 %v5387_v5  ;;  %v2106_v44 = vld [vmem:[#allocation3 + $0x88] sm:$0xff] }
 0x5b4   :  { %7183 = vmatprep.subr.bf16.mxu1 %v8152_v53 }
 0x5b7   :  { %7185 = vmatpush3.bf16.msra.mxu1 %v8152_v53  ;;  %v7206_v53 = vpack.c.bf16 %v2106_v44, %v2105_v35 }
 0x5b8   :  { %7187 = vmatprep.subr.bf16.mxu1 %v8160_v62 }
 0x5bb   :  { %7189 = vmatpush3.bf16.msra.mxu1 %v8160_v62  ;;  %v5388_v62 = vld [vmem:[%s9033_s4 + $0x108] sm:$0xff] }
 0x5bc   :  { %7191 = vmatprep.subr.bf16.mxu1 %v8168_v7 }
 0x5bf   :  { %7193 = vmatpush3.bf16.msra.mxu1 %v8168_v7  ;;  %v5389_v7 = vld [vmem:[%s9033_s4 + $0x110] sm:$0xff] }
 0x5c0   :  { %7195 = vmatprep.subr.bf16.mxu1 %v8176_v16 }
 0x5c3   :  { %7197 = vmatpush3.bf16.msra.mxu1 %v8176_v16  ;;  %v5390_v16 = vld [vmem:[%s9033_s4 + $0x118] sm:$0xff] }
 0x5c4   :  { %7199 = vmatprep.subr.bf16.mxu1 %v8184_v26 }
 0x5c7   :  { %7201 = vmatpush3.bf16.msra.mxu1 %v8184_v26 }
 0x5c8   :  { %7203 = vmatprep.subr.bf16.mxu1 %v8190_v34 }
 0x5cb   :  { %7205 = vmatpush3.bf16.msra.mxu1 %v8190_v34 }
 0x5cc   :  { %7207 = vmatprep.subr.bf16.mxu1 %v7206_v53 }
 0x5ce   :  { %6416 = vmatmul.mubr.f32.vlgmr.msra.gmra.mrb[16].mxu1 %v5388_v62 }
 0x5cf   :  { %6418 = vmatprep.mubr.f32.mxu1 %v5389_v7  ;;  %7209 = vmatpush3.bf16.msra.mxu1 %v7206_v53 }
 0x5d0   :  { %7240 = vmatprep.subr.bf16.mxu1 %v7777_v13 }
 0x5d2   :  { %6419 = vmatmul.mubr.f32.gmra.mrb[18].mxu1 %v5390_v16 }
 0x6a1   :  { %v6417_v26 = vpop.f32.mrb[16].mxu1 }
 0x6a2   :  { %v2085_v11 = vpop.f32.mrb[17].mxu1 }
 0x6a3   :  { %6425 = vmatprep.mubr.msk.f32.mxu1 %vm655_vm4, %v2085_v11  ;;  %v5396_v11 = vld [vmem:[#allocation7] ss:$0 sm:$0xff] }
 0x6a4   :  { %6426 = vmatmul.mubr.msk.f32.vlgmr.msra.gmra.mrb[4].mxu1 %vm655_vm4, %v6417_v26 }
 0x6a5   :  { %v6420_v34 = vpop.f32.mrb[18].mxu1 }
 0x6a6   :  { %v2095_v12 = vpop.f32.mrb[19].mxu1 }
 0x6a7   :  { %6428 = vmatprep.mubr.msk.f32.mxu1 %vm655_vm4, %v2095_v12 }
 0x6a8   :  { %6429 = vmatmul.mubr.msk.f32.gmra.mrb[6].mxu1 %vm655_vm4, %v6420_v34 }
 0x6a9   :  { %6494 = vmatprep.mubr.msk.f32.mxu1 %vm7778_vm5, %v7779_v14 }
 0x777   :  { %v6427_v15 = vpop.f32.mrb[4].mxu1 }
 0x778   :  { %v7450_v18 = vadd.f32 %v6427_v15, %v8323_v6  ;;  %v2185_v19 = vpop.f32.mrb[5].mxu1 }
 0x779   :  { %v7451_v20 = vadd.f32 %v2185_v19, %v8325_v8 }
 0x77a   :  { %v2216_v21 = vadd.f32 %v7450_v18, %v5395_v17  ;;  %v5397_v18 = vld [vmem:[#allocation8] ss:$0 sm:$0xff] }
 0x77b   :  { %v2215_v23 = vadd.f32 %v7451_v20, %v5395_v17  ;;  %v6430_v24 = vpop.f32.mrb[6].mxu1 }
 0x77c   :  { %vm2220_vm6 = vcmp.gt.f32.partialorder %v2216_v21, 0.0  ;;  %v2224_v25 = vmul.f32 0.2, %v2216_v21  ;;  %v7452_v27 = vadd.f32 %v6430_v24, %v8327_v9  ;;  %v2195_v28 = vpop.f32.mrb[7].mxu1 }
 0x77d   :  { %vm2219_vm8 = vcmp.gt.f32.partialorder %v2215_v23, 0.0  ;;  %v2223_v29 = vmul.f32 0.2, %v2215_v23  ;;  %v7453_v30 = vadd.f32 %v2195_v28, %v8329_v10 }
 0x77e   :  { %v2228_v31 = vsel %vm2220_vm6, %v2216_v21, %v2224_v25  ;;  %v2218_v32 = vadd.f32 %v7452_v27, %v5395_v17 }
 0x77f   :  { %v2233_v6 = vsel %vm2231_vm7, %v2228_v31, 0.0  ;;  %v2227_v33 = vsel %vm2219_vm8, %v2215_v23, %v2223_v29  ;;  %v2217_v22 = vadd.f32 %v7453_v30, %v5395_v17 }
 0x780   :  { %v2232_v8 = vsel %vm2231_vm7, %v2227_v33, 0.0  ;;  %vm2222_vm9 = vcmp.gt.f32.partialorder %v2218_v32, 0.0  ;;  %v2226_v36 = vmul.f32 0.2, %v2218_v32 }
 0x781   :  { %v2234_v37 = vadd.f32 %v2233_v6, %v2232_v8  ;;  %vm2221_vm10 = vcmp.gt.f32.partialorder %v2217_v22, 0.0  ;;  %v2225_v38 = vmul.f32 0.2, %v2217_v22  ;;  %v2451_v6 = vld [vmem:[#allocation11 + $0x20] sm:$0xff]  ;;  %v2453_v8 = vld [vmem:[#allocation11 + $0x30] sm:$0xff] }
 0x782   :  { %v2230_v39 = vsel %vm2222_vm9, %v2218_v32, %v2226_v36  ;;  %v2376_v32 = vld [vmem:[#allocation10 + $0x8] sm:$0xff]  ;;  %v2454_v36 = vld [vmem:[#allocation11 + $0x38] sm:$0xff] }
 0x783   :  { %v2229_v9 = vsel %vm2221_vm10, %v2217_v22, %v2225_v38  ;;  %v2237_v10 = vsel %vm2231_vm7, %v2230_v39, 0.0 }
 0x784   :  { %v2235_v40 = vsel %vm2231_vm7, %v2229_v9, 0.0 }
 0x785   :  { %v2236_v41 = vadd.f32 %v2235_v40, %v2234_v37  ;;  %v7226_v37 = vpack.c.bf16 %v2454_v36, %v2453_v8  ;;  %v2372_v40 = vld [vmem:[#allocation11 + $0x8] sm:$0xff]  ;;  %v3447_v36 = vld [vmem:[#allocation11 + $0xe0] sm:$0xff] }
 0x787   :  { %v2238_v42 = vadd.f32 %v2237_v10, %v2236_v41  ;;  %v2373_v10 = vld [vmem:[#allocation11 + $0x10] sm:$0xff] }
 0x789   :  { %v2239_v43 = vrot.slane %v2238_v42, 4 }
 0x78b   :  { %v2240_v45 = vadd.f32 %v2239_v43, %v2238_v42  ;;  %v2374_v42 = vld [vmem:[#allocation11 + $0x18] sm:$0xff] }
 0x78d   :  { %v2241_v46 = vrot.slane %v2240_v45, 2 }
 0x78f   :  { %v2242_v47 = vadd.f32 %v2241_v46, %v2240_v45  ;;  %v7232_v46 = vpack.c.bf16 %v2374_v42, %v2373_v10  ;;  %v3601_v42 = vld [vmem:[#allocation11 + $0x100] sm:$0xff] }
 0x791   :  { %v2243_v48 = vrot.slane %v2242_v47, 1 }
 0x793   :  { %v2244_v49 = vadd.f32 %v2243_v48, %v2242_v47  ;;  %v2602_v47 = vld [vmem:[#allocation10 + $0x10] sm:$0xff]  ;;  %v2756_v48 = vld [vmem:[#allocation10 + $0x18] sm:$0xff] }
 0x795   :  { %v2246_v50 = vmul.f32 0.03125, %v2244_v49  ;;  %v2910_v49 = vld [vmem:[#allocation10 + $0x20] sm:$0xff] }
 0x797   :  { %v2247_v51 = vsub.f32 %v2227_v33, %v2246_v50  ;;  %v2248_v52 = vsub.f32 %v2228_v31, %v2246_v50  ;;  %v2249_v54 = vsub.f32 %v2229_v9, %v2246_v50  ;;  %v2250_v55 = vsub.f32 %v2230_v39, %v2246_v50  ;;  %v2297_v31 = vld [vmem:[#allocation10] sm:$0xff]  ;;  %v2452_v33 = vld [vmem:[#allocation11 + $0x28] sm:$0xff]  ;;  %v2371_v9 = vld [vmem:[#allocation11] sm:$0xff] }
 0x798   :  { %v7223_v22 = vpack.c.bf16 %v2452_v33, %v2451_v6  ;;  %v7229_v41 = vpack.c.bf16 %v2372_v40, %v2371_v9  ;;  %v3064_v50 = vld [vmem:[#allocation10 + $0x28] sm:$0xff]  ;;  %v3296_v6 = vld [vmem:[#allocation11 + $0xd8] sm:$0xff] }
 0x799   :  { %v2251_v56 = vmul.f32 %v2247_v51, %v2247_v51  ;;  %v2252_v57 = vmul.f32 %v2248_v52, %v2248_v52  ;;  %v2253_v58 = vmul.f32 %v2249_v54, %v2249_v54  ;;  %v2254_v59 = vmul.f32 %v2250_v55, %v2250_v55  ;;  %v3450_v9 = vld [vmem:[#allocation11 + $0xf8] sm:$0xff] }
 0x79b   :  { %v2255_v60 = vsel %vm2231_vm7, %v2251_v56, 0.0  ;;  %v2256_v61 = vsel %vm2231_vm7, %v2252_v57, 0.0  ;;  %v2258_v0 = vsel %vm2231_vm7, %v2253_v58, 0.0  ;;  %v2260_v2 = vsel %vm2231_vm7, %v2254_v59, 0.0  ;;  %v2678_v56 = vld [vmem:[#allocation11 + $0x48] sm:$0xff]  ;;  %v2679_v58 = vld [vmem:[#allocation11 + $0x50] sm:$0xff] }
 0x79c   :  { %v2257_v63 = vadd.f32 %v2256_v61, %v2255_v60  ;;  %v2680_v59 = vld [vmem:[#allocation11 + $0x58] sm:$0xff] }
 0x79d   :  { %v7244_v60 = vpack.c.bf16 %v2680_v59, %v2679_v58  ;;  %v5425_v58 = vld [vmem:[%s9014_s14 + $0x58] sm:$0xff] }
 0x79e   :  { %v2259_v1 = vadd.f32 %v2258_v0, %v2257_v63 }
 0x7a0   :  { %v2261_v3 = vadd.f32 %v2260_v2, %v2259_v1 }
 0x7a2   :  { %v2262_v4 = vrot.slane %v2261_v3, 4 }
 0x7a4   :  { %v2263_v5 = vadd.f32 %v2262_v4, %v2261_v3  ;;  %v2831_v3 = vld [vmem:[#allocation11 + $0x60] sm:$0xff]  ;;  %v2832_v4 = vld [vmem:[#allocation11 + $0x68] sm:$0xff] }
 0x7a6   :  { %v2264_v35 = vrot.slane %v2263_v5, 2 }
 0x7a8   :  { %v2265_v44 = vadd.f32 %v2264_v35, %v2263_v5  ;;  %v7253_v5 = vpack.c.bf16 %v2832_v4, %v2831_v3  ;;  %v2833_v35 = vld [vmem:[#allocation11 + $0x70] sm:$0xff] }
 0x7aa   :  { %v2266_v53 = vrot.slane %v2265_v44, 1 }
 0x7ac   :  { %v2267_v62 = vadd.f32 %v2266_v53, %v2265_v44  ;;  %v2834_v44 = vld [vmem:[#allocation11 + $0x78] sm:$0xff] }
 0x7ae   :  { %v2268_v7 = vmul.f32 0.03125, %v2267_v62 }
 0x7b0   :  { %v2269_v16 = vadd.f32 0.8, %v2268_v7  ;;  %v7256_v7 = vpack.c.bf16 %v2834_v44, %v2833_v35 }
 0x7b2   :  { %7499 = vrsqrt.f32 %v2269_v16  ;;  %v2985_v16 = vld [vmem:[#allocation11 + $0x80] sm:$0xff] }
 0x7bc   :  { %v7500_v26 = vpop.eup %7499 }
 0x7bd   :  { %v2271_v34 = vmul.f32 %v7500_v26, %v2247_v51  ;;  %v2272_v12 = vmul.f32 %v7500_v26, %v2248_v52  ;;  %v2273_v15 = vmul.f32 %v7500_v26, %v2249_v54  ;;  %v2274_v17 = vmul.f32 %v7500_v26, %v2250_v55  ;;  %v3218_v51 = vld [vmem:[#allocation10 + $0x30] sm:$0xff]  ;;  %v3372_v52 = vld [vmem:[#allocation10 + $0x38] sm:$0xff]  ;;  %v3526_v54 = vld [vmem:[#allocation10 + $0x40] sm:$0xff] }
 0x7be   :  { %v2677_v55 = vld [vmem:[#allocation11 + $0x40] sm:$0xff]  ;;  %v2986_v26 = vld [vmem:[#allocation11 + $0x88] sm:$0xff] }
 0x7bf   :  { %v2282_v19 = vmul.f32 %v5396_v11, %v2271_v34  ;;  %v2283_v20 = vmul.f32 %v5396_v11, %v2272_v12  ;;  %v2284_v21 = vmul.f32 %v5396_v11, %v2273_v15  ;;  %v2285_v23 = vmul.f32 %v5396_v11, %v2274_v17  ;;  %v2987_v34 = vld [vmem:[#allocation11 + $0x90] sm:$0xff]  ;;  %v2988_v12 = vld [vmem:[#allocation11 + $0x98] sm:$0xff] }
 0x7c0   :  { %v7241_v57 = vpack.c.bf16 %v2678_v56, %v2677_v55  ;;  %v7265_v11 = vpack.c.bf16 %v2986_v26, %v2985_v16  ;;  %v5423_v55 = vld [vmem:[%s9014_s14 + $0x48] sm:$0xff] }
 0x7c1   :  { %v2293_v24 = vadd.f32 %v5397_v18, %v2282_v19  ;;  %v2294_v25 = vadd.f32 %v5397_v18, %v2283_v20  ;;  %v2295_v27 = vadd.f32 %v5397_v18, %v2284_v21  ;;  %v2296_v28 = vadd.f32 %v5397_v18, %v2285_v23  ;;  %v3139_v19 = vld [vmem:[#allocation11 + $0xa0] sm:$0xff]  ;;  %v3140_v20 = vld [vmem:[#allocation11 + $0xa8] sm:$0xff]  ;;  %v3141_v23 = vld [vmem:[#allocation11 + $0xb0] sm:$0xff] }
 0x7c2   :  { %7242 = vmatpush3.bf16.msra.mxu1 %v7241_v57  ;;  %v7268_v18 = vpack.c.bf16 %v2988_v12, %v2987_v34  ;;  %v7277_v21 = vpack.c.bf16 %v3140_v20, %v3139_v19  ;;  %v5424_v57 = vld [vmem:[%s9014_s14 + $0x50] sm:$0xff] }
 0x7c3   :  { %v8472_v29 = vpack.c.bf16 %v2294_v25, %v2293_v24  ;;  %v8474_v30 = vpack.c.bf16 %v2296_v28, %v2295_v27  ;;  %7243 = vmatprep.subr.bf16.mxu1 %v7777_v13  ;;  %v3142_v24 = vld [vmem:[#allocation11 + $0xb8] sm:$0xff]  ;;  %v7322_v59 = vpack.c.bf16 %v5425_v58, %v5424_v57  ;;  %v5420_v57 = vld [vmem:[%s9013_s13 + $0x2] sm:$0x3] }
 0x7c4   :  { %v7280_v28 = vpack.c.bf16 %v3142_v24, %v3141_v23  ;;  %v5416_v23 = vld [vmem:[#allocation13] ss:$0 sm:$0xff] }
 0x7c5   :  { %7212 = vmatpush3.bf16.msra.mxu0 %v8472_v29 }
 0x7c6   :  { %7213 = vmatprep.subr.bf16.mxu0 %v7777_v13  ;;  %7245 = vmatpush3.bf16.msra.mxu1 %v7244_v60  ;;  %v5426_v60 = vld [vmem:[%s9014_s14 + $0x60] sm:$0xff] }
 0x7c7   :  { %7252 = vmatprep.subr.bf16.mxu1 %v7777_v13 }
 0x7c9   :  { %7215 = vmatpush3.bf16.msra.mxu0 %v8474_v30 }
 0x7ca   :  { %7216 = vmatprep.subr.bf16.mxu0 %v7777_v13 }
 0x7cc   :  { %6440 = vmatmul.mubr.msk.f32.vlgmr.msra.gmra.mrb[40].mxu0 %vm2231_vm7, %v2297_v31 }
 0x7cd   :  { %7218 = vmatpush3.bf16.msra.mxu0 %v8472_v29  ;;  %6450 = vmatprep.mubr.msk.f32.mxu0 %vm7778_vm5, %v7779_v14 }
 0x7ce   :  { %7219 = vmatprep.subr.bf16.mxu0 %v7777_v13 }
 0x7d1   :  { %7221 = vmatpush3.bf16.msra.mxu0 %v8474_v30 }
 0x7d2   :  { %7222 = vmatprep.subr.bf16.mxu0 %v7777_v13 }
 0x7d4   :  { %6451 = vmatmul.mubr.msk.f32.vlgmr.msra.gmra.mrb[42].mxu0 %vm2231_vm7, %v2376_v32  ;;  %v3295_v32 = vld [vmem:[#allocation11 + $0xd0] sm:$0xff] }
 0x7d5   :  { %6461 = vmatprep.mubr.msk.f32.mxu0 %vm7778_vm5, %v7779_v14  ;;  %7224 = vmatpush3.bf16.msra.mxu0 %v7223_v22  ;;  %v7292_v8 = vpack.c.bf16 %v3296_v6, %v3295_v32 }
 0x7d6   :  { %7225 = vmatprep.subr.bf16.mxu0 %v7777_v13 }
 0x7d9   :  { %7227 = vmatpush3.bf16.msra.mxu0 %v7226_v37  ;;  %v3448_v37 = vld [vmem:[#allocation11 + $0xe8] sm:$0xff] }
 0x7da   :  { %7228 = vmatprep.subr.bf16.mxu0 %v7777_v13 }
 0x89f   :  { %v2367_v38 = vpop.f32.mrb[40].mxu0 }
 0x8a0   :  { %v6441_v39 = vpop.f32.mrb[41].mxu0 }
 0x8a1   :  { %v3449_v39 = vld [vmem:[#allocation11 + $0xf0] sm:$0xff] }
 0x8a2   :  { %v7304_v10 = vpack.c.bf16 %v3450_v9, %v3449_v39 }
 0x8a7   :  { %v2446_v43 = vpop.f32.mrb[42].mxu0 }
 0x8a8   :  { %v6452_v45 = vpop.f32.mrb[43].mxu0  ;;  %6462 = vmatmul.mubr.msk.f32.vlgmr.msra.gmra.mrb[44].mxu0 %vm2231_vm7, %v2446_v43  ;;  %v3602_v43 = vld [vmem:[#allocation11 + $0x108] sm:$0xff] }
 0x8a9   :  { %7230 = vmatpush3.bf16.msra.mxu0 %v7229_v41  ;;  %6472 = vmatprep.mubr.msk.f32.mxu0 %vm7778_vm5, %v7779_v14  ;;  %v7313_v45 = vpack.c.bf16 %v3602_v43, %v3601_v42 }
 0x8aa   :  { %7231 = vmatprep.subr.bf16.mxu0 %v7777_v13 }
 0x8ad   :  { %7233 = vmatpush3.bf16.msra.mxu0 %v7232_v46  ;;  %v3603_v46 = vld [vmem:[#allocation11 + $0x110] sm:$0xff] }
 0x8ae   :  { %7234 = vmatprep.subr.bf16.mxu0 %v7777_v13 }
 0x8b0   :  { %6473 = vmatmul.mubr.msk.f32.vlgmr.msra.gmra.mrb[46].mxu0 %vm2231_vm7, %v2367_v38  ;;  %v7301_v38 = vpack.c.bf16 %v3448_v37, %v3447_v36 }
 0x8b1   :  { %7236 = vmatpush3.bf16.msra.mxu0 %v8472_v29  ;;  %6483 = vmatprep.mubr.msk.f32.mxu0 %vm7778_vm5, %v7779_v14 }
 0x8b2   :  { %7237 = vmatprep.subr.bf16.mxu0 %v7777_v13 }
 0x8b5   :  { %7239 = vmatpush3.bf16.msra.mxu0 %v8474_v30 }
 0x8b6   :  { %7246 = vmatprep.subr.bf16.mxu0 %v7777_v13 }
 0x8b8   :  { %6484 = vmatmul.mubr.msk.f32.vlgmr.msra.gmra.mrb[48].mxu0 %vm2231_vm7, %v2602_v47  ;;  %v3604_v47 = vld [vmem:[#allocation11 + $0x118] sm:$0xff] }
 0x8b9   :  { %7248 = vmatpush3.bf16.msra.mxu0 %v8472_v29  ;;  %6505 = vmatprep.mubr.msk.f32.mxu0 %vm7778_vm5, %v7779_v14 }
 0x8ba   :  { %7249 = vmatprep.subr.bf16.mxu0 %v7777_v13 }
 0x8bd   :  { %7251 = vmatpush3.bf16.msra.mxu0 %v8474_v30 }
 0x8be   :  { %7258 = vmatprep.subr.bf16.mxu0 %v7777_v13 }
 0x8c0   :  { %6506 = vmatmul.mubr.msk.f32.vlgmr.msra.gmra.mrb[50].mxu0 %vm2231_vm7, %v2756_v48 }
 0x8c1   :  { %7260 = vmatpush3.bf16.msra.mxu0 %v8472_v29  ;;  %6527 = vmatprep.mubr.msk.f32.mxu0 %vm7778_vm5, %v7779_v14 }
 0x8c2   :  { %7261 = vmatprep.subr.bf16.mxu0 %v7777_v13 }
 0x8c5   :  { %7263 = vmatpush3.bf16.msra.mxu0 %v8474_v30 }
 0x8c6   :  { %7270 = vmatprep.subr.bf16.mxu0 %v7777_v13 }
 0x8c8   :  { %6528 = vmatmul.mubr.msk.f32.vlgmr.msra.gmra.mrb[52].mxu0 %vm2231_vm7, %v2910_v49 }
 0x8c9   :  { %7272 = vmatpush3.bf16.msra.mxu0 %v8472_v29  ;;  %6549 = vmatprep.mubr.msk.f32.mxu0 %vm7778_vm5, %v7779_v14 }
 0x8ca   :  { %7273 = vmatprep.subr.bf16.mxu0 %v7777_v13 }
 0x8cd   :  { %7275 = vmatpush3.bf16.msra.mxu0 %v8474_v30 }
 0x8ce   :  { %7282 = vmatprep.subr.bf16.mxu0 %v7777_v13 }
 0x8d0   :  { %6550 = vmatmul.mubr.msk.f32.vlgmr.msra.gmra.mrb[54].mxu0 %vm2231_vm7, %v3064_v50  ;;  %v7316_v50 = vpack.c.bf16 %v3604_v47, %v3603_v46 }
 0x8d1   :  { %7284 = vmatpush3.bf16.msra.mxu0 %v8472_v29  ;;  %6571 = vmatprep.mubr.msk.f32.mxu0 %vm7778_vm5, %v7779_v14 }
 0x8d2   :  { %7285 = vmatprep.subr.bf16.mxu0 %v7777_v13 }
 0x8d5   :  { %7287 = vmatpush3.bf16.msra.mxu0 %v8474_v30 }
 0x8d6   :  { %7294 = vmatprep.subr.bf16.mxu0 %v7777_v13 }
 0x8d8   :  { %6572 = vmatmul.mubr.msk.f32.vlgmr.msra.gmra.mrb[56].mxu0 %vm2231_vm7, %v3218_v51 }
 0x8d9   :  { %7296 = vmatpush3.bf16.msra.mxu0 %v8472_v29  ;;  %6593 = vmatprep.mubr.msk.f32.mxu0 %vm7778_vm5, %v7779_v14 }
 0x8da   :  { %7297 = vmatprep.subr.bf16.mxu0 %v7777_v13 }
 0x8dd   :  { %7299 = vmatpush3.bf16.msra.mxu0 %v8474_v30 }
 0x8de   :  { %7306 = vmatprep.subr.bf16.mxu0 %v7777_v13 }
 0x8e0   :  { %6594 = vmatmul.mubr.msk.f32.vlgmr.msra.gmra.mrb[58].mxu0 %vm2231_vm7, %v3372_v52 }
 0x8e1   :  { %7308 = vmatpush3.bf16.msra.mxu0 %v8472_v29  ;;  %6615 = vmatprep.mubr.msk.f32.mxu0 %vm7778_vm5, %v7779_v14  ;;  %v3293_v29 = vld [vmem:[#allocation11 + $0xc0] sm:$0xff] }
 0x8e2   :  { %7309 = vmatprep.subr.bf16.mxu0 %v7777_v13 }
 0x8e5   :  { %7311 = vmatpush3.bf16.msra.mxu0 %v8474_v30  ;;  %v3294_v30 = vld [vmem:[#allocation11 + $0xc8] sm:$0xff] }
 0x8e6   :  { %6629 = vmatprep.subr.mxu0 %v7779_v14  ;;  %v7289_v31 = vpack.c.bf16 %v3294_v30, %v3293_v29 }
 0x8e8   :  { %6616 = vmatmul.mubr.msk.f32.vlgmr.msra.gmra.mrb[60].mxu0 %vm2231_vm7, %v3526_v54  ;;  %v5422_v54 = vld [vmem:[%s9014_s14 + $0x40] sm:$0xff] }
 0x8e9   :  { %6631 = vmatprep.mubr.msk.f32.mxu0 %vm7778_vm5, %v7779_v14  ;;  %v7319_v56 = vpack.c.bf16 %v5423_v55, %v5422_v54  ;;  %v3729_v54 = vld [vmem:[%s9013_s13] sm:$0x3] }
 0x8ea   :  { %v3804_v55 = vld [vmem:[%s9014_s14] sm:$0xff] }
 0x97b   :  { %v2524_v61 = vpop.f32.mrb[44].mxu0 }
 0x97c   :  { %v6463_v63 = vpop.f32.mrb[45].mxu0 }
 0x983   :  { %v2597_v0 = vpop.f32.mrb[46].mxu0 }
 0x984   :  { %v8551_v1 = vadd.f32 %v2597_v0, %v2524_v61  ;;  %v6474_v2 = vpop.f32.mrb[47].mxu0  ;;  %v5427_v61 = vld [vmem:[%s9014_s14 + $0x68] sm:$0xff]  ;;  %v5428_v0 = vld [vmem:[%s9014_s14 + $0x70] sm:$0xff] }
 0x985   :  { %v7325_v63 = vpack.c.bf16 %v5427_v61, %v5426_v60  ;;  %v5429_v2 = vld [vmem:[%s9014_s14 + $0x78] sm:$0xff] }
 0x986   :  { %v7328_v4 = vpack.c.bf16 %v5429_v2, %v5428_v0  ;;  %v3807_v60 = vld [vmem:[%s9014_s14 + $0x18] sm:$0xff]  ;;  %v3809_v0 = vld [vmem:[%s9014_s14 + $0x28] sm:$0xff] }
 0x98b   :  { %v2672_v53 = vpop.f32.mrb[48].mxu0 }
 0x98c   :  { %v6485_v62 = vpop.f32.mrb[49].mxu0  ;;  %6495 = vmatmul.mubr.msk.f32.vlgmr.msra.gmra.mrb[20].mxu1 %vm2231_vm7, %v2672_v53 }
 0x98d   :  { %7254 = vmatpush3.bf16.msra.mxu1 %v7253_v5  ;;  %6516 = vmatprep.mubr.msk.f32.mxu1 %vm7778_vm5, %v7779_v14 }
 0x98e   :  { %7255 = vmatprep.subr.bf16.mxu1 %v7777_v13 }
 0x991   :  { %7257 = vmatpush3.bf16.msra.mxu1 %v7256_v7 }
 0x992   :  { %7264 = vmatprep.subr.bf16.mxu1 %v7777_v13 }
 0x993   :  { %v2826_v15 = vpop.f32.mrb[50].mxu0 }
 0x994   :  { %v6507_v17 = vpop.f32.mrb[51].mxu0  ;;  %6517 = vmatmul.mubr.msk.f32.vlgmr.msra.gmra.mrb[22].mxu1 %vm2231_vm7, %v2826_v15 }
 0x995   :  { %7266 = vmatpush3.bf16.msra.mxu1 %v7265_v11  ;;  %6538 = vmatprep.mubr.msk.f32.mxu1 %vm7778_vm5, %v7779_v14 }
 0x996   :  { %7267 = vmatprep.subr.bf16.mxu1 %v7777_v13 }
 0x999   :  { %7269 = vmatpush3.bf16.msra.mxu1 %v7268_v18 }
 0x99a   :  { %7276 = vmatprep.subr.bf16.mxu1 %v7777_v13 }
 0x99b   :  { %v2980_v25 = vpop.f32.mrb[52].mxu0 }
 0x99c   :  { %v6529_v27 = vpop.f32.mrb[53].mxu0  ;;  %6539 = vmatmul.mubr.msk.f32.vlgmr.msra.gmra.mrb[24].mxu1 %vm2231_vm7, %v2980_v25 }
 0x99d   :  { %7278 = vmatpush3.bf16.msra.mxu1 %v7277_v21  ;;  %6560 = vmatprep.mubr.msk.f32.mxu1 %vm7778_vm5, %v7779_v14 }
 0x99e   :  { %7279 = vmatprep.subr.bf16.mxu1 %v7777_v13 }
 0x9a1   :  { %7281 = vmatpush3.bf16.msra.mxu1 %v7280_v28 }
 0x9a2   :  { %7288 = vmatprep.subr.bf16.mxu1 %v7777_v13 }
 0x9a3   :  { %v3134_v33 = vpop.f32.mrb[54].mxu0 }
 0x9a4   :  { %v6551_v22 = vpop.f32.mrb[55].mxu0  ;;  %6561 = vmatmul.mubr.msk.f32.vlgmr.msra.gmra.mrb[26].mxu1 %vm2231_vm7, %v3134_v33 }
 0x9a5   :  { %7290 = vmatpush3.bf16.msra.mxu1 %v7289_v31  ;;  %6582 = vmatprep.mubr.msk.f32.mxu1 %vm7778_vm5, %v7779_v14 }
 0x9a6   :  { %7291 = vmatprep.subr.bf16.mxu1 %v7777_v13 }
 0x9a9   :  { %7293 = vmatpush3.bf16.msra.mxu1 %v7292_v8 }
 0x9aa   :  { %7300 = vmatprep.subr.bf16.mxu1 %v7777_v13 }
 0x9ab   :  { %v3288_v40 = vpop.f32.mrb[56].mxu0 }
 0x9ac   :  { %v6573_v41 = vpop.f32.mrb[57].mxu0  ;;  %6583 = vmatmul.mubr.msk.f32.vlgmr.msra.gmra.mrb[28].mxu1 %vm2231_vm7, %v3288_v40 }
 0x9ad   :  { %7302 = vmatpush3.bf16.msra.mxu1 %v7301_v38  ;;  %6604 = vmatprep.mubr.msk.f32.mxu1 %vm7778_vm5, %v7779_v14 }
 0x9ae   :  { %7303 = vmatprep.subr.bf16.mxu1 %v7777_v13 }
 0x9b1   :  { %7305 = vmatpush3.bf16.msra.mxu1 %v7304_v10 }
 0x9b2   :  { %7312 = vmatprep.subr.bf16.mxu1 %v7777_v13 }
 0x9b3   :  { %v3442_v48 = vpop.f32.mrb[58].mxu0 }
 0x9b4   :  { %v6595_v49 = vpop.f32.mrb[59].mxu0  ;;  %6605 = vmatmul.mubr.msk.f32.vlgmr.msra.gmra.mrb[30].mxu1 %vm2231_vm7, %v3442_v48  ;;  %v5417_v48 = vld [vmem:[#allocation14] ss:$0 sm:$0xff] }
 0x9b5   :  { %7314 = vmatpush3.bf16.msra.mxu1 %v7313_v45  ;;  %6626 = vmatprep.mubr.msk.f32.mxu1 %vm7778_vm5, %v7779_v14 }
 0x9b6   :  { %7315 = vmatprep.subr.bf16.mxu1 %v7777_v13 }
 0x9b9   :  { %7317 = vmatpush3.bf16.msra.mxu1 %v7316_v50  ;;  %v5418_v50 = vld [vmem:[#allocation16] ss:$0 sm:$0xff] }
 0x9ba   :  { %7318 = vmatprep.subr.bf16.mxu1 %v7777_v13 }
 0x9bb   :  { %v3596_v51 = vpop.f32.mrb[60].mxu0 }
 0x9bc   :  { %v6617_v52 = vpop.f32.mrb[61].mxu0  ;;  %6627 = vmatmul.mubr.msk.f32.vlgmr.msra.gmra.mrb[32].mxu1 %vm2231_vm7, %v3596_v51 }
 0x9bd   :  { %6655 = vmatprep.mubr.msk.f32.mxu1 %vm7778_vm5, %v7779_v14  ;;  %7320 = vmatpush3.bf16.msra.mxu1 %v7319_v56  ;;  %v3805_v56 = vld [vmem:[%s9014_s14 + $0x8] sm:$0xff] }
 0x9be   :  { %7321 = vmatprep.subr.bf16.mxu1 %v7777_v13  ;;  %v7331_v58 = vpack.c.bf16 %v3805_v56, %v3804_v55 }
 0x9c1   :  { %7323 = vmatpush3.bf16.msra.mxu1 %v7322_v59  ;;  %v3806_v59 = vld [vmem:[%s9014_s14 + $0x10] sm:$0xff] }
 0x9c2   :  { %7324 = vmatprep.subr.bf16.mxu1 %v7777_v13  ;;  %v7334_v61 = vpack.c.bf16 %v3807_v60, %v3806_v59  ;;  %v5460_v59 = vld [vmem:[%s9014_s14 + $0x120] sm:$0xff]  ;;  %v5461_v60 = vld [vmem:[%s9014_s14 + $0x128] sm:$0xff] }
 0x9c5   :  { %7326 = vmatpush3.bf16.msra.mxu1 %v7325_v63  ;;  %v3808_v63 = vld [vmem:[%s9014_s14 + $0x20] sm:$0xff] }
 0x9c6   :  { %7327 = vmatprep.subr.bf16.mxu1 %v7777_v13  ;;  %v7337_v2 = vpack.c.bf16 %v3809_v0, %v3808_v63  ;;  %v7373_v63 = vpack.c.bf16 %v5461_v60, %v5460_v59  ;;  %v5462_v0 = vld [vmem:[%s9014_s14 + $0x130] sm:$0xff]  ;;  %v5503_v60 = vld [vmem:[%s9014_s14 + $0x218] sm:$0xff] }
 0x9c7   :  { %v5502_v59 = vld [vmem:[%s9014_s14 + $0x210] sm:$0xff] }
 0x9c9   :  { %7329 = vmatpush3.bf16.msra.mxu1 %v7328_v4  ;;  %v3811_v4 = vld [vmem:[%s9014_s14 + $0x38] sm:$0xff] }
 0x9ca   :  { %6677 = vmatprep.subr.mxu1 %v7779_v14 }
 0xa5f   :  { %v2750_v3 = vpop.f32.mrb[20].mxu1 }
 0xa60   :  { %v2754_v5 = vadd.f32 %v2750_v3, %v8551_v1  ;;  %v6496_v35 = vpop.f32.mrb[21].mxu1  ;;  %v3810_v3 = vld [vmem:[%s9014_s14 + $0x30] sm:$0xff] }
 0xa61   :  { %v5434_v35 = vld [vmem:[%s9014_s14 + $0x80] sm:$0xff] }
 0xa67   :  { %v2904_v44 = vpop.f32.mrb[22].mxu1 }
 0xa68   :  { %v2908_v53 = vadd.f32 %v2904_v44, %v2754_v5  ;;  %v6518_v62 = vpop.f32.mrb[23].mxu1  ;;  %v7340_v5 = vpack.c.bf16 %v3811_v4, %v3810_v3  ;;  %v5435_v44 = vld [vmem:[%s9014_s14 + $0x88] sm:$0xff]  ;;  %v5471_v3 = vld [vmem:[%s9014_s14 + $0x160] sm:$0xff] }
 0xa6f   :  { %v3058_v7 = vpop.f32.mrb[24].mxu1 }
 0xa70   :  { %v3062_v16 = vadd.f32 %v3058_v7, %v2908_v53  ;;  %v6540_v26 = vpop.f32.mrb[25].mxu1  ;;  %v7343_v53 = vpack.c.bf16 %v5435_v44, %v5434_v35  ;;  %v5436_v7 = vld [vmem:[%s9014_s14 + $0x90] sm:$0xff] }
 0xa71   :  { %v5473_v44 = vld [vmem:[%s9014_s14 + $0x170] sm:$0xff] }
 0xa77   :  { %v3212_v11 = vpop.f32.mrb[26].mxu1 }
 0xa78   :  { %v3216_v34 = vadd.f32 %v3212_v11, %v3062_v16  ;;  %v6562_v12 = vpop.f32.mrb[27].mxu1  ;;  %v5437_v16 = vld [vmem:[%s9014_s14 + $0x98] sm:$0xff] }
 0xa79   :  { %v7346_v11 = vpack.c.bf16 %v5437_v16, %v5436_v7  ;;  %v5438_v12 = vld [vmem:[%s9014_s14 + $0xa0] sm:$0xff] }
 0xa7f   :  { %v3366_v15 = vpop.f32.mrb[28].mxu1 }
 0xa80   :  { %v3370_v17 = vadd.f32 %v3366_v15, %v3216_v34  ;;  %v6584_v18 = vpop.f32.mrb[29].mxu1  ;;  %v5439_v15 = vld [vmem:[%s9014_s14 + $0xa8] sm:$0xff] }
 0xa81   :  { %v5432_v18 = vld [vmem:[%s9013_s13 + $0x4] sm:$0x3] }
 0xa87   :  { %v3520_v19 = vpop.f32.mrb[30].mxu1 }
 0xa88   :  { %v3524_v20 = vadd.f32 %v3520_v19, %v3370_v17  ;;  %v6606_v21 = vpop.f32.mrb[31].mxu1  ;;  %v5445_v19 = vld [vmem:[%s9014_s14 + $0xc0] sm:$0xff] }
 0xa89   :  { %v7349_v21 = vpack.c.bf16 %v5439_v15, %v5438_v12  ;;  %v5478_v12 = vld [vmem:[%s9014_s14 + $0x180] sm:$0xff]  ;;  %v5479_v15 = vld [vmem:[%s9014_s14 + $0x188] sm:$0xff] }
 0xa8f   :  { %v3674_v1 = vpop.f32.mrb[32].mxu1 }
 0xa90   :  { %v3678_v24 = vadd.f32 %v3674_v1, %v3524_v20  ;;  %v6628_v25 = vpop.f32.mrb[33].mxu1  ;;  %v5446_v20 = vld [vmem:[%s9014_s14 + $0xc8] sm:$0xff]  ;;  %v5443_v1 = vld [vmem:[%s9013_s13 + $0x6] sm:$0x3] }
 0xa91   :  { %v5448_v25 = vld [vmem:[%s9014_s14 + $0xd8] sm:$0xff] }
 0xa92   :  { %v3686_v27 = vadd.f32 %v5416_v23, %v3678_v24  ;;  %v7355_v23 = vpack.c.bf16 %v5446_v20, %v5445_v19  ;;  %v5447_v24 = vld [vmem:[%s9014_s14 + $0xd0] sm:$0xff]  ;;  %v5476_v20 = vld [vmem:[%s9013_s13 + $0xc] sm:$0x3] }
 0xa94   :  { %vm3687_vm11 = vcmp.gt.f32.partialorder %v3686_v27, 0.0  ;;  %v3688_v28 = vmul.f32 0.2, %v3686_v27 }
 0xa96   :  { %v3689_v29 = vsel %vm3687_vm11, %v3686_v27, %v3688_v28  ;;  %v7358_v27 = vpack.c.bf16 %v5448_v25, %v5447_v24  ;;  %v5440_v28 = vld [vmem:[%s9014_s14 + $0xb0] sm:$0xff] }
 0xa97   :  { %v3691_v30 = vsel %vm3690_vm12, %v3689_v29, 0.0  ;;  %v5480_v25 = vld [vmem:[%s9014_s14 + $0x190] sm:$0xff] }
 0xa98   :  { %v3692_v31 = vrot.slane %v3691_v30, 4 }
 0xa9a   :  { %v3693_v32 = vadd.f32 %v3692_v31, %v3691_v30  ;;  %v5449_v30 = vld [vmem:[%s9014_s14 + $0xe0] sm:$0xff] }
 0xa9c   :  { %v3694_v6 = vrot.slane %v3693_v32, 2 }
 0xa9e   :  { %v3695_v33 = vadd.f32 %v3694_v6, %v3693_v32  ;;  %v5450_v32 = vld [vmem:[%s9014_s14 + $0xe8] sm:$0xff] }
 0xa9f   :  { %v7361_v6 = vpack.c.bf16 %v5450_v32, %v5449_v30  ;;  %v5491_v32 = vld [vmem:[%s9014_s14 + $0x1d0] sm:$0xff] }
 0xaa0   :  { %v3696_v22 = vrot.slane %v3695_v33, 1 }
 0xaa2   :  { %v3697_v8 = vadd.f32 %v3696_v22, %v3695_v33  ;;  %v5451_v33 = vld [vmem:[%s9014_s14 + $0xf0] sm:$0xff]  ;;  %v5452_v22 = vld [vmem:[%s9014_s14 + $0xf8] sm:$0xff] }
 0xaa4   :  { %v3699_v36 = vmul.f32 0.125, %v3697_v8  ;;  %v7364_v8 = vpack.c.bf16 %v5452_v22, %v5451_v33  ;;  %v5482_v33 = vld [vmem:[%s9014_s14 + $0x1a0] sm:$0xff]  ;;  %v5483_v22 = vld [vmem:[%s9014_s14 + $0x1a8] sm:$0xff] }
 0xaa6   :  { %v3700_v37 = vsub.f32 %v3689_v29, %v3699_v36  ;;  %v5441_v29 = vld [vmem:[%s9014_s14 + $0xb8] sm:$0xff] }
 0xaa7   :  { %v7352_v31 = vpack.c.bf16 %v5441_v29, %v5440_v28  ;;  %v5487_v29 = vld [vmem:[%s9013_s13 + $0xe] sm:$0x3] }
 0xaa8   :  { %v3701_v38 = vmul.f32 %v3700_v37, %v3700_v37 }
 0xaaa   :  { %v3702_v39 = vsel %vm3690_vm12, %v3701_v38, 0.0 }
 0xaab   :  { %v3703_v9 = vrot.slane %v3702_v39, 4 }
 0xaad   :  { %v3704_v40 = vadd.f32 %v3703_v9, %v3702_v39 }
 0xaaf   :  { %v3705_v41 = vrot.slane %v3704_v40, 2 }
 0xab1   :  { %v3706_v10 = vadd.f32 %v3705_v41, %v3704_v40  ;;  %v5456_v41 = vld [vmem:[%s9014_s14 + $0x100] sm:$0xff] }
 0xab3   :  { %v3707_v42 = vrot.slane %v3706_v10, 1 }
 0xab5   :  { %v3708_v43 = vadd.f32 %v3707_v42, %v3706_v10  ;;  %v5457_v10 = vld [vmem:[%s9014_s14 + $0x108] sm:$0xff] }
 0xab7   :  { %v3709_v45 = vmul.f32 0.125, %v3708_v43  ;;  %v5454_v43 = vld [vmem:[%s9013_s13 + $0x8] sm:$0x3] }
 0xab9   :  { %v3710_v46 = vadd.f32 0.8, %v3709_v45  ;;  %v7367_v45 = vpack.c.bf16 %v5457_v10, %v5456_v41  ;;  %v5495_v10 = vld [vmem:[%s9014_s14 + $0x1f0] sm:$0xff] }
 0xabb   :  { %7501 = vrsqrt.f32 %v3710_v46  ;;  %v5467_v46 = vld [vmem:[%s9014_s14 + $0x140] sm:$0xff] }
 0xac5   :  { %v7502_v47 = vpop.eup %7501 }
 0xac6   :  { %v3712_v49 = vmul.f32 %v7502_v47, %v3700_v37  ;;  %v5468_v47 = vld [vmem:[%s9014_s14 + $0x148] sm:$0xff] }
 0xac7   :  { %v7379_v55 = vpack.c.bf16 %v5468_v47, %v5467_v46 }
 0xac8   :  { %v3720_v51 = vmul.f32 %v5417_v48, %v3712_v49  ;;  %v5458_v49 = vld [vmem:[%s9014_s14 + $0x110] sm:$0xff] }
 0xaca   :  { %v8617_v52 = vadd.f32 %v5418_v50, %v3720_v51  ;;  %v5459_v50 = vld [vmem:[%s9014_s14 + $0x118] sm:$0xff] }
 0xacb   :  { %v7370_v56 = vpack.c.bf16 %v5459_v50, %v5458_v49  ;;  %v5501_v49 = vld [vmem:[%s9014_s14 + $0x208] sm:$0xff] }
 0xacc   :  { %6630 = vmatpush3.msra.mxu0 %v8617_v52 }
 0xacd   :  { %6632 = vmatmul.mubr.msk.f32.vlgmr.msra.gmra.mrb[62].mxu0 %vm3730_vm13, %v3729_v54  ;;  %6634 = vmatprep.subr.mxu0 %v7779_v14  ;;  %v5465_v54 = vld [vmem:[%s9013_s13 + $0xa] sm:$0x3] }
 0xace   :  { %6635 = vmatpush3.msra.mxu0 %v8617_v52  ;;  %6636 = vmatprep.mubr.msk.f32.mxu0 %vm7778_vm5, %v7779_v14 }
 0xacf   :  { %7330 = vmatprep.subr.bf16.mxu0 %v7777_v13 }
 0xad1   :  { %6637 = vmatmul.mubr.msk.f32.vlgmr.msra.gmra.mrb[64].mxu0 %vm3730_vm13, %v5420_v57  ;;  %v5469_v57 = vld [vmem:[%s9014_s14 + $0x150] sm:$0xff] }
 0xad2   :  { %7332 = vmatpush3.bf16.msra.mxu0 %v7331_v58  ;;  %6674 = vmatprep.mubr.msk.f32.mxu0 %vm7778_vm5, %v7779_v14  ;;  %v5470_v58 = vld [vmem:[%s9014_s14 + $0x158] sm:$0xff] }
 0xad3   :  { %7333 = vmatprep.subr.bf16.mxu0 %v7777_v13 }
 0xad6   :  { %7335 = vmatpush3.bf16.msra.mxu0 %v7334_v61  ;;  %v7382_v61 = vpack.c.bf16 %v5470_v58, %v5469_v57  ;;  %v5498_v57 = vld [vmem:[%s9013_s13 + $0x10] sm:$0x3] }
 0xad7   :  { %7336 = vmatprep.subr.bf16.mxu0 %v7777_v13 }
 0xada   :  { %7338 = vmatpush3.bf16.msra.mxu0 %v7337_v2  ;;  %v5463_v2 = vld [vmem:[%s9014_s14 + $0x138] sm:$0xff] }
 0xadb   :  { %7339 = vmatprep.subr.bf16.mxu0 %v7777_v13  ;;  %v7376_v4 = vpack.c.bf16 %v5463_v2, %v5462_v0  ;;  %v5504_v0 = vld [vmem:[%s9014_s14 + $0x220] sm:$0xff]  ;;  %v5505_v2 = vld [vmem:[%s9014_s14 + $0x228] sm:$0xff] }
 0xade   :  { %7341 = vmatpush3.bf16.msra.mxu0 %v7340_v5  ;;  %v5472_v5 = vld [vmem:[%s9014_s14 + $0x168] sm:$0xff] }
 0xadf   :  { %7342 = vmatprep.subr.bf16.mxu0 %v7777_v13  ;;  %v7385_v35 = vpack.c.bf16 %v5472_v5, %v5471_v3  ;;  %v7421_v3 = vpack.c.bf16 %v5505_v2, %v5504_v0  ;;  %v5507_v5 = vld [vmem:[%s9014_s14 + $0x238] sm:$0xff]  ;;  %v5510_v2 = vld [vmem:[#allocation19] ss:$0 sm:$0xff] }
 0xba0   :  { %v3800_v62 = vpop.f32.mrb[62].mxu0 }
 0xba1   :  { %v6633_v26 = vpop.f32.mrb[63].mxu0  ;;  %6675 = vmatmul.mubr.msk.f32.vlgmr.msra.gmra.mrb[66].mxu0 %vm3690_vm12, %v3800_v62 }
 0xba2   :  { %7344 = vmatpush3.bf16.msra.mxu0 %v7343_v53  ;;  %6698 = vmatprep.mubr.msk.f32.mxu0 %vm7778_vm5, %v7779_v14  ;;  %v5474_v53 = vld [vmem:[%s9014_s14 + $0x178] sm:$0xff] }
 0xba3   :  { %7345 = vmatprep.subr.bf16.mxu0 %v7777_v13  ;;  %v7388_v62 = vpack.c.bf16 %v5474_v53, %v5473_v44 }
 0xba4   :  { %v3883_v34 = vpop.f32.mrb[64].mxu0 }
 0xba5   :  { %6656 = vmatmul.mubr.msk.f32.vlgmr.msra.gmra.mrb[34].mxu1 %vm3690_vm12, %v3883_v34  ;;  %v6638_v17 = vpop.f32.mrb[65].mxu0 }
 0xba6   :  { %6678 = vmatpush3.msra.mxu1 %v8617_v52  ;;  %6679 = vmatprep.mubr.msk.f32.mxu1 %vm7778_vm5, %v7779_v14 }
 0xba7   :  { %6701 = vmatprep.subr.mxu1 %v7779_v14  ;;  %7347 = vmatpush3.bf16.msra.mxu0 %v7346_v11 }
 0xba8   :  { %7348 = vmatprep.subr.bf16.mxu0 %v7777_v13 }
 0xba9   :  { %6680 = vmatmul.mubr.msk.f32.vlgmr.msra.gmra.mrb[36].mxu1 %vm3730_vm13, %v5432_v18 }
 0xbaa   :  { %6702 = vmatpush3.msra.mxu1 %v8617_v52  ;;  %6703 = vmatprep.mubr.msk.f32.mxu1 %vm7778_vm5, %v7779_v14 }
 0xbab   :  { %7354 = vmatprep.subr.bf16.mxu1 %v7777_v13  ;;  %7350 = vmatpush3.bf16.msra.mxu0 %v7349_v21  ;;  %v7391_v21 = vpack.c.bf16 %v5479_v15, %v5478_v12  ;;  %v5199_v12 = vld [vmem:[%s9018_s18 + $0x8] sm:$0xff] }
 0xbac   :  { %7351 = vmatprep.subr.bf16.mxu0 %v7777_v13 }
 0xbad   :  { %6704 = vmatmul.mubr.msk.f32.vlgmr.msra.gmra.mrb[38].mxu1 %vm3730_vm13, %v5443_v1  ;;  %v5489_v1 = vld [vmem:[%s9014_s14 + $0x1c0] sm:$0xff] }
 0xbae   :  { %7356 = vmatpush3.bf16.msra.mxu1 %v7355_v23  ;;  %6722 = vmatprep.mubr.msk.f32.mxu1 %vm7778_vm5, %v7779_v14  ;;  %v5490_v23 = vld [vmem:[%s9014_s14 + $0x1c8] sm:$0xff] }
 0xbaf   :  { %7357 = vmatprep.subr.bf16.mxu1 %v7777_v13  ;;  %7353 = vmatpush3.bf16.msra.mxu0 %v7352_v31  ;;  %v7403_v30 = vpack.c.bf16 %v5490_v23, %v5489_v1  ;;  %v5204_v23 = vld [vmem:[%s9018_s18 + $0x30] sm:$0xff] }
 0xbb0   :  { %6725 = vmatprep.subr.mxu0 %v7779_v14 }
 0xbb2   :  { %7359 = vmatpush3.bf16.msra.mxu1 %v7358_v27  ;;  %v5481_v27 = vld [vmem:[%s9014_s14 + $0x198] sm:$0xff] }
 0xbb3   :  { %7360 = vmatprep.subr.bf16.mxu1 %v7777_v13  ;;  %v7394_v31 = vpack.c.bf16 %v5481_v27, %v5480_v25  ;;  %v5206_v27 = vld [vmem:[%s9018_s18 + $0x40] sm:$0xff] }
 0xbb6   :  { %7362 = vmatpush3.bf16.msra.mxu1 %v7361_v6  ;;  %v5492_v6 = vld [vmem:[%s9014_s14 + $0x1d8] sm:$0xff] }
 0xbb7   :  { %7363 = vmatprep.subr.bf16.mxu1 %v7777_v13 }
 0xbba   :  { %7365 = vmatpush3.bf16.msra.mxu1 %v7364_v8  ;;  %v7406_v8 = vpack.c.bf16 %v5492_v6, %v5491_v32  ;;  %v5210_v6 = vld [vmem:[%s9018_s18 + $0x60] sm:$0xff] }
 0xbbb   :  { %6749 = vmatprep.subr.mxu1 %v7779_v14 }
 0xc74   :  { %v4038_v36 = vpop.f32.mrb[66].mxu0 }
 0xc75   :  { %v6676_v37 = vpop.f32.mrb[67].mxu0 }
 0xc76   :  { %v5484_v37 = vld [vmem:[%s9014_s14 + $0x1b0] sm:$0xff] }
 0xc78   :  { %v3965_v38 = vpop.f32.mrb[34].mxu1 }
 0xc79   :  { %v4039_v39 = vadd.f32 %v4038_v36, %v3965_v38  ;;  %v6657_v9 = vpop.f32.mrb[35].mxu1  ;;  %v7397_v36 = vpack.c.bf16 %v5483_v22, %v5482_v33  ;;  %v5485_v38 = vld [vmem:[%s9014_s14 + $0x1b8] sm:$0xff]  ;;  %v5211_v33 = vld [vmem:[%s9018_s18 + $0x68] sm:$0xff] }
 0xc7a   :  { %v5493_v9 = vld [vmem:[%s9014_s14 + $0x1e0] sm:$0xff]  ;;  %v7445_v22 = vpack.c.bf16 %v5211_v33, %v5210_v6 }
 0xc7c   :  { %v4113_v40 = vpop.f32.mrb[36].mxu1 }
 0xc7d   :  { %6699 = vmatmul.mubr.msk.f32.vlgmr.msra.gmra.mrb[68].mxu0 %vm3690_vm12, %v4113_v40  ;;  %v6681_v42 = vpop.f32.mrb[37].mxu1  ;;  %v5494_v40 = vld [vmem:[%s9014_s14 + $0x1e8] sm:$0xff] }
 0xc7e   :  { %6726 = vmatpush3.msra.mxu0 %v8617_v52  ;;  %6727 = vmatprep.mubr.msk.f32.mxu0 %vm7778_vm5, %v7779_v14  ;;  %v7409_v41 = vpack.c.bf16 %v5494_v40, %v5493_v9  ;;  %v5496_v42 = vld [vmem:[%s9014_s14 + $0x1f8] sm:$0xff] }
 0xc7f   :  { %7366 = vmatprep.subr.bf16.mxu0 %v7777_v13 }
 0xc80   :  { %v4271_v48 = vpop.f32.mrb[38].mxu1 }
 0xc81   :  { %6723 = vmatmul.mubr.msk.f32.vlgmr.msra.gmra.mrb[40].mxu1 %vm3690_vm12, %v4271_v48  ;;  %6728 = vmatmul.mubr.msk.f32.vlgmr.msra.gmra.mrb[70].mxu0 %vm3730_vm13, %v5454_v43  ;;  %v6705_v51 = vpop.f32.mrb[39].mxu1  ;;  %v7412_v43 = vpack.c.bf16 %v5496_v42, %v5495_v10  ;;  %v5500_v48 = vld [vmem:[%s9014_s14 + $0x200] sm:$0xff] }
 0xc82   :  { %6750 = vmatpush3.msra.mxu1 %v8617_v52  ;;  %6751 = vmatprep.mubr.msk.f32.mxu1 %vm7778_vm5, %v7779_v14  ;;  %v7415_v58 = vpack.c.bf16 %v5501_v49, %v5500_v48 }
 0xc83   :  { %7368 = vmatpush3.bf16.msra.mxu0 %v7367_v45  ;;  %7378 = vmatprep.subr.bf16.mxu1 %v7777_v13 }
 0xc84   :  { %7369 = vmatprep.subr.bf16.mxu0 %v7777_v13  ;;  %6746 = vmatprep.mubr.msk.f32.mxu0 %vm7778_vm5, %v7779_v14 }
 0xc85   :  { %6752 = vmatmul.mubr.msk.f32.vlgmr.msra.gmra.mrb[42].mxu1 %vm3730_vm13, %v5465_v54 }
 0xc86   :  { %7380 = vmatpush3.bf16.msra.mxu1 %v7379_v55  ;;  %6770 = vmatprep.mubr.msk.f32.mxu1 %vm7778_vm5, %v7779_v14 }
 0xc87   :  { %7371 = vmatpush3.bf16.msra.mxu0 %v7370_v56  ;;  %7381 = vmatprep.subr.bf16.mxu1 %v7777_v13 }
 0xc88   :  { %7372 = vmatprep.subr.bf16.mxu0 %v7777_v13 }
 0xc8a   :  { %7383 = vmatpush3.bf16.msra.mxu1 %v7382_v61 }
 0xc8b   :  { %7374 = vmatpush3.bf16.msra.mxu0 %v7373_v63  ;;  %7384 = vmatprep.subr.bf16.mxu1 %v7777_v13  ;;  %v7418_v63 = vpack.c.bf16 %v5503_v60, %v5502_v59 }
 0xc8c   :  { %7375 = vmatprep.subr.bf16.mxu0 %v7777_v13 }
 0xc8e   :  { %7386 = vmatpush3.bf16.msra.mxu1 %v7385_v35 }
 0xc8f   :  { %7377 = vmatpush3.bf16.msra.mxu0 %v7376_v4  ;;  %7387 = vmatprep.subr.bf16.mxu1 %v7777_v13  ;;  %v5506_v4 = vld [vmem:[%s9014_s14 + $0x230] sm:$0xff] }
 0xc90   :  { %6773 = vmatprep.subr.mxu0 %v7779_v14  ;;  %v7424_v35 = vpack.c.bf16 %v5507_v5, %v5506_v4  ;;  %v5511_v4 = vld [vmem:[%s9017_s17] ss:$0 sm:$0xff] }
 0xc92   :  { %7389 = vmatpush3.bf16.msra.mxu1 %v7388_v62 }
 0xc93   :  { %6797 = vmatprep.subr.mxu1 %v7779_v14 }
 0xd50   :  { %v4195_v7 = vpop.f32.mrb[68].mxu0 }
 0xd51   :  { %v4199_v16 = vadd.f32 %v4195_v7, %v4039_v39  ;;  %v6700_v26 = vpop.f32.mrb[69].mxu0  ;;  %v7400_v39 = vpack.c.bf16 %v5485_v38, %v5484_v37 }
 0xd54   :  { %v4353_v11 = vpop.f32.mrb[40].mxu1  ;;  %v4429_v34 = vpop.f32.mrb[70].mxu0 }
 0xd55   :  { %v4357_v17 = vadd.f32 %v4353_v11, %v4199_v16  ;;  %6747 = vmatmul.mubr.msk.f32.vlgmr.msra.gmra.mrb[72].mxu0 %vm3690_vm12, %v4429_v34  ;;  %v6724_v18 = vpop.f32.mrb[41].mxu1  ;;  %v6729_v19 = vpop.f32.mrb[71].mxu0  ;;  %v5198_v34 = vld [vmem:[%s9018_s18] sm:$0xff] }
 0xd56   :  { %6774 = vmatpush3.msra.mxu0 %v8617_v52  ;;  %6775 = vmatprep.mubr.msk.f32.mxu0 %vm7778_vm5, %v7779_v14  ;;  %v7427_v15 = vpack.c.bf16 %v5199_v12, %v5198_v34  ;;  %v5201_v18 = vld [vmem:[%s9018_s18 + $0x18] sm:$0xff] }
 0xd57   :  { %7390 = vmatprep.subr.bf16.mxu0 %v7777_v13 }
 0xd58   :  { %v4587_v24 = vpop.f32.mrb[42].mxu1 }
 0xd59   :  { %6771 = vmatmul.mubr.msk.f32.vlgmr.msra.gmra.mrb[44].mxu1 %vm3690_vm12, %v4587_v24  ;;  %6776 = vmatmul.mubr.msk.f32.vlgmr.msra.gmra.mrb[74].mxu0 %vm3730_vm13, %v5476_v20  ;;  %v6753_v28 = vpop.f32.mrb[43].mxu1  ;;  %v5202_v20 = vld [vmem:[%s9018_s18 + $0x20] sm:$0xff]  ;;  %v5205_v24 = vld [vmem:[%s9018_s18 + $0x38] sm:$0xff] }
 0xd5a   :  { %6798 = vmatpush3.msra.mxu1 %v8617_v52  ;;  %6799 = vmatprep.mubr.msk.f32.mxu1 %vm7778_vm5, %v7779_v14  ;;  %v7436_v25 = vpack.c.bf16 %v5205_v24, %v5204_v23  ;;  %v5207_v28 = vld [vmem:[%s9018_s18 + $0x48] sm:$0xff] }
 0xd5b   :  { %7392 = vmatpush3.bf16.msra.mxu0 %v7391_v21  ;;  %7402 = vmatprep.subr.bf16.mxu1 %v7777_v13  ;;  %v5203_v21 = vld [vmem:[%s9018_s18 + $0x28] sm:$0xff] }
 0xd5c   :  { %7393 = vmatprep.subr.bf16.mxu0 %v7777_v13  ;;  %6794 = vmatprep.mubr.msk.f32.mxu0 %vm7778_vm5, %v7779_v14  ;;  %v7433_v1 = vpack.c.bf16 %v5203_v21, %v5202_v20 }
 0xd5d   :  { %6800 = vmatmul.mubr.msk.f32.vlgmr.msra.gmra.mrb[46].mxu1 %vm3730_vm13, %v5487_v29  ;;  %v7439_v29 = vpack.c.bf16 %v5207_v28, %v5206_v27 }
 0xd5e   :  { %7404 = vmatpush3.bf16.msra.mxu1 %v7403_v30  ;;  %6818 = vmatprep.mubr.msk.f32.mxu1 %vm7778_vm5, %v7779_v14  ;;  %v5208_v30 = vld [vmem:[%s9018_s18 + $0x50] sm:$0xff] }
 0xd5f   :  { %7395 = vmatpush3.bf16.msra.mxu0 %v7394_v31  ;;  %7405 = vmatprep.subr.bf16.mxu1 %v7777_v13  ;;  %v5209_v31 = vld [vmem:[%s9018_s18 + $0x58] sm:$0xff] }
 0xd60   :  { %7396 = vmatprep.subr.bf16.mxu0 %v7777_v13  ;;  %v7442_v32 = vpack.c.bf16 %v5209_v31, %v5208_v30 }
 0xd62   :  { %7407 = vmatpush3.bf16.msra.mxu1 %v7406_v8  ;;  %v5212_v8 = vld [vmem:[%s9018_s18 + $0x70] sm:$0xff] }
 0xd63   :  { %7398 = vmatpush3.bf16.msra.mxu0 %v7397_v36  ;;  %7408 = vmatprep.subr.bf16.mxu1 %v7777_v13  ;;  %v5213_v36 = vld [vmem:[%s9018_s18 + $0x78] sm:$0xff] }
 0xd64   :  { %7399 = vmatprep.subr.bf16.mxu0 %v7777_v13  ;;  %v7448_v37 = vpack.c.bf16 %v5213_v36, %v5212_v8 }
 0xd66   :  { %7410 = vmatpush3.bf16.msra.mxu1 %v7409_v41 }
 0xd67   :  { %7401 = vmatpush3.bf16.msra.mxu0 %v7400_v39  ;;  %7411 = vmatprep.subr.bf16.mxu1 %v7777_v13  ;;  %v5509_v39 = vld [vmem:[#allocation17] ss:$0 sm:$0xff] }
 0xd68   :  { %6821 = vmatprep.subr.mxu0 %v7779_v14 }
 0xd6a   :  { %7413 = vmatpush3.bf16.msra.mxu1 %v7412_v43 }
 0xd6b   :  { %7426 = vmatprep.subr.bf16.mxu1 %v7777_v13 }
 0xe28   :  { %v4511_v45 = vpop.f32.mrb[72].mxu0 }
 0xe29   :  { %v4515_v46 = vadd.f32 %v4511_v45, %v4357_v17  ;;  %v6748_v47 = vpop.f32.mrb[73].mxu0  ;;  %v5200_v17 = vld [vmem:[%s9018_s18 + $0x10] sm:$0xff] }
 0xe2a   :  { %v7430_v19 = vpack.c.bf16 %v5201_v18, %v5200_v17 }
 0xe2c   :  { %v4669_v50 = vpop.f32.mrb[44].mxu1  ;;  %v4745_v51 = vpop.f32.mrb[74].mxu0 }
 0xe2d   :  { %v4673_v54 = vadd.f32 %v4669_v50, %v4515_v46  ;;  %6795 = vmatmul.mubr.msk.f32.vlgmr.msra.gmra.mrb[76].mxu0 %vm3690_vm12, %v4745_v51  ;;  %v6772_v55 = vpop.f32.mrb[45].mxu1  ;;  %v6777_v56 = vpop.f32.mrb[75].mxu0 }
 0xe2e   :  { %6822 = vmatpush3.msra.mxu0 %v8617_v52  ;;  %6823 = vmatprep.mubr.msk.f32.mxu0 %vm7778_vm5, %v7779_v14 }
 0xe2f   :  { %7414 = vmatprep.subr.bf16.mxu0 %v7777_v13 }
 0xe30   :  { %v4903_v61 = vpop.f32.mrb[46].mxu1 }
 0xe31   :  { %6819 = vmatmul.mubr.msk.f32.vlgmr.msra.gmra.mrb[48].mxu1 %vm3690_vm12, %v4903_v61  ;;  %6824 = vmatmul.mubr.msk.f32.vlgmr.msra.gmra.mrb[78].mxu0 %vm3730_vm13, %v5498_v57  ;;  %v6801_v52 = vpop.f32.mrb[47].mxu1 }
 0xe32   :  { %7416 = vmatpush3.bf16.msra.mxu0 %v7415_v58  ;;  %6842 = vmatprep.mubr.msk.f32.mxu0 %vm7778_vm5, %v7779_v14 }
 0xe33   :  { %7417 = vmatprep.subr.bf16.mxu0 %v7777_v13  ;;  %6877 = vmatprep.mubr.msk.f32.mxu1 %vm7778_vm5, %v7779_v14 }
 0xe34   :  { %7428 = vmatpush3.bf16.msra.mxu1 %v7427_v15 }
 0xe35   :  { %7429 = vmatprep.subr.bf16.mxu1 %v7777_v13 }
 0xe36   :  { %7419 = vmatpush3.bf16.msra.mxu0 %v7418_v63 }
 0xe37   :  { %7420 = vmatprep.subr.bf16.mxu0 %v7777_v13 }
 0xe38   :  { %7431 = vmatpush3.bf16.msra.mxu1 %v7430_v19 }
 0xe39   :  { %7432 = vmatprep.subr.bf16.mxu1 %v7777_v13 }
 0xe3a   :  { %7422 = vmatpush3.bf16.msra.mxu0 %v7421_v3 }
 0xe3b   :  { %7423 = vmatprep.subr.bf16.mxu0 %v7777_v13 }
 0xe3c   :  { %7434 = vmatpush3.bf16.msra.mxu1 %v7433_v1 }
 0xe3d   :  { %7435 = vmatprep.subr.bf16.mxu1 %v7777_v13 }
 0xe3e   :  { %7425 = vmatpush3.bf16.msra.mxu0 %v7424_v35 }
 0xe40   :  { %7437 = vmatpush3.bf16.msra.mxu1 %v7436_v25 }
 0xe41   :  { %7438 = vmatprep.subr.bf16.mxu1 %v7777_v13 }
 0xe44   :  { %7440 = vmatpush3.bf16.msra.mxu1 %v7439_v29 }
 0xe45   :  { %7441 = vmatprep.subr.bf16.mxu1 %v7777_v13 }
 0xe48   :  { %7443 = vmatpush3.bf16.msra.mxu1 %v7442_v32 }
 0xe49   :  { %7444 = vmatprep.subr.bf16.mxu1 %v7777_v13 }
 0xe4c   :  { %7446 = vmatpush3.bf16.msra.mxu1 %v7445_v22 }
 0xe4d   :  { %7447 = vmatprep.subr.bf16.mxu1 %v7777_v13 }
 0xe50   :  { %7449 = vmatpush3.bf16.msra.mxu1 %v7448_v37 }
 0xf00   :  { %v4827_v44 = vpop.f32.mrb[76].mxu0 }
 0xf01   :  { %v4831_v53 = vadd.f32 %v4827_v44, %v4673_v54  ;;  %v6796_v14 = vpop.f32.mrb[77].mxu0  ;;  %v5512_v44 = vld [vmem:[#allocation2] ss:$0 sm:$0xff] }
 0xf04   :  { %v4985_v62 = vpop.f32.mrb[48].mxu1  ;;  %v5061_v7 = vpop.f32.mrb[78].mxu0 }
 0xf05   :  { %v4989_v16 = vadd.f32 %v4985_v62, %v4831_v53  ;;  %6843 = vmatmul.mubr.msk.f32.vlgmr.msra.gmra.mrb[80].mxu0 %vm3690_vm12, %v5061_v7  ;;  %v6825_v26 = vpop.f32.mrb[79].mxu0  ;;  %v6820_v11 = vpop.f32.mrb[49].mxu1 }
 0xfd8   :  { %v5143_v38 = vpop.f32.mrb[80].mxu0 }
 0xfd9   :  { %v5147_v9 = vadd.f32 %v5143_v38, %v4989_v16  ;;  %v6844_v40 = vpop.f32.mrb[81].mxu0 }
 0xfdb   :  { %v5155_v41 = vadd.f32 %v5509_v39, %v5147_v9 }
 0xfdd   :  { %vm5156_vm14 = vcmp.gt.f32.partialorder %v5155_v41, 0.0  ;;  %v5157_v10 = vmul.f32 0.2, %v5155_v41 }
 0xfdf   :  { %v5158_v42 = vsel %vm5156_vm14, %v5155_v41, %v5157_v10 }
 0xfe0   :  { %v5160_v43 = vsel %vm5159_vm15, %v5158_v42, 0.0 }
 0xfe1   :  { %v5161_v45 = vrot.slane %v5160_v43, 4 }
 0xfe3   :  { %v5162_v46 = vadd.f32 %v5161_v45, %v5160_v43 }
 0xfe5   :  { %v5163_v47 = vrot.slane %v5162_v46, 2 }
 0xfe7   :  { %v5164_v48 = vadd.f32 %v5163_v47, %v5162_v46 }
 0xfe9   :  { %v5165_v49 = vrot.slane %v5164_v48, 1 }
 0xfeb   :  { %v5166_v50 = vadd.f32 %v5165_v49, %v5164_v48 }
 0xfed   :  { %v5168_v51 = vmul.f32 0.5, %v5166_v50 }
 0xfef   :  { %v5169_v13 = vsub.f32 %v5158_v42, %v5168_v51 }
 0xff1   :  { %v5170_v54 = vmul.f32 %v5169_v13, %v5169_v13 }
 0xff3   :  { %v5171_v55 = vsel %vm5159_vm15, %v5170_v54, 0.0 }
 0xff4   :  { %v5172_v56 = vrot.slane %v5171_v55, 4 }
 0xff6   :  { %v5173_v57 = vadd.f32 %v5172_v56, %v5171_v55 }
 0xff8   :  { %v5174_v58 = vrot.slane %v5173_v57, 2 }
 0xffa   :  { %v5175_v59 = vadd.f32 %v5174_v58, %v5173_v57 }
 0xffc   :  { %v5176_v60 = vrot.slane %v5175_v59, 1 }
 0xffe   :  { %v5177_v61 = vadd.f32 %v5176_v60, %v5175_v59 }
0x1000   :  { %v5178_v52 = vmul.f32 0.5, %v5177_v61 }
0x1002   :  { %v5179_v63 = vadd.f32 0.8, %v5178_v52 }
0x1004   :  { %7503 = vrsqrt.f32 %v5179_v63 }
0x100e   :  { %v7504_v0 = vpop.eup %7503 }
0x100f   :  { %v5181_v3 = vmul.f32 %v7504_v0, %v5169_v13 }
0x1011   :  { %v5189_v5 = vmul.f32 %v5510_v2, %v5181_v3 }
0x1013   :  { %v5197_v35 = vadd.f32 %v5511_v4, %v5189_v5 }
0x1015   :  { %6878 = vmatmul.mubr.f32.vlgmr.msra.gmra.mrb[50].mxu1 %v5197_v35 }
0x10e8   :  { %v5287_v53 = vpop.f32.mrb[50].mxu1 }
0x10e9   :  { %v5288_v14 = vadd.f32 %v5512_v44, %v5287_v53  ;;  %v6879_v62 = vpop.f32.mrb[51].mxu1 }
0x10eb   :  { %v5291_v7 = vsub.f32 0.0, %v5288_v14 }
0x10ed   :  { %v5292_v16 = vmul.f32 1.442695, %v5291_v7 }
0x10ef   :  { %7505 = vpow2.f32 %v5292_v16 }
0x10f9   :  { %v7506_v26 = vpop.eup %7505 }
0x10fa   :  { %v5294_v11 = vadd.f32 1.0, %v7506_v26 }
0x10fc   :  { %7507 = vrcp.f32 %v5294_v11 }
0x1106   :  { %v7508_v34 = vpop.eup %7507 }
0x1107   :  { %5298 = vst.msk [vmem:[%s9020_s20] sm:$0x3] %vm5297_vm0, %v7508_v34 }
0x1108   :  { %5303 = vsyncpa [#allocation4], 1 }
0x1109   :  { %5304 = vsyncpa [#allocation6], 1 }
0x110a   :  { %5305 = vsyncpa [#allocation9], 1 }
0x110b   :  { %5306 = vsyncpa [#allocation12], 1 }
0x110c   :  { %5307 = vsyncpa [#allocation15], 1 }
0x110d   :  { %5308 = vsyncpa [#allocation18], 1 }

</bundles_post_ra>
